<compile_context>
chip_gen: v6e
topology: v6e:2x2x1
jax: 0.10.0
libtpu: 0.0.40
codegen_flags: <defaults>
</compile_context>

<pallas_src>
import functools

import jax
import jax.numpy as jnp
from jax import lax
from jax.experimental import pallas as pl
from jax.experimental.pallas import tpu as pltpu


def _netd_kernel(x_ref,
                 w_ih_e_ref, w_hh_e_ref, b_ih_e_ref, b_hh_e_ref,
                 w_ih_d_ref, w_hh_d_ref, b_ih_d_ref, b_hh_d_ref,
                 enc_out_ref, dec_out_ref, *, T, H, V):
    """Fused NetD forward (PyTorch GRU semantics, h0 = 0, gate order r,z,n).

    x_ref      : (B, T, V)   batch-first input window
    w_ih_e_ref : (V, 3H)     encoder input->gates weight (transposed torch weight_ih)
    w_hh_e_ref : (H, 3H)     encoder hidden->gates weight
    b_*_e_ref  : (1, 3H)     encoder biases
    w_ih_d_ref : (H, 3V)     decoder input->gates weight
    w_hh_d_ref : (V, 3V)     decoder hidden->gates weight
    b_*_d_ref  : (1, 3V)     decoder biases
    enc_out_ref: (B, T*H)    lane-dense encoder hidden-state slab
    dec_out_ref: (B, T*V)    lane-dense decoder hidden-state slab
    """
    f32 = jnp.float32
    x = x_ref[...].astype(f32)                          # (B, T, V)
    B = x.shape[0]

    # ---------------- one-time prep (off the serial recurrence) -------------
    w_ih_e = w_ih_e_ref[...].astype(f32)                # (V, 3H)
    w_hh_e = w_hh_e_ref[...].astype(f32)                # (H, 3H)
    b_ih_e = b_ih_e_ref[...].astype(f32)                # (1, 3H)
    b_hh_e = b_hh_e_ref[...].astype(f32)                # (1, 3H)
    w_ih_d = w_ih_d_ref[...].astype(f32)                # (H, 3V)
    w_hh_d = w_hh_d_ref[...].astype(f32)                # (V, 3V)
    b_ih_d = b_ih_d_ref[...].astype(f32)                # (1, 3V)
    b_hh_d = b_hh_d_ref[...].astype(f32)                # (1, 3V)

    def split3(a, n):
        return a[:, 0 * n:1 * n], a[:, 1 * n:2 * n], a[:, 2 * n:3 * n]

    whe_r, whe_z, whe_n = split3(w_hh_e, H)             # (H, H) each
    wid_r, wid_z, wid_n = split3(w_ih_d, V)             # (H, V) each
    whd_r, whd_z, whd_n = split3(w_hh_d, V)             # (V, V) each
    bie_r, bie_z, bie_n = split3(b_ih_e, H)
    bhe_r, bhe_z, bhe_n = split3(b_hh_e, H)
    bid_r, bid_z, bid_n = split3(b_ih_d, V)
    bhd_r, bhd_z, bhd_n = split3(b_hh_d, V)

    # Hoisted encoder input projection: one (B*T, V) @ (V, 3H) matmul.
    # r/z biases (b_ih + b_hh) are folded here (those gates sum gi + gh),
    # so they vanish from the per-step chain; the n gate keeps only b_ih
    # (its b_hh term is multiplied by r and must stay with gh_n).
    gi_e = jnp.dot(x.reshape(B * T, V), w_ih_e,
                   preferred_element_type=f32).reshape(B, T, 3 * H)
    gi_e_r = gi_e[:, :, 0 * H:1 * H] + (bie_r + bhe_r)
    gi_e_z = gi_e[:, :, 1 * H:2 * H] + (bie_z + bhe_z)
    gi_e_n = gi_e[:, :, 2 * H:3 * H] + bie_n

    # Bias broadcasts hoisted once (JAX does not CSE broadcast_in_dim).
    bhe_n_b = jnp.broadcast_to(bhe_n, (B, H))
    bd_r_b = jnp.broadcast_to(bid_r + bhd_r, (B, V))
    bd_z_b = jnp.broadcast_to(bid_z + bhd_z, (B, V))
    bid_n_b = jnp.broadcast_to(bid_n, (B, V))
    bhd_n_b = jnp.broadcast_to(bhd_n, (B, V))

    def gru_step(h, gi_r, gi_z, gi_n, w_r, w_z, w_n, bh_n):
        # Per-gate dots: every operand sits at lanes [0, width) of its own
        # value -> gate math is pure VPU/EUP, no cross-lane rotates on the
        # serial chain.  r/z biases are already folded into gi_r/gi_z.
        gh_r = jnp.dot(h, w_r, preferred_element_type=f32)
        gh_z = jnp.dot(h, w_z, preferred_element_type=f32)
        gh_n = jnp.dot(h, w_n, preferred_element_type=f32) + bh_n
        r = jax.nn.sigmoid(gi_r + gh_r)
        z = jax.nn.sigmoid(gi_z + gh_z)
        n = jnp.tanh(gi_n + r * gh_n)
        return (1.0 - z) * n + z * h

    # ---------------- skewed, fully unrolled recurrence ---------------------
    # Slot s: encoder step s (for s < T) and decoder step s-1 (for s >= 1).
    # Decoder step s-1 needs exactly enc_h[s-1], which is h_e at slot entry,
    # so its dots share the encoder's LHS and it runs ~one slot behind with
    # a full slot of slack -- off the encoder's critical path.
    h_e = jnp.zeros((B, H), f32)
    h_d = jnp.zeros((B, V), f32)
    for s in range(T + 1):                               # fully unrolled (T static, tiny)
        h_e_prev = h_e
        if s < T:
            h_e = gru_step(h_e_prev,
                           gi_e_r[:, s, :], gi_e_z[:, s, :], gi_e_n[:, s, :],
                           whe_r, whe_z, whe_n, bhe_n_b)
            # Store straight into the lane-dense slab; off the critical chain.
            enc_out_ref[:, s * H:(s + 1) * H] = h_e.astype(enc_out_ref.dtype)
        if s >= 1:
            d = s - 1
            # Decoder input projection for step d uses enc_h[d] == h_e_prev.
            gi_d_r = jnp.dot(h_e_prev, wid_r, preferred_element_type=f32) + bd_r_b
            gi_d_z = jnp.dot(h_e_prev, wid_z, preferred_element_type=f32) + bd_z_b
            gi_d_n = jnp.dot(h_e_prev, wid_n, preferred_element_type=f32) + bid_n_b
            h_d = gru_step(h_d, gi_d_r, gi_d_z, gi_d_n,
                           whd_r, whd_z, whd_n, bhd_n_b)
            dec_out_ref[:, d * V:(d + 1) * V] = h_d.astype(dec_out_ref.dtype)


def netd_forward(X, enc_params, dec_params):
    """NetD.forward: X (B, T, var_dim) -> (X_enc (B,T,H), X_dec (B,T,var_dim)).

    Throughput note: at these tiny widths the kernel is latency-bound on the
    serial T-step chain and per-step cost is nearly independent of B up to
    the MXU row count, so stacking many sliding windows into B (>= 8 rows,
    ideally 128+) at the call site scales throughput almost linearly for free.
    """
    B, T, V = X.shape
    H = enc_params["w_hh"].shape[0]
    kernel = functools.partial(_netd_kernel, T=T, H=H, V=V)
    vmem = pl.BlockSpec(memory_space=pltpu.MemorySpace.VMEM)
    enc_slab, dec_slab = pl.pallas_call(
        kernel,
        out_shape=(jax.ShapeDtypeStruct((B, T * H), X.dtype),
                   jax.ShapeDtypeStruct((B, T * V), X.dtype)),
        in_specs=[vmem] * 9,
        out_specs=(vmem, vmem),
    )(X,
      enc_params["w_ih"], enc_params["w_hh"], enc_params["b_ih"], enc_params["b_hh"],
      dec_params["w_ih"], dec_params["w_hh"], dec_params["b_ih"], dec_params["b_hh"])
    # Metadata-only reshapes back to the PyTorch batch-first output layout.
    return enc_slab.reshape(B, T, H), dec_slab.reshape(B, T, V)


def init_gru_params(key, input_dim, hidden_dim, dtype=jnp.float32):
    """Deterministic init mimicking torch.nn.GRU: U(-1/sqrt(H), 1/sqrt(H)).

    Weights stored transposed ((I, 3H) / (H, 3H)) for right-multiplication;
    biases stored as (1, 3H) rows.  Gate column order is (r, z, n).
    """
    k = 1.0 / jnp.sqrt(jnp.array(hidden_dim, jnp.float32))
    k1, k2, k3, k4 = jax.random.split(key, 4)
    w_ih = jax.random.uniform(k1, (input_dim, 3 * hidden_dim), dtype, -k, k)
    w_hh = jax.random.uniform(k2, (hidden_dim, 3 * hidden_dim), dtype, -k, k)
    b_ih = jax.random.uniform(k3, (1, 3 * hidden_dim), dtype, -k, k)
    b_hh = jax.random.uniform(k4, (1, 3 * hidden_dim), dtype, -k, k)
    return dict(w_ih=w_ih, w_hh=w_hh, b_ih=b_ih, b_hh=b_hh)


def _gru_ref(x_tbi, w_ih, w_hh, b_ih, b_hh):
    """Pure-JAX reference GRU (lax.scan, time-major) for correctness check."""
    T, B, I = x_tbi.shape
    H = w_hh.shape[0]

    def step(h, x_t):
        gi = x_t @ w_ih + b_ih
        gh = h @ w_hh + b_hh
        r = jax.nn.sigmoid(gi[:, :H] + gh[:, :H])
        z = jax.nn.sigmoid(gi[:, H:2 * H] + gh[:, H:2 * H])
        n = jnp.tanh(gi[:, 2 * H:] + r * gh[:, 2 * H:])
        h_new = (1.0 - z) * n + z * h
        return h_new, h_new

    _, ys = lax.scan(step, jnp.zeros((B, H), jnp.float32), x_tbi)
    return ys


if __name__ == "__main__":
    # Small shapes implied by the module: batch=2, wnd_dim (seq)=8,
    # var_dim=4, RNN_hid_dim=32.
    B, T, V, H = 2, 8, 4, 32

    root = jax.random.PRNGKey(0)
    kx, kenc, kdec = jax.random.split(root, 3)

    X = jax.random.normal(kx, (B, T, V), jnp.float32)
    enc_params = init_gru_params(kenc, V, H)   # GRU(var_dim -> RNN_hid_dim)
    dec_params = init_gru_params(kdec, H, V)   # GRU(RNN_hid_dim -> var_dim)

    X_enc, X_dec = jax.jit(netd_forward)(X, enc_params, dec_params)
    jax.block_until_ready((X_enc, X_dec))

    assert X_enc.shape == (B, T, H), X_enc.shape
    assert X_dec.shape == (B, T, V), X_dec.shape

    # Correctness check against a pure-JAX (time-major) reference.
    x_tbi = jnp.transpose(X, (1, 0, 2))
    enc_ref = _gru_ref(x_tbi, **enc_params)
    dec_ref = _gru_ref(enc_ref, **dec_params)
    assert jnp.allclose(X_enc, jnp.transpose(enc_ref, (1, 0, 2)), atol=1e-5, rtol=1e-5)
    assert jnp.allclose(X_dec, jnp.transpose(dec_ref, (1, 0, 2)), atol=1e-5, rtol=1e-5)

    print("KERNEL_OK")
</pallas_src>

<mosaic_0001>
module attributes {stable_mosaic.version = 11 : i64} {
  func.func @_netd_kernel(%arg0: memref<2x8x4xf32, #tpu.memory_space<vmem>>, %arg1: memref<4x96xf32, #tpu.memory_space<vmem>>, %arg2: memref<32x96xf32, #tpu.memory_space<vmem>>, %arg3: memref<1x96xf32, #tpu.memory_space<vmem>>, %arg4: memref<1x96xf32, #tpu.memory_space<vmem>>, %arg5: memref<32x12xf32, #tpu.memory_space<vmem>>, %arg6: memref<4x12xf32, #tpu.memory_space<vmem>>, %arg7: memref<1x12xf32, #tpu.memory_space<vmem>>, %arg8: memref<1x12xf32, #tpu.memory_space<vmem>>, %arg9: memref<2x256xf32, #tpu.memory_space<vmem>>, %arg10: memref<2x32xf32, #tpu.memory_space<vmem>>) attributes {dimension_semantics = [], scalar_prefetch = 0 : i64, scratch_operands = 0 : i64, tpu.core_type = #tpu.core_type<tc>} {
    %c0 = arith.constant 0 : index
    %c0_0 = arith.constant 0 : index
    %c0_1 = arith.constant 0 : index
    %0 = vector.load %arg0[%c0, %c0_0, %c0_1] : memref<2x8x4xf32, #tpu.memory_space<vmem>>, vector<2x8x4xf32>
    %c0_2 = arith.constant 0 : index
    %c0_3 = arith.constant 0 : index
    %1 = vector.load %arg1[%c0_2, %c0_3] : memref<4x96xf32, #tpu.memory_space<vmem>>, vector<4x96xf32>
    %c0_4 = arith.constant 0 : index
    %c0_5 = arith.constant 0 : index
    %2 = vector.load %arg2[%c0_4, %c0_5] : memref<32x96xf32, #tpu.memory_space<vmem>>, vector<32x96xf32>
    %c0_6 = arith.constant 0 : index
    %c0_7 = arith.constant 0 : index
    %3 = vector.load %arg3[%c0_6, %c0_7] : memref<1x96xf32, #tpu.memory_space<vmem>>, vector<1x96xf32>
    %c0_8 = arith.constant 0 : index
    %c0_9 = arith.constant 0 : index
    %4 = vector.load %arg4[%c0_8, %c0_9] : memref<1x96xf32, #tpu.memory_space<vmem>>, vector<1x96xf32>
    %c0_10 = arith.constant 0 : index
    %c0_11 = arith.constant 0 : index
    %5 = vector.load %arg5[%c0_10, %c0_11] : memref<32x12xf32, #tpu.memory_space<vmem>>, vector<32x12xf32>
    %c0_12 = arith.constant 0 : index
    %c0_13 = arith.constant 0 : index
    %6 = vector.load %arg6[%c0_12, %c0_13] : memref<4x12xf32, #tpu.memory_space<vmem>>, vector<4x12xf32>
    %c0_14 = arith.constant 0 : index
    %c0_15 = arith.constant 0 : index
    %7 = vector.load %arg7[%c0_14, %c0_15] : memref<1x12xf32, #tpu.memory_space<vmem>>, vector<1x12xf32>
    %c0_16 = arith.constant 0 : index
    %c0_17 = arith.constant 0 : index
    %8 = vector.load %arg8[%c0_16, %c0_17] : memref<1x12xf32, #tpu.memory_space<vmem>>, vector<1x12xf32>
    %9 = vector.extract_strided_slice %2 {offsets = [0, 0], sizes = [32, 32], strides = [1, 1]} : vector<32x96xf32> to vector<32x32xf32>
    %10 = vector.extract_strided_slice %2 {offsets = [0, 32], sizes = [32, 32], strides = [1, 1]} : vector<32x96xf32> to vector<32x32xf32>
    %11 = vector.extract_strided_slice %2 {offsets = [0, 64], sizes = [32, 32], strides = [1, 1]} : vector<32x96xf32> to vector<32x32xf32>
    %12 = vector.extract_strided_slice %5 {offsets = [0, 0], sizes = [32, 4], strides = [1, 1]} : vector<32x12xf32> to vector<32x4xf32>
    %13 = vector.extract_strided_slice %5 {offsets = [0, 4], sizes = [32, 4], strides = [1, 1]} : vector<32x12xf32> to vector<32x4xf32>
    %14 = vector.extract_strided_slice %5 {offsets = [0, 8], sizes = [32, 4], strides = [1, 1]} : vector<32x12xf32> to vector<32x4xf32>
    %15 = vector.extract_strided_slice %6 {offsets = [0, 0], sizes = [4, 4], strides = [1, 1]} : vector<4x12xf32> to vector<4x4xf32>
    %16 = vector.extract_strided_slice %6 {offsets = [0, 4], sizes = [4, 4], strides = [1, 1]} : vector<4x12xf32> to vector<4x4xf32>
    %17 = vector.extract_strided_slice %6 {offsets = [0, 8], sizes = [4, 4], strides = [1, 1]} : vector<4x12xf32> to vector<4x4xf32>
    %18 = vector.extract_strided_slice %3 {offsets = [0, 0], sizes = [1, 32], strides = [1, 1]} : vector<1x96xf32> to vector<1x32xf32>
    %19 = vector.extract_strided_slice %3 {offsets = [0, 32], sizes = [1, 32], strides = [1, 1]} : vector<1x96xf32> to vector<1x32xf32>
    %20 = vector.extract_strided_slice %3 {offsets = [0, 64], sizes = [1, 32], strides = [1, 1]} : vector<1x96xf32> to vector<1x32xf32>
    %21 = vector.extract_strided_slice %4 {offsets = [0, 0], sizes = [1, 32], strides = [1, 1]} : vector<1x96xf32> to vector<1x32xf32>
    %22 = vector.extract_strided_slice %4 {offsets = [0, 32], sizes = [1, 32], strides = [1, 1]} : vector<1x96xf32> to vector<1x32xf32>
    %23 = vector.extract_strided_slice %4 {offsets = [0, 64], sizes = [1, 32], strides = [1, 1]} : vector<1x96xf32> to vector<1x32xf32>
    %24 = vector.extract_strided_slice %7 {offsets = [0, 0], sizes = [1, 4], strides = [1, 1]} : vector<1x12xf32> to vector<1x4xf32>
    %25 = vector.extract_strided_slice %7 {offsets = [0, 4], sizes = [1, 4], strides = [1, 1]} : vector<1x12xf32> to vector<1x4xf32>
    %26 = vector.extract_strided_slice %7 {offsets = [0, 8], sizes = [1, 4], strides = [1, 1]} : vector<1x12xf32> to vector<1x4xf32>
    %27 = vector.extract_strided_slice %8 {offsets = [0, 0], sizes = [1, 4], strides = [1, 1]} : vector<1x12xf32> to vector<1x4xf32>
    %28 = vector.extract_strided_slice %8 {offsets = [0, 4], sizes = [1, 4], strides = [1, 1]} : vector<1x12xf32> to vector<1x4xf32>
    %29 = vector.extract_strided_slice %8 {offsets = [0, 8], sizes = [1, 4], strides = [1, 1]} : vector<1x12xf32> to vector<1x4xf32>
    %30 = vector.shape_cast %0 : vector<2x8x4xf32> to vector<16x4xf32>
    %cst = arith.constant dense<0.000000e+00> : vector<16x96xf32>
    %31 = tpu.matmul %30, %1, %cst {dimension_numbers = #tpu.dot_dimension_numbers<[1], [0], [0], [1], [0, 0, 1, 1], [], []>} : vector<16x4xf32>, vector<4x96xf32>, vector<16x96xf32> -> vector<16x96xf32>
    %32 = vector.shape_cast %31 : vector<16x96xf32> to vector<2x8x96xf32>
    %33 = vector.extract_strided_slice %32 {offsets = [0, 0, 0], sizes = [2, 8, 32], strides = [1, 1, 1]} : vector<2x8x96xf32> to vector<2x8x32xf32>
    %34 = arith.addf %18, %21 : vector<1x32xf32>
    %35 = vector.shape_cast %34 : vector<1x32xf32> to vector<1x1x32xf32>
    %36 = vector.broadcast %35 : vector<1x1x32xf32> to vector<2x8x32xf32>
    %37 = arith.addf %33, %36 : vector<2x8x32xf32>
    %38 = vector.extract_strided_slice %32 {offsets = [0, 0, 32], sizes = [2, 8, 32], strides = [1, 1, 1]} : vector<2x8x96xf32> to vector<2x8x32xf32>
    %39 = arith.addf %19, %22 : vector<1x32xf32>
    %40 = vector.shape_cast %39 : vector<1x32xf32> to vector<1x1x32xf32>
    %41 = vector.broadcast %40 : vector<1x1x32xf32> to vector<2x8x32xf32>
    %42 = arith.addf %38, %41 : vector<2x8x32xf32>
    %43 = vector.extract_strided_slice %32 {offsets = [0, 0, 64], sizes = [2, 8, 32], strides = [1, 1, 1]} : vector<2x8x96xf32> to vector<2x8x32xf32>
    %44 = vector.shape_cast %20 : vector<1x32xf32> to vector<1x1x32xf32>
    %45 = vector.broadcast %44 : vector<1x1x32xf32> to vector<2x8x32xf32>
    %46 = arith.addf %43, %45 : vector<2x8x32xf32>
    %47 = vector.shape_cast %23 : vector<1x32xf32> to vector<1x32xf32>
    %48 = vector.broadcast %47 : vector<1x32xf32> to vector<2x32xf32>
    %49 = arith.addf %24, %27 : vector<1x4xf32>
    %50 = vector.shape_cast %49 : vector<1x4xf32> to vector<1x4xf32>
    %51 = vector.broadcast %50 : vector<1x4xf32> to vector<2x4xf32>
    %52 = arith.addf %25, %28 : vector<1x4xf32>
    %53 = vector.shape_cast %52 : vector<1x4xf32> to vector<1x4xf32>
    %54 = vector.broadcast %53 : vector<1x4xf32> to vector<2x4xf32>
    %55 = vector.shape_cast %26 : vector<1x4xf32> to vector<1x4xf32>
    %56 = vector.broadcast %55 : vector<1x4xf32> to vector<2x4xf32>
    %57 = vector.shape_cast %29 : vector<1x4xf32> to vector<1x4xf32>
    %58 = vector.broadcast %57 : vector<1x4xf32> to vector<2x4xf32>
    %cst_18 = arith.constant 0.000000e+00 : f32
    %59 = vector.broadcast %cst_18 : f32 to vector<2x32xf32>
    %cst_19 = arith.constant 0.000000e+00 : f32
    %60 = vector.broadcast %cst_19 : f32 to vector<2x4xf32>
    %61 = vector.extract_strided_slice %37 {offsets = [0, 0, 0], sizes = [2, 1, 32], strides = [1, 1, 1]} : vector<2x8x32xf32> to vector<2x1x32xf32>
    %62 = vector.shape_cast %61 : vector<2x1x32xf32> to vector<2x32xf32>
    %63 = vector.extract_strided_slice %42 {offsets = [0, 0, 0], sizes = [2, 1, 32], strides = [1, 1, 1]} : vector<2x8x32xf32> to vector<2x1x32xf32>
    %64 = vector.shape_cast %63 : vector<2x1x32xf32> to vector<2x32xf32>
    %65 = vector.extract_strided_slice %46 {offsets = [0, 0, 0], sizes = [2, 1, 32], strides = [1, 1, 1]} : vector<2x8x32xf32> to vector<2x1x32xf32>
    %66 = vector.shape_cast %65 : vector<2x1x32xf32> to vector<2x32xf32>
    %cst_20 = arith.constant dense<0.000000e+00> : vector<2x32xf32>
    %67 = tpu.matmul %59, %9, %cst_20 {dimension_numbers = #tpu.dot_dimension_numbers<[1], [0], [0], [1], [0, 0, 1, 1], [], []>} : vector<2x32xf32>, vector<32x32xf32>, vector<2x32xf32> -> vector<2x32xf32>
    %cst_21 = arith.constant dense<0.000000e+00> : vector<2x32xf32>
    %68 = tpu.matmul %59, %10, %cst_21 {dimension_numbers = #tpu.dot_dimension_numbers<[1], [0], [0], [1], [0, 0, 1, 1], [], []>} : vector<2x32xf32>, vector<32x32xf32>, vector<2x32xf32> -> vector<2x32xf32>
    %cst_22 = arith.constant dense<0.000000e+00> : vector<2x32xf32>
    %69 = tpu.matmul %59, %11, %cst_22 {dimension_numbers = #tpu.dot_dimension_numbers<[1], [0], [0], [1], [0, 0, 1, 1], [], []>} : vector<2x32xf32>, vector<32x32xf32>, vector<2x32xf32> -> vector<2x32xf32>
    %70 = arith.addf %69, %48 : vector<2x32xf32>
    %71 = arith.addf %62, %67 : vector<2x32xf32>
    %72 = arith.negf %71 : vector<2x32xf32>
    %73 = math.exp %72 : vector<2x32xf32>
    %cst_23 = arith.constant 1.000000e+00 : f32
    %74 = vector.broadcast %cst_23 : f32 to vector<2x32xf32>
    %75 = arith.addf %74, %73 : vector<2x32xf32>
    %76 = arith.divf %74, %75 : vector<2x32xf32>
    %77 = arith.addf %64, %68 : vector<2x32xf32>
    %78 = arith.negf %77 : vector<2x32xf32>
    %79 = math.exp %78 : vector<2x32xf32>
    %cst_24 = arith.constant 1.000000e+00 : f32
    %80 = vector.broadcast %cst_24 : f32 to vector<2x32xf32>
    %81 = arith.addf %80, %79 : vector<2x32xf32>
    %82 = arith.divf %80, %81 : vector<2x32xf32>
    %83 = arith.mulf %76, %70 : vector<2x32xf32>
    %84 = arith.addf %66, %83 : vector<2x32xf32>
    %85 = math.tanh %84 : vector<2x32xf32>
    %cst_25 = arith.constant 1.000000e+00 : f32
    %86 = vector.broadcast %cst_25 : f32 to vector<2x32xf32>
    %87 = arith.subf %86, %82 : vector<2x32xf32>
    %88 = arith.mulf %87, %85 : vector<2x32xf32>
    %89 = arith.mulf %82, %59 : vector<2x32xf32>
    %90 = arith.addf %88, %89 : vector<2x32xf32>
    %c0_26 = arith.constant 0 : index
    %c0_27 = arith.constant 0 : index
    %91 = vector.load %arg9[%c0_26, %c0_27] : memref<2x256xf32, #tpu.memory_space<vmem>>, vector<2x32xf32>
    tpu.vector_store %arg9[%c0_26, %c0_27], %90 {strides = array<i32>} : memref<2x256xf32, #tpu.memory_space<vmem>>, vector<2x32xf32>,
    %92 = vector.extract_strided_slice %37 {offsets = [0, 1, 0], sizes = [2, 1, 32], strides = [1, 1, 1]} : vector<2x8x32xf32> to vector<2x1x32xf32>
    %93 = vector.shape_cast %92 : vector<2x1x32xf32> to vector<2x32xf32>
    %94 = vector.extract_strided_slice %42 {offsets = [0, 1, 0], sizes = [2, 1, 32], strides = [1, 1, 1]} : vector<2x8x32xf32> to vector<2x1x32xf32>
    %95 = vector.shape_cast %94 : vector<2x1x32xf32> to vector<2x32xf32>
    %96 = vector.extract_strided_slice %46 {offsets = [0, 1, 0], sizes = [2, 1, 32], strides = [1, 1, 1]} : vector<2x8x32xf32> to vector<2x1x32xf32>
    %97 = vector.shape_cast %96 : vector<2x1x32xf32> to vector<2x32xf32>
    %cst_28 = arith.constant dense<0.000000e+00> : vector<2x32xf32>
    %98 = tpu.matmul %90, %9, %cst_28 {dimension_numbers = #tpu.dot_dimension_numbers<[1], [0], [0], [1], [0, 0, 1, 1], [], []>} : vector<2x32xf32>, vector<32x32xf32>, vector<2x32xf32> -> vector<2x32xf32>
    %cst_29 = arith.constant dense<0.000000e+00> : vector<2x32xf32>
    %99 = tpu.matmul %90, %10, %cst_29 {dimension_numbers = #tpu.dot_dimension_numbers<[1], [0], [0], [1], [0, 0, 1, 1], [], []>} : vector<2x32xf32>, vector<32x32xf32>, vector<2x32xf32> -> vector<2x32xf32>
    %cst_30 = arith.constant dense<0.000000e+00> : vector<2x32xf32>
    %100 = tpu.matmul %90, %11, %cst_30 {dimension_numbers = #tpu.dot_dimension_numbers<[1], [0], [0], [1], [0, 0, 1, 1], [], []>} : vector<2x32xf32>, vector<32x32xf32>, vector<2x32xf32> -> vector<2x32xf32>
    %101 = arith.addf %100, %48 : vector<2x32xf32>
    %102 = arith.addf %93, %98 : vector<2x32xf32>
    %103 = arith.negf %102 : vector<2x32xf32>
    %104 = math.exp %103 : vector<2x32xf32>
    %cst_31 = arith.constant 1.000000e+00 : f32
    %105 = vector.broadcast %cst_31 : f32 to vector<2x32xf32>
    %106 = arith.addf %105, %104 : vector<2x32xf32>
    %107 = arith.divf %105, %106 : vector<2x32xf32>
    %108 = arith.addf %95, %99 : vector<2x32xf32>
    %109 = arith.negf %108 : vector<2x32xf32>
    %110 = math.exp %109 : vector<2x32xf32>
    %cst_32 = arith.constant 1.000000e+00 : f32
    %111 = vector.broadcast %cst_32 : f32 to vector<2x32xf32>
    %112 = arith.addf %111, %110 : vector<2x32xf32>
    %113 = arith.divf %111, %112 : vector<2x32xf32>
    %114 = arith.mulf %107, %101 : vector<2x32xf32>
    %115 = arith.addf %97, %114 : vector<2x32xf32>
    %116 = math.tanh %115 : vector<2x32xf32>
    %cst_33 = arith.constant 1.000000e+00 : f32
    %117 = vector.broadcast %cst_33 : f32 to vector<2x32xf32>
    %118 = arith.subf %117, %113 : vector<2x32xf32>
    %119 = arith.mulf %118, %116 : vector<2x32xf32>
    %120 = arith.mulf %113, %90 : vector<2x32xf32>
    %121 = arith.addf %119, %120 : vector<2x32xf32>
    %c0_34 = arith.constant 0 : index
    %c32 = arith.constant 32 : index
    %122 = vector.load %arg9[%c0_34, %c32] : memref<2x256xf32, #tpu.memory_space<vmem>>, vector<2x32xf32>
    tpu.vector_store %arg9[%c0_34, %c32], %121 {strides = array<i32>} : memref<2x256xf32, #tpu.memory_space<vmem>>, vector<2x32xf32>,
    %cst_35 = arith.constant dense<0.000000e+00> : vector<2x4xf32>
    %123 = tpu.matmul %90, %12, %cst_35 {dimension_numbers = #tpu.dot_dimension_numbers<[1], [0], [0], [1], [0, 0, 1, 1], [], []>} : vector<2x32xf32>, vector<32x4xf32>, vector<2x4xf32> -> vector<2x4xf32>
    %124 = arith.addf %123, %51 : vector<2x4xf32>
    %cst_36 = arith.constant dense<0.000000e+00> : vector<2x4xf32>
    %125 = tpu.matmul %90, %13, %cst_36 {dimension_numbers = #tpu.dot_dimension_numbers<[1], [0], [0], [1], [0, 0, 1, 1], [], []>} : vector<2x32xf32>, vector<32x4xf32>, vector<2x4xf32> -> vector<2x4xf32>
    %126 = arith.addf %125, %54 : vector<2x4xf32>
    %cst_37 = arith.constant dense<0.000000e+00> : vector<2x4xf32>
    %127 = tpu.matmul %90, %14, %cst_37 {dimension_numbers = #tpu.dot_dimension_numbers<[1], [0], [0], [1], [0, 0, 1, 1], [], []>} : vector<2x32xf32>, vector<32x4xf32>, vector<2x4xf32> -> vector<2x4xf32>
    %128 = arith.addf %127, %56 : vector<2x4xf32>
    %cst_38 = arith.constant dense<0.000000e+00> : vector<2x4xf32>
    %129 = tpu.matmul %60, %15, %cst_38 {dimension_numbers = #tpu.dot_dimension_numbers<[1], [0], [0], [1], [0, 0, 1, 1], [], []>} : vector<2x4xf32>, vector<4x4xf32>, vector<2x4xf32> -> vector<2x4xf32>
    %cst_39 = arith.constant dense<0.000000e+00> : vector<2x4xf32>
    %130 = tpu.matmul %60, %16, %cst_39 {dimension_numbers = #tpu.dot_dimension_numbers<[1], [0], [0], [1], [0, 0, 1, 1], [], []>} : vector<2x4xf32>, vector<4x4xf32>, vector<2x4xf32> -> vector<2x4xf32>
    %cst_40 = arith.constant dense<0.000000e+00> : vector<2x4xf32>
    %131 = tpu.matmul %60, %17, %cst_40 {dimension_numbers = #tpu.dot_dimension_numbers<[1], [0], [0], [1], [0, 0, 1, 1], [], []>} : vector<2x4xf32>, vector<4x4xf32>, vector<2x4xf32> -> vector<2x4xf32>
    %132 = arith.addf %131, %58 : vector<2x4xf32>
    %133 = arith.addf %124, %129 : vector<2x4xf32>
    %134 = arith.negf %133 : vector<2x4xf32>
    %135 = math.exp %134 : vector<2x4xf32>
    %cst_41 = arith.constant 1.000000e+00 : f32
    %136 = vector.broadcast %cst_41 : f32 to vector<2x4xf32>
    %137 = arith.addf %136, %135 : vector<2x4xf32>
    %138 = arith.divf %136, %137 : vector<2x4xf32>
    %139 = arith.addf %126, %130 : vector<2x4xf32>
    %140 = arith.negf %139 : vector<2x4xf32>
    %141 = math.exp %140 : vector<2x4xf32>
    %cst_42 = arith.constant 1.000000e+00 : f32
    %142 = vector.broadcast %cst_42 : f32 to vector<2x4xf32>
    %143 = arith.addf %142, %141 : vector<2x4xf32>
    %144 = arith.divf %142, %143 : vector<2x4xf32>
    %145 = arith.mulf %138, %132 : vector<2x4xf32>
    %146 = arith.addf %128, %145 : vector<2x4xf32>
    %147 = math.tanh %146 : vector<2x4xf32>
    %cst_43 = arith.constant 1.000000e+00 : f32
    %148 = vector.broadcast %cst_43 : f32 to vector<2x4xf32>
    %149 = arith.subf %148, %144 : vector<2x4xf32>
    %150 = arith.mulf %149, %147 : vector<2x4xf32>
    %151 = arith.mulf %144, %60 : vector<2x4xf32>
    %152 = arith.addf %150, %151 : vector<2x4xf32>
    %c0_44 = arith.constant 0 : index
    %c0_45 = arith.constant 0 : index
    %153 = vector.load %arg10[%c0_44, %c0_45] : memref<2x32xf32, #tpu.memory_space<vmem>>, vector<2x4xf32>
    tpu.vector_store %arg10[%c0_44, %c0_45], %152 {strides = array<i32>} : memref<2x32xf32, #tpu.memory_space<vmem>>, vector<2x4xf32>,
    %154 = vector.extract_strided_slice %37 {offsets = [0, 2, 0], sizes = [2, 1, 32], strides = [1, 1, 1]} : vector<2x8x32xf32> to vector<2x1x32xf32>
    %155 = vector.shape_cast %154 : vector<2x1x32xf32> to vector<2x32xf32>
    %156 = vector.extract_strided_slice %42 {offsets = [0, 2, 0], sizes = [2, 1, 32], strides = [1, 1, 1]} : vector<2x8x32xf32> to vector<2x1x32xf32>
    %157 = vector.shape_cast %156 : vector<2x1x32xf32> to vector<2x32xf32>
    %158 = vector.extract_strided_slice %46 {offsets = [0, 2, 0], sizes = [2, 1, 32], strides = [1, 1, 1]} : vector<2x8x32xf32> to vector<2x1x32xf32>
    %159 = vector.shape_cast %158 : vector<2x1x32xf32> to vector<2x32xf32>
    %cst_46 = arith.constant dense<0.000000e+00> : vector<2x32xf32>
    %160 = tpu.matmul %121, %9, %cst_46 {dimension_numbers = #tpu.dot_dimension_numbers<[1], [0], [0], [1], [0, 0, 1, 1], [], []>} : vector<2x32xf32>, vector<32x32xf32>, vector<2x32xf32> -> vector<2x32xf32>
    %cst_47 = arith.constant dense<0.000000e+00> : vector<2x32xf32>
    %161 = tpu.matmul %121, %10, %cst_47 {dimension_numbers = #tpu.dot_dimension_numbers<[1], [0], [0], [1], [0, 0, 1, 1], [], []>} : vector<2x32xf32>, vector<32x32xf32>, vector<2x32xf32> -> vector<2x32xf32>
    %cst_48 = arith.constant dense<0.000000e+00> : vector<2x32xf32>
    %162 = tpu.matmul %121, %11, %cst_48 {dimension_numbers = #tpu.dot_dimension_numbers<[1], [0], [0], [1], [0, 0, 1, 1], [], []>} : vector<2x32xf32>, vector<32x32xf32>, vector<2x32xf32> -> vector<2x32xf32>
    %163 = arith.addf %162, %48 : vector<2x32xf32>
    %164 = arith.addf %155, %160 : vector<2x32xf32>
    %165 = arith.negf %164 : vector<2x32xf32>
    %166 = math.exp %165 : vector<2x32xf32>
    %cst_49 = arith.constant 1.000000e+00 : f32
    %167 = vector.broadcast %cst_49 : f32 to vector<2x32xf32>
    %168 = arith.addf %167, %166 : vector<2x32xf32>
    %169 = arith.divf %167, %168 : vector<2x32xf32>
    %170 = arith.addf %157, %161 : vector<2x32xf32>
    %171 = arith.negf %170 : vector<2x32xf32>
    %172 = math.exp %171 : vector<2x32xf32>
    %cst_50 = arith.constant 1.000000e+00 : f32
    %173 = vector.broadcast %cst_50 : f32 to vector<2x32xf32>
    %174 = arith.addf %173, %172 : vector<2x32xf32>
    %175 = arith.divf %173, %174 : vector<2x32xf32>
    %176 = arith.mulf %169, %163 : vector<2x32xf32>
    %177 = arith.addf %159, %176 : vector<2x32xf32>
    %178 = math.tanh %177 : vector<2x32xf32>
    %cst_51 = arith.constant 1.000000e+00 : f32
    %179 = vector.broadcast %cst_51 : f32 to vector<2x32xf32>
    %180 = arith.subf %179, %175 : vector<2x32xf32>
    %181 = arith.mulf %180, %178 : vector<2x32xf32>
    %182 = arith.mulf %175, %121 : vector<2x32xf32>
    %183 = arith.addf %181, %182 : vector<2x32xf32>
    %c0_52 = arith.constant 0 : index
    %c64 = arith.constant 64 : index
    %184 = vector.load %arg9[%c0_52, %c64] : memref<2x256xf32, #tpu.memory_space<vmem>>, vector<2x32xf32>
    tpu.vector_store %arg9[%c0_52, %c64], %183 {strides = array<i32>} : memref<2x256xf32, #tpu.memory_space<vmem>>, vector<2x32xf32>,
    %cst_53 = arith.constant dense<0.000000e+00> : vector<2x4xf32>
    %185 = tpu.matmul %121, %12, %cst_53 {dimension_numbers = #tpu.dot_dimension_numbers<[1], [0], [0], [1], [0, 0, 1, 1], [], []>} : vector<2x32xf32>, vector<32x4xf32>, vector<2x4xf32> -> vector<2x4xf32>
    %186 = arith.addf %185, %51 : vector<2x4xf32>
    %cst_54 = arith.constant dense<0.000000e+00> : vector<2x4xf32>
    %187 = tpu.matmul %121, %13, %cst_54 {dimension_numbers = #tpu.dot_dimension_numbers<[1], [0], [0], [1], [0, 0, 1, 1], [], []>} : vector<2x32xf32>, vector<32x4xf32>, vector<2x4xf32> -> vector<2x4xf32>
    %188 = arith.addf %187, %54 : vector<2x4xf32>
    %cst_55 = arith.constant dense<0.000000e+00> : vector<2x4xf32>
    %189 = tpu.matmul %121, %14, %cst_55 {dimension_numbers = #tpu.dot_dimension_numbers<[1], [0], [0], [1], [0, 0, 1, 1], [], []>} : vector<2x32xf32>, vector<32x4xf32>, vector<2x4xf32> -> vector<2x4xf32>
    %190 = arith.addf %189, %56 : vector<2x4xf32>
    %cst_56 = arith.constant dense<0.000000e+00> : vector<2x4xf32>
    %191 = tpu.matmul %152, %15, %cst_56 {dimension_numbers = #tpu.dot_dimension_numbers<[1], [0], [0], [1], [0, 0, 1, 1], [], []>} : vector<2x4xf32>, vector<4x4xf32>, vector<2x4xf32> -> vector<2x4xf32>
    %cst_57 = arith.constant dense<0.000000e+00> : vector<2x4xf32>
    %192 = tpu.matmul %152, %16, %cst_57 {dimension_numbers = #tpu.dot_dimension_numbers<[1], [0], [0], [1], [0, 0, 1, 1], [], []>} : vector<2x4xf32>, vector<4x4xf32>, vector<2x4xf32> -> vector<2x4xf32>
    %cst_58 = arith.constant dense<0.000000e+00> : vector<2x4xf32>
    %193 = tpu.matmul %152, %17, %cst_58 {dimension_numbers = #tpu.dot_dimension_numbers<[1], [0], [0], [1], [0, 0, 1, 1], [], []>} : vector<2x4xf32>, vector<4x4xf32>, vector<2x4xf32> -> vector<2x4xf32>
    %194 = arith.addf %193, %58 : vector<2x4xf32>
    %195 = arith.addf %186, %191 : vector<2x4xf32>
    %196 = arith.negf %195 : vector<2x4xf32>
    %197 = math.exp %196 : vector<2x4xf32>
    %cst_59 = arith.constant 1.000000e+00 : f32
    %198 = vector.broadcast %cst_59 : f32 to vector<2x4xf32>
    %199 = arith.addf %198, %197 : vector<2x4xf32>
    %200 = arith.divf %198, %199 : vector<2x4xf32>
    %201 = arith.addf %188, %192 : vector<2x4xf32>
    %202 = arith.negf %201 : vector<2x4xf32>
    %203 = math.exp %202 : vector<2x4xf32>
    %cst_60 = arith.constant 1.000000e+00 : f32
    %204 = vector.broadcast %cst_60 : f32 to vector<2x4xf32>
    %205 = arith.addf %204, %203 : vector<2x4xf32>
    %206 = arith.divf %204, %205 : vector<2x4xf32>
    %207 = arith.mulf %200, %194 : vector<2x4xf32>
    %208 = arith.addf %190, %207 : vector<2x4xf32>
    %209 = math.tanh %208 : vector<2x4xf32>
    %cst_61 = arith.constant 1.000000e+00 : f32
    %210 = vector.broadcast %cst_61 : f32 to vector<2x4xf32>
    %211 = arith.subf %210, %206 : vector<2x4xf32>
    %212 = arith.mulf %211, %209 : vector<2x4xf32>
    %213 = arith.mulf %206, %152 : vector<2x4xf32>
    %214 = arith.addf %212, %213 : vector<2x4xf32>
    %c0_62 = arith.constant 0 : index
    %c4 = arith.constant 4 : index
    %215 = vector.load %arg10[%c0_62, %c4] : memref<2x32xf32, #tpu.memory_space<vmem>>, vector<2x4xf32>
    tpu.vector_store %arg10[%c0_62, %c4], %214 {strides = array<i32>} : memref<2x32xf32, #tpu.memory_space<vmem>>, vector<2x4xf32>,
    %216 = vector.extract_strided_slice %37 {offsets = [0, 3, 0], sizes = [2, 1, 32], strides = [1, 1, 1]} : vector<2x8x32xf32> to vector<2x1x32xf32>
    %217 = vector.shape_cast %216 : vector<2x1x32xf32> to vector<2x32xf32>
    %218 = vector.extract_strided_slice %42 {offsets = [0, 3, 0], sizes = [2, 1, 32], strides = [1, 1, 1]} : vector<2x8x32xf32> to vector<2x1x32xf32>
    %219 = vector.shape_cast %218 : vector<2x1x32xf32> to vector<2x32xf32>
    %220 = vector.extract_strided_slice %46 {offsets = [0, 3, 0], sizes = [2, 1, 32], strides = [1, 1, 1]} : vector<2x8x32xf32> to vector<2x1x32xf32>
    %221 = vector.shape_cast %220 : vector<2x1x32xf32> to vector<2x32xf32>
    %cst_63 = arith.constant dense<0.000000e+00> : vector<2x32xf32>
    %222 = tpu.matmul %183, %9, %cst_63 {dimension_numbers = #tpu.dot_dimension_numbers<[1], [0], [0], [1], [0, 0, 1, 1], [], []>} : vector<2x32xf32>, vector<32x32xf32>, vector<2x32xf32> -> vector<2x32xf32>
    %cst_64 = arith.constant dense<0.000000e+00> : vector<2x32xf32>
    %223 = tpu.matmul %183, %10, %cst_64 {dimension_numbers = #tpu.dot_dimension_numbers<[1], [0], [0], [1], [0, 0, 1, 1], [], []>} : vector<2x32xf32>, vector<32x32xf32>, vector<2x32xf32> -> vector<2x32xf32>
    %cst_65 = arith.constant dense<0.000000e+00> : vector<2x32xf32>
    %224 = tpu.matmul %183, %11, %cst_65 {dimension_numbers = #tpu.dot_dimension_numbers<[1], [0], [0], [1], [0, 0, 1, 1], [], []>} : vector<2x32xf32>, vector<32x32xf32>, vector<2x32xf32> -> vector<2x32xf32>
    %225 = arith.addf %224, %48 : vector<2x32xf32>
    %226 = arith.addf %217, %222 : vector<2x32xf32>
    %227 = arith.negf %226 : vector<2x32xf32>
    %228 = math.exp %227 : vector<2x32xf32>
    %cst_66 = arith.constant 1.000000e+00 : f32
    %229 = vector.broadcast %cst_66 : f32 to vector<2x32xf32>
    %230 = arith.addf %229, %228 : vector<2x32xf32>
    %231 = arith.divf %229, %230 : vector<2x32xf32>
    %232 = arith.addf %219, %223 : vector<2x32xf32>
    %233 = arith.negf %232 : vector<2x32xf32>
    %234 = math.exp %233 : vector<2x32xf32>
    %cst_67 = arith.constant 1.000000e+00 : f32
    %235 = vector.broadcast %cst_67 : f32 to vector<2x32xf32>
    %236 = arith.addf %235, %234 : vector<2x32xf32>
    %237 = arith.divf %235, %236 : vector<2x32xf32>
    %238 = arith.mulf %231, %225 : vector<2x32xf32>
    %239 = arith.addf %221, %238 : vector<2x32xf32>
    %240 = math.tanh %239 : vector<2x32xf32>
    %cst_68 = arith.constant 1.000000e+00 : f32
    %241 = vector.broadcast %cst_68 : f32 to vector<2x32xf32>
    %242 = arith.subf %241, %237 : vector<2x32xf32>
    %243 = arith.mulf %242, %240 : vector<2x32xf32>
    %244 = arith.mulf %237, %183 : vector<2x32xf32>
    %245 = arith.addf %243, %244 : vector<2x32xf32>
    %c0_69 = arith.constant 0 : index
    %c96 = arith.constant 96 : index
    %246 = vector.load %arg9[%c0_69, %c96] : memref<2x256xf32, #tpu.memory_space<vmem>>, vector<2x32xf32>
    tpu.vector_store %arg9[%c0_69, %c96], %245 {strides = array<i32>} : memref<2x256xf32, #tpu.memory_space<vmem>>, vector<2x32xf32>,
    %cst_70 = arith.constant dense<0.000000e+00> : vector<2x4xf32>
    %247 = tpu.matmul %183, %12, %cst_70 {dimension_numbers = #tpu.dot_dimension_numbers<[1], [0], [0], [1], [0, 0, 1, 1], [], []>} : vector<2x32xf32>, vector<32x4xf32>, vector<2x4xf32> -> vector<2x4xf32>
    %248 = arith.addf %247, %51 : vector<2x4xf32>
    %cst_71 = arith.constant dense<0.000000e+00> : vector<2x4xf32>
    %249 = tpu.matmul %183, %13, %cst_71 {dimension_numbers = #tpu.dot_dimension_numbers<[1], [0], [0], [1], [0, 0, 1, 1], [], []>} : vector<2x32xf32>, vector<32x4xf32>, vector<2x4xf32> -> vector<2x4xf32>
    %250 = arith.addf %249, %54 : vector<2x4xf32>
    %cst_72 = arith.constant dense<0.000000e+00> : vector<2x4xf32>
    %251 = tpu.matmul %183, %14, %cst_72 {dimension_numbers = #tpu.dot_dimension_numbers<[1], [0], [0], [1], [0, 0, 1, 1], [], []>} : vector<2x32xf32>, vector<32x4xf32>, vector<2x4xf32> -> vector<2x4xf32>
    %252 = arith.addf %251, %56 : vector<2x4xf32>
    %cst_73 = arith.constant dense<0.000000e+00> : vector<2x4xf32>
    %253 = tpu.matmul %214, %15, %cst_73 {dimension_numbers = #tpu.dot_dimension_numbers<[1], [0], [0], [1], [0, 0, 1, 1], [], []>} : vector<2x4xf32>, vector<4x4xf32>, vector<2x4xf32> -> vector<2x4xf32>
    %cst_74 = arith.constant dense<0.000000e+00> : vector<2x4xf32>
    %254 = tpu.matmul %214, %16, %cst_74 {dimension_numbers = #tpu.dot_dimension_numbers<[1], [0], [0], [1], [0, 0, 1, 1], [], []>} : vector<2x4xf32>, vector<4x4xf32>, vector<2x4xf32> -> vector<2x4xf32>
    %cst_75 = arith.constant dense<0.000000e+00> : vector<2x4xf32>
    %255 = tpu.matmul %214, %17, %cst_75 {dimension_numbers = #tpu.dot_dimension_numbers<[1], [0], [0], [1], [0, 0, 1, 1], [], []>} : vector<2x4xf32>, vector<4x4xf32>, vector<2x4xf32> -> vector<2x4xf32>
    %256 = arith.addf %255, %58 : vector<2x4xf32>
    %257 = arith.addf %248, %253 : vector<2x4xf32>
    %258 = arith.negf %257 : vector<2x4xf32>
    %259 = math.exp %258 : vector<2x4xf32>
    %cst_76 = arith.constant 1.000000e+00 : f32
    %260 = vector.broadcast %cst_76 : f32 to vector<2x4xf32>
    %261 = arith.addf %260, %259 : vector<2x4xf32>
    %262 = arith.divf %260, %261 : vector<2x4xf32>
    %263 = arith.addf %250, %254 : vector<2x4xf32>
    %264 = arith.negf %263 : vector<2x4xf32>
    %265 = math.exp %264 : vector<2x4xf32>
    %cst_77 = arith.constant 1.000000e+00 : f32
    %266 = vector.broadcast %cst_77 : f32 to vector<2x4xf32>
    %267 = arith.addf %266, %265 : vector<2x4xf32>
    %268 = arith.divf %266, %267 : vector<2x4xf32>
    %269 = arith.mulf %262, %256 : vector<2x4xf32>
    %270 = arith.addf %252, %269 : vector<2x4xf32>
    %271 = math.tanh %270 : vector<2x4xf32>
    %cst_78 = arith.constant 1.000000e+00 : f32
    %272 = vector.broadcast %cst_78 : f32 to vector<2x4xf32>
    %273 = arith.subf %272, %268 : vector<2x4xf32>
    %274 = arith.mulf %273, %271 : vector<2x4xf32>
    %275 = arith.mulf %268, %214 : vector<2x4xf32>
    %276 = arith.addf %274, %275 : vector<2x4xf32>
    %c0_79 = arith.constant 0 : index
    %c8 = arith.constant 8 : index
    %277 = vector.load %arg10[%c0_79, %c8] : memref<2x32xf32, #tpu.memory_space<vmem>>, vector<2x4xf32>
    tpu.vector_store %arg10[%c0_79, %c8], %276 {strides = array<i32>} : memref<2x32xf32, #tpu.memory_space<vmem>>, vector<2x4xf32>,
    %278 = vector.extract_strided_slice %37 {offsets = [0, 4, 0], sizes = [2, 1, 32], strides = [1, 1, 1]} : vector<2x8x32xf32> to vector<2x1x32xf32>
    %279 = vector.shape_cast %278 : vector<2x1x32xf32> to vector<2x32xf32>
    %280 = vector.extract_strided_slice %42 {offsets = [0, 4, 0], sizes = [2, 1, 32], strides = [1, 1, 1]} : vector<2x8x32xf32> to vector<2x1x32xf32>
    %281 = vector.shape_cast %280 : vector<2x1x32xf32> to vector<2x32xf32>
    %282 = vector.extract_strided_slice %46 {offsets = [0, 4, 0], sizes = [2, 1, 32], strides = [1, 1, 1]} : vector<2x8x32xf32> to vector<2x1x32xf32>
    %283 = vector.shape_cast %282 : vector<2x1x32xf32> to vector<2x32xf32>
    %cst_80 = arith.constant dense<0.000000e+00> : vector<2x32xf32>
    %284 = tpu.matmul %245, %9, %cst_80 {dimension_numbers = #tpu.dot_dimension_numbers<[1], [0], [0], [1], [0, 0, 1, 1], [], []>} : vector<2x32xf32>, vector<32x32xf32>, vector<2x32xf32> -> vector<2x32xf32>
    %cst_81 = arith.constant dense<0.000000e+00> : vector<2x32xf32>
    %285 = tpu.matmul %245, %10, %cst_81 {dimension_numbers = #tpu.dot_dimension_numbers<[1], [0], [0], [1], [0, 0, 1, 1], [], []>} : vector<2x32xf32>, vector<32x32xf32>, vector<2x32xf32> -> vector<2x32xf32>
    %cst_82 = arith.constant dense<0.000000e+00> : vector<2x32xf32>
    %286 = tpu.matmul %245, %11, %cst_82 {dimension_numbers = #tpu.dot_dimension_numbers<[1], [0], [0], [1], [0, 0, 1, 1], [], []>} : vector<2x32xf32>, vector<32x32xf32>, vector<2x32xf32> -> vector<2x32xf32>
    %287 = arith.addf %286, %48 : vector<2x32xf32>
    %288 = arith.addf %279, %284 : vector<2x32xf32>
    %289 = arith.negf %288 : vector<2x32xf32>
    %290 = math.exp %289 : vector<2x32xf32>
    %cst_83 = arith.constant 1.000000e+00 : f32
    %291 = vector.broadcast %cst_83 : f32 to vector<2x32xf32>
    %292 = arith.addf %291, %290 : vector<2x32xf32>
    %293 = arith.divf %291, %292 : vector<2x32xf32>
    %294 = arith.addf %281, %285 : vector<2x32xf32>
    %295 = arith.negf %294 : vector<2x32xf32>
    %296 = math.exp %295 : vector<2x32xf32>
    %cst_84 = arith.constant 1.000000e+00 : f32
    %297 = vector.broadcast %cst_84 : f32 to vector<2x32xf32>
    %298 = arith.addf %297, %296 : vector<2x32xf32>
    %299 = arith.divf %297, %298 : vector<2x32xf32>
    %300 = arith.mulf %293, %287 : vector<2x32xf32>
    %301 = arith.addf %283, %300 : vector<2x32xf32>
    %302 = math.tanh %301 : vector<2x32xf32>
    %cst_85 = arith.constant 1.000000e+00 : f32
    %303 = vector.broadcast %cst_85 : f32 to vector<2x32xf32>
    %304 = arith.subf %303, %299 : vector<2x32xf32>
    %305 = arith.mulf %304, %302 : vector<2x32xf32>
    %306 = arith.mulf %299, %245 : vector<2x32xf32>
    %307 = arith.addf %305, %306 : vector<2x32xf32>
    %c0_86 = arith.constant 0 : index
    %c128 = arith.constant 128 : index
    %308 = vector.load %arg9[%c0_86, %c128] : memref<2x256xf32, #tpu.memory_space<vmem>>, vector<2x32xf32>
    tpu.vector_store %arg9[%c0_86, %c128], %307 {strides = array<i32>} : memref<2x256xf32, #tpu.memory_space<vmem>>, vector<2x32xf32>,
    %cst_87 = arith.constant dense<0.000000e+00> : vector<2x4xf32>
    %309 = tpu.matmul %245, %12, %cst_87 {dimension_numbers = #tpu.dot_dimension_numbers<[1], [0], [0], [1], [0, 0, 1, 1], [], []>} : vector<2x32xf32>, vector<32x4xf32>, vector<2x4xf32> -> vector<2x4xf32>
    %310 = arith.addf %309, %51 : vector<2x4xf32>
    %cst_88 = arith.constant dense<0.000000e+00> : vector<2x4xf32>
    %311 = tpu.matmul %245, %13, %cst_88 {dimension_numbers = #tpu.dot_dimension_numbers<[1], [0], [0], [1], [0, 0, 1, 1], [], []>} : vector<2x32xf32>, vector<32x4xf32>, vector<2x4xf32> -> vector<2x4xf32>
    %312 = arith.addf %311, %54 : vector<2x4xf32>
    %cst_89 = arith.constant dense<0.000000e+00> : vector<2x4xf32>
    %313 = tpu.matmul %245, %14, %cst_89 {dimension_numbers = #tpu.dot_dimension_numbers<[1], [0], [0], [1], [0, 0, 1, 1], [], []>} : vector<2x32xf32>, vector<32x4xf32>, vector<2x4xf32> -> vector<2x4xf32>
    %314 = arith.addf %313, %56 : vector<2x4xf32>
    %cst_90 = arith.constant dense<0.000000e+00> : vector<2x4xf32>
    %315 = tpu.matmul %276, %15, %cst_90 {dimension_numbers = #tpu.dot_dimension_numbers<[1], [0], [0], [1], [0, 0, 1, 1], [], []>} : vector<2x4xf32>, vector<4x4xf32>, vector<2x4xf32> -> vector<2x4xf32>
    %cst_91 = arith.constant dense<0.000000e+00> : vector<2x4xf32>
    %316 = tpu.matmul %276, %16, %cst_91 {dimension_numbers = #tpu.dot_dimension_numbers<[1], [0], [0], [1], [0, 0, 1, 1], [], []>} : vector<2x4xf32>, vector<4x4xf32>, vector<2x4xf32> -> vector<2x4xf32>
    %cst_92 = arith.constant dense<0.000000e+00> : vector<2x4xf32>
    %317 = tpu.matmul %276, %17, %cst_92 {dimension_numbers = #tpu.dot_dimension_numbers<[1], [0], [0], [1], [0, 0, 1, 1], [], []>} : vector<2x4xf32>, vector<4x4xf32>, vector<2x4xf32> -> vector<2x4xf32>
    %318 = arith.addf %317, %58 : vector<2x4xf32>
    %319 = arith.addf %310, %315 : vector<2x4xf32>
    %320 = arith.negf %319 : vector<2x4xf32>
    %321 = math.exp %320 : vector<2x4xf32>
    %cst_93 = arith.constant 1.000000e+00 : f32
    %322 = vector.broadcast %cst_93 : f32 to vector<2x4xf32>
    %323 = arith.addf %322, %321 : vector<2x4xf32>
    %324 = arith.divf %322, %323 : vector<2x4xf32>
    %325 = arith.addf %312, %316 : vector<2x4xf32>
    %326 = arith.negf %325 : vector<2x4xf32>
    %327 = math.exp %326 : vector<2x4xf32>
    %cst_94 = arith.constant 1.000000e+00 : f32
    %328 = vector.broadcast %cst_94 : f32 to vector<2x4xf32>
    %329 = arith.addf %328, %327 : vector<2x4xf32>
    %330 = arith.divf %328, %329 : vector<2x4xf32>
    %331 = arith.mulf %324, %318 : vector<2x4xf32>
    %332 = arith.addf %314, %331 : vector<2x4xf32>
    %333 = math.tanh %332 : vector<2x4xf32>
    %cst_95 = arith.constant 1.000000e+00 : f32
    %334 = vector.broadcast %cst_95 : f32 to vector<2x4xf32>
    %335 = arith.subf %334, %330 : vector<2x4xf32>
    %336 = arith.mulf %335, %333 : vector<2x4xf32>
    %337 = arith.mulf %330, %276 : vector<2x4xf32>
    %338 = arith.addf %336, %337 : vector<2x4xf32>
    %c0_96 = arith.constant 0 : index
    %c12 = arith.constant 12 : index
    %339 = vector.load %arg10[%c0_96, %c12] : memref<2x32xf32, #tpu.memory_space<vmem>>, vector<2x4xf32>
    tpu.vector_store %arg10[%c0_96, %c12], %338 {strides = array<i32>} : memref<2x32xf32, #tpu.memory_space<vmem>>, vector<2x4xf32>,
    %340 = vector.extract_strided_slice %37 {offsets = [0, 5, 0], sizes = [2, 1, 32], strides = [1, 1, 1]} : vector<2x8x32xf32> to vector<2x1x32xf32>
    %341 = vector.shape_cast %340 : vector<2x1x32xf32> to vector<2x32xf32>
    %342 = vector.extract_strided_slice %42 {offsets = [0, 5, 0], sizes = [2, 1, 32], strides = [1, 1, 1]} : vector<2x8x32xf32> to vector<2x1x32xf32>
    %343 = vector.shape_cast %342 : vector<2x1x32xf32> to vector<2x32xf32>
    %344 = vector.extract_strided_slice %46 {offsets = [0, 5, 0], sizes = [2, 1, 32], strides = [1, 1, 1]} : vector<2x8x32xf32> to vector<2x1x32xf32>
    %345 = vector.shape_cast %344 : vector<2x1x32xf32> to vector<2x32xf32>
    %cst_97 = arith.constant dense<0.000000e+00> : vector<2x32xf32>
    %346 = tpu.matmul %307, %9, %cst_97 {dimension_numbers = #tpu.dot_dimension_numbers<[1], [0], [0], [1], [0, 0, 1, 1], [], []>} : vector<2x32xf32>, vector<32x32xf32>, vector<2x32xf32> -> vector<2x32xf32>
    %cst_98 = arith.constant dense<0.000000e+00> : vector<2x32xf32>
    %347 = tpu.matmul %307, %10, %cst_98 {dimension_numbers = #tpu.dot_dimension_numbers<[1], [0], [0], [1], [0, 0, 1, 1], [], []>} : vector<2x32xf32>, vector<32x32xf32>, vector<2x32xf32> -> vector<2x32xf32>
    %cst_99 = arith.constant dense<0.000000e+00> : vector<2x32xf32>
    %348 = tpu.matmul %307, %11, %cst_99 {dimension_numbers = #tpu.dot_dimension_numbers<[1], [0], [0], [1], [0, 0, 1, 1], [], []>} : vector<2x32xf32>, vector<32x32xf32>, vector<2x32xf32> -> vector<2x32xf32>
    %349 = arith.addf %348, %48 : vector<2x32xf32>
    %350 = arith.addf %341, %346 : vector<2x32xf32>
    %351 = arith.negf %350 : vector<2x32xf32>
    %352 = math.exp %351 : vector<2x32xf32>
    %cst_100 = arith.constant 1.000000e+00 : f32
    %353 = vector.broadcast %cst_100 : f32 to vector<2x32xf32>
    %354 = arith.addf %353, %352 : vector<2x32xf32>
    %355 = arith.divf %353, %354 : vector<2x32xf32>
    %356 = arith.addf %343, %347 : vector<2x32xf32>
    %357 = arith.negf %356 : vector<2x32xf32>
    %358 = math.exp %357 : vector<2x32xf32>
    %cst_101 = arith.constant 1.000000e+00 : f32
    %359 = vector.broadcast %cst_101 : f32 to vector<2x32xf32>
    %360 = arith.addf %359, %358 : vector<2x32xf32>
    %361 = arith.divf %359, %360 : vector<2x32xf32>
    %362 = arith.mulf %355, %349 : vector<2x32xf32>
    %363 = arith.addf %345, %362 : vector<2x32xf32>
    %364 = math.tanh %363 : vector<2x32xf32>
    %cst_102 = arith.constant 1.000000e+00 : f32
    %365 = vector.broadcast %cst_102 : f32 to vector<2x32xf32>
    %366 = arith.subf %365, %361 : vector<2x32xf32>
    %367 = arith.mulf %366, %364 : vector<2x32xf32>
    %368 = arith.mulf %361, %307 : vector<2x32xf32>
    %369 = arith.addf %367, %368 : vector<2x32xf32>
    %c0_103 = arith.constant 0 : index
    %c160 = arith.constant 160 : index
    %370 = vector.load %arg9[%c0_103, %c160] : memref<2x256xf32, #tpu.memory_space<vmem>>, vector<2x32xf32>
    tpu.vector_store %arg9[%c0_103, %c160], %369 {strides = array<i32>} : memref<2x256xf32, #tpu.memory_space<vmem>>, vector<2x32xf32>,
    %cst_104 = arith.constant dense<0.000000e+00> : vector<2x4xf32>
    %371 = tpu.matmul %307, %12, %cst_104 {dimension_numbers = #tpu.dot_dimension_numbers<[1], [0], [0], [1], [0, 0, 1, 1], [], []>} : vector<2x32xf32>, vector<32x4xf32>, vector<2x4xf32> -> vector<2x4xf32>
    %372 = arith.addf %371, %51 : vector<2x4xf32>
    %cst_105 = arith.constant dense<0.000000e+00> : vector<2x4xf32>
    %373 = tpu.matmul %307, %13, %cst_105 {dimension_numbers = #tpu.dot_dimension_numbers<[1], [0], [0], [1], [0, 0, 1, 1], [], []>} : vector<2x32xf32>, vector<32x4xf32>, vector<2x4xf32> -> vector<2x4xf32>
    %374 = arith.addf %373, %54 : vector<2x4xf32>
    %cst_106 = arith.constant dense<0.000000e+00> : vector<2x4xf32>
    %375 = tpu.matmul %307, %14, %cst_106 {dimension_numbers = #tpu.dot_dimension_numbers<[1], [0], [0], [1], [0, 0, 1, 1], [], []>} : vector<2x32xf32>, vector<32x4xf32>, vector<2x4xf32> -> vector<2x4xf32>
    %376 = arith.addf %375, %56 : vector<2x4xf32>
    %cst_107 = arith.constant dense<0.000000e+00> : vector<2x4xf32>
    %377 = tpu.matmul %338, %15, %cst_107 {dimension_numbers = #tpu.dot_dimension_numbers<[1], [0], [0], [1], [0, 0, 1, 1], [], []>} : vector<2x4xf32>, vector<4x4xf32>, vector<2x4xf32> -> vector<2x4xf32>
    %cst_108 = arith.constant dense<0.000000e+00> : vector<2x4xf32>
    %378 = tpu.matmul %338, %16, %cst_108 {dimension_numbers = #tpu.dot_dimension_numbers<[1], [0], [0], [1], [0, 0, 1, 1], [], []>} : vector<2x4xf32>, vector<4x4xf32>, vector<2x4xf32> -> vector<2x4xf32>
    %cst_109 = arith.constant dense<0.000000e+00> : vector<2x4xf32>
    %379 = tpu.matmul %338, %17, %cst_109 {dimension_numbers = #tpu.dot_dimension_numbers<[1], [0], [0], [1], [0, 0, 1, 1], [], []>} : vector<2x4xf32>, vector<4x4xf32>, vector<2x4xf32> -> vector<2x4xf32>
    %380 = arith.addf %379, %58 : vector<2x4xf32>
    %381 = arith.addf %372, %377 : vector<2x4xf32>
    %382 = arith.negf %381 : vector<2x4xf32>
    %383 = math.exp %382 : vector<2x4xf32>
    %cst_110 = arith.constant 1.000000e+00 : f32
    %384 = vector.broadcast %cst_110 : f32 to vector<2x4xf32>
    %385 = arith.addf %384, %383 : vector<2x4xf32>
    %386 = arith.divf %384, %385 : vector<2x4xf32>
    %387 = arith.addf %374, %378 : vector<2x4xf32>
    %388 = arith.negf %387 : vector<2x4xf32>
    %389 = math.exp %388 : vector<2x4xf32>
    %cst_111 = arith.constant 1.000000e+00 : f32
    %390 = vector.broadcast %cst_111 : f32 to vector<2x4xf32>
    %391 = arith.addf %390, %389 : vector<2x4xf32>
    %392 = arith.divf %390, %391 : vector<2x4xf32>
    %393 = arith.mulf %386, %380 : vector<2x4xf32>
    %394 = arith.addf %376, %393 : vector<2x4xf32>
    %395 = math.tanh %394 : vector<2x4xf32>
    %cst_112 = arith.constant 1.000000e+00 : f32
    %396 = vector.broadcast %cst_112 : f32 to vector<2x4xf32>
    %397 = arith.subf %396, %392 : vector<2x4xf32>
    %398 = arith.mulf %397, %395 : vector<2x4xf32>
    %399 = arith.mulf %392, %338 : vector<2x4xf32>
    %400 = arith.addf %398, %399 : vector<2x4xf32>
    %c0_113 = arith.constant 0 : index
    %c16 = arith.constant 16 : index
    %401 = vector.load %arg10[%c0_113, %c16] : memref<2x32xf32, #tpu.memory_space<vmem>>, vector<2x4xf32>
    tpu.vector_store %arg10[%c0_113, %c16], %400 {strides = array<i32>} : memref<2x32xf32, #tpu.memory_space<vmem>>, vector<2x4xf32>,
    %402 = vector.extract_strided_slice %37 {offsets = [0, 6, 0], sizes = [2, 1, 32], strides = [1, 1, 1]} : vector<2x8x32xf32> to vector<2x1x32xf32>
    %403 = vector.shape_cast %402 : vector<2x1x32xf32> to vector<2x32xf32>
    %404 = vector.extract_strided_slice %42 {offsets = [0, 6, 0], sizes = [2, 1, 32], strides = [1, 1, 1]} : vector<2x8x32xf32> to vector<2x1x32xf32>
    %405 = vector.shape_cast %404 : vector<2x1x32xf32> to vector<2x32xf32>
    %406 = vector.extract_strided_slice %46 {offsets = [0, 6, 0], sizes = [2, 1, 32], strides = [1, 1, 1]} : vector<2x8x32xf32> to vector<2x1x32xf32>
    %407 = vector.shape_cast %406 : vector<2x1x32xf32> to vector<2x32xf32>
    %cst_114 = arith.constant dense<0.000000e+00> : vector<2x32xf32>
    %408 = tpu.matmul %369, %9, %cst_114 {dimension_numbers = #tpu.dot_dimension_numbers<[1], [0], [0], [1], [0, 0, 1, 1], [], []>} : vector<2x32xf32>, vector<32x32xf32>, vector<2x32xf32> -> vector<2x32xf32>
    %cst_115 = arith.constant dense<0.000000e+00> : vector<2x32xf32>
    %409 = tpu.matmul %369, %10, %cst_115 {dimension_numbers = #tpu.dot_dimension_numbers<[1], [0], [0], [1], [0, 0, 1, 1], [], []>} : vector<2x32xf32>, vector<32x32xf32>, vector<2x32xf32> -> vector<2x32xf32>
    %cst_116 = arith.constant dense<0.000000e+00> : vector<2x32xf32>
    %410 = tpu.matmul %369, %11, %cst_116 {dimension_numbers = #tpu.dot_dimension_numbers<[1], [0], [0], [1], [0, 0, 1, 1], [], []>} : vector<2x32xf32>, vector<32x32xf32>, vector<2x32xf32> -> vector<2x32xf32>
    %411 = arith.addf %410, %48 : vector<2x32xf32>
    %412 = arith.addf %403, %408 : vector<2x32xf32>
    %413 = arith.negf %412 : vector<2x32xf32>
    %414 = math.exp %413 : vector<2x32xf32>
    %cst_117 = arith.constant 1.000000e+00 : f32
    %415 = vector.broadcast %cst_117 : f32 to vector<2x32xf32>
    %416 = arith.addf %415, %414 : vector<2x32xf32>
    %417 = arith.divf %415, %416 : vector<2x32xf32>
    %418 = arith.addf %405, %409 : vector<2x32xf32>
    %419 = arith.negf %418 : vector<2x32xf32>
    %420 = math.exp %419 : vector<2x32xf32>
    %cst_118 = arith.constant 1.000000e+00 : f32
    %421 = vector.broadcast %cst_118 : f32 to vector<2x32xf32>
    %422 = arith.addf %421, %420 : vector<2x32xf32>
    %423 = arith.divf %421, %422 : vector<2x32xf32>
    %424 = arith.mulf %417, %411 : vector<2x32xf32>
    %425 = arith.addf %407, %424 : vector<2x32xf32>
    %426 = math.tanh %425 : vector<2x32xf32>
    %cst_119 = arith.constant 1.000000e+00 : f32
    %427 = vector.broadcast %cst_119 : f32 to vector<2x32xf32>
    %428 = arith.subf %427, %423 : vector<2x32xf32>
    %429 = arith.mulf %428, %426 : vector<2x32xf32>
    %430 = arith.mulf %423, %369 : vector<2x32xf32>
    %431 = arith.addf %429, %430 : vector<2x32xf32>
    %c0_120 = arith.constant 0 : index
    %c192 = arith.constant 192 : index
    %432 = vector.load %arg9[%c0_120, %c192] : memref<2x256xf32, #tpu.memory_space<vmem>>, vector<2x32xf32>
    tpu.vector_store %arg9[%c0_120, %c192], %431 {strides = array<i32>} : memref<2x256xf32, #tpu.memory_space<vmem>>, vector<2x32xf32>,
    %cst_121 = arith.constant dense<0.000000e+00> : vector<2x4xf32>
    %433 = tpu.matmul %369, %12, %cst_121 {dimension_numbers = #tpu.dot_dimension_numbers<[1], [0], [0], [1], [0, 0, 1, 1], [], []>} : vector<2x32xf32>, vector<32x4xf32>, vector<2x4xf32> -> vector<2x4xf32>
    %434 = arith.addf %433, %51 : vector<2x4xf32>
    %cst_122 = arith.constant dense<0.000000e+00> : vector<2x4xf32>
    %435 = tpu.matmul %369, %13, %cst_122 {dimension_numbers = #tpu.dot_dimension_numbers<[1], [0], [0], [1], [0, 0, 1, 1], [], []>} : vector<2x32xf32>, vector<32x4xf32>, vector<2x4xf32> -> vector<2x4xf32>
    %436 = arith.addf %435, %54 : vector<2x4xf32>
    %cst_123 = arith.constant dense<0.000000e+00> : vector<2x4xf32>
    %437 = tpu.matmul %369, %14, %cst_123 {dimension_numbers = #tpu.dot_dimension_numbers<[1], [0], [0], [1], [0, 0, 1, 1], [], []>} : vector<2x32xf32>, vector<32x4xf32>, vector<2x4xf32> -> vector<2x4xf32>
    %438 = arith.addf %437, %56 : vector<2x4xf32>
    %cst_124 = arith.constant dense<0.000000e+00> : vector<2x4xf32>
    %439 = tpu.matmul %400, %15, %cst_124 {dimension_numbers = #tpu.dot_dimension_numbers<[1], [0], [0], [1], [0, 0, 1, 1], [], []>} : vector<2x4xf32>, vector<4x4xf32>, vector<2x4xf32> -> vector<2x4xf32>
    %cst_125 = arith.constant dense<0.000000e+00> : vector<2x4xf32>
    %440 = tpu.matmul %400, %16, %cst_125 {dimension_numbers = #tpu.dot_dimension_numbers<[1], [0], [0], [1], [0, 0, 1, 1], [], []>} : vector<2x4xf32>, vector<4x4xf32>, vector<2x4xf32> -> vector<2x4xf32>
    %cst_126 = arith.constant dense<0.000000e+00> : vector<2x4xf32>
    %441 = tpu.matmul %400, %17, %cst_126 {dimension_numbers = #tpu.dot_dimension_numbers<[1], [0], [0], [1], [0, 0, 1, 1], [], []>} : vector<2x4xf32>, vector<4x4xf32>, vector<2x4xf32> -> vector<2x4xf32>
    %442 = arith.addf %441, %58 : vector<2x4xf32>
    %443 = arith.addf %434, %439 : vector<2x4xf32>
    %444 = arith.negf %443 : vector<2x4xf32>
    %445 = math.exp %444 : vector<2x4xf32>
    %cst_127 = arith.constant 1.000000e+00 : f32
    %446 = vector.broadcast %cst_127 : f32 to vector<2x4xf32>
    %447 = arith.addf %446, %445 : vector<2x4xf32>
    %448 = arith.divf %446, %447 : vector<2x4xf32>
    %449 = arith.addf %436, %440 : vector<2x4xf32>
    %450 = arith.negf %449 : vector<2x4xf32>
    %451 = math.exp %450 : vector<2x4xf32>
    %cst_128 = arith.constant 1.000000e+00 : f32
    %452 = vector.broadcast %cst_128 : f32 to vector<2x4xf32>
    %453 = arith.addf %452, %451 : vector<2x4xf32>
    %454 = arith.divf %452, %453 : vector<2x4xf32>
    %455 = arith.mulf %448, %442 : vector<2x4xf32>
    %456 = arith.addf %438, %455 : vector<2x4xf32>
    %457 = math.tanh %456 : vector<2x4xf32>
    %cst_129 = arith.constant 1.000000e+00 : f32
    %458 = vector.broadcast %cst_129 : f32 to vector<2x4xf32>
    %459 = arith.subf %458, %454 : vector<2x4xf32>
    %460 = arith.mulf %459, %457 : vector<2x4xf32>
    %461 = arith.mulf %454, %400 : vector<2x4xf32>
    %462 = arith.addf %460, %461 : vector<2x4xf32>
    %c0_130 = arith.constant 0 : index
    %c20 = arith.constant 20 : index
    %463 = vector.load %arg10[%c0_130, %c20] : memref<2x32xf32, #tpu.memory_space<vmem>>, vector<2x4xf32>
    tpu.vector_store %arg10[%c0_130, %c20], %462 {strides = array<i32>} : memref<2x32xf32, #tpu.memory_space<vmem>>, vector<2x4xf32>,
    %464 = vector.extract_strided_slice %37 {offsets = [0, 7, 0], sizes = [2, 1, 32], strides = [1, 1, 1]} : vector<2x8x32xf32> to vector<2x1x32xf32>
    %465 = vector.shape_cast %464 : vector<2x1x32xf32> to vector<2x32xf32>
    %466 = vector.extract_strided_slice %42 {offsets = [0, 7, 0], sizes = [2, 1, 32], strides = [1, 1, 1]} : vector<2x8x32xf32> to vector<2x1x32xf32>
    %467 = vector.shape_cast %466 : vector<2x1x32xf32> to vector<2x32xf32>
    %468 = vector.extract_strided_slice %46 {offsets = [0, 7, 0], sizes = [2, 1, 32], strides = [1, 1, 1]} : vector<2x8x32xf32> to vector<2x1x32xf32>
    %469 = vector.shape_cast %468 : vector<2x1x32xf32> to vector<2x32xf32>
    %cst_131 = arith.constant dense<0.000000e+00> : vector<2x32xf32>
    %470 = tpu.matmul %431, %9, %cst_131 {dimension_numbers = #tpu.dot_dimension_numbers<[1], [0], [0], [1], [0, 0, 1, 1], [], []>} : vector<2x32xf32>, vector<32x32xf32>, vector<2x32xf32> -> vector<2x32xf32>
    %cst_132 = arith.constant dense<0.000000e+00> : vector<2x32xf32>
    %471 = tpu.matmul %431, %10, %cst_132 {dimension_numbers = #tpu.dot_dimension_numbers<[1], [0], [0], [1], [0, 0, 1, 1], [], []>} : vector<2x32xf32>, vector<32x32xf32>, vector<2x32xf32> -> vector<2x32xf32>
    %cst_133 = arith.constant dense<0.000000e+00> : vector<2x32xf32>
    %472 = tpu.matmul %431, %11, %cst_133 {dimension_numbers = #tpu.dot_dimension_numbers<[1], [0], [0], [1], [0, 0, 1, 1], [], []>} : vector<2x32xf32>, vector<32x32xf32>, vector<2x32xf32> -> vector<2x32xf32>
    %473 = arith.addf %472, %48 : vector<2x32xf32>
    %474 = arith.addf %465, %470 : vector<2x32xf32>
    %475 = arith.negf %474 : vector<2x32xf32>
    %476 = math.exp %475 : vector<2x32xf32>
    %cst_134 = arith.constant 1.000000e+00 : f32
    %477 = vector.broadcast %cst_134 : f32 to vector<2x32xf32>
    %478 = arith.addf %477, %476 : vector<2x32xf32>
    %479 = arith.divf %477, %478 : vector<2x32xf32>
    %480 = arith.addf %467, %471 : vector<2x32xf32>
    %481 = arith.negf %480 : vector<2x32xf32>
    %482 = math.exp %481 : vector<2x32xf32>
    %cst_135 = arith.constant 1.000000e+00 : f32
    %483 = vector.broadcast %cst_135 : f32 to vector<2x32xf32>
    %484 = arith.addf %483, %482 : vector<2x32xf32>
    %485 = arith.divf %483, %484 : vector<2x32xf32>
    %486 = arith.mulf %479, %473 : vector<2x32xf32>
    %487 = arith.addf %469, %486 : vector<2x32xf32>
    %488 = math.tanh %487 : vector<2x32xf32>
    %cst_136 = arith.constant 1.000000e+00 : f32
    %489 = vector.broadcast %cst_136 : f32 to vector<2x32xf32>
    %490 = arith.subf %489, %485 : vector<2x32xf32>
    %491 = arith.mulf %490, %488 : vector<2x32xf32>
    %492 = arith.mulf %485, %431 : vector<2x32xf32>
    %493 = arith.addf %491, %492 : vector<2x32xf32>
    %c0_137 = arith.constant 0 : index
    %c224 = arith.constant 224 : index
    %494 = vector.load %arg9[%c0_137, %c224] : memref<2x256xf32, #tpu.memory_space<vmem>>, vector<2x32xf32>
    tpu.vector_store %arg9[%c0_137, %c224], %493 {strides = array<i32>} : memref<2x256xf32, #tpu.memory_space<vmem>>, vector<2x32xf32>,
    %cst_138 = arith.constant dense<0.000000e+00> : vector<2x4xf32>
    %495 = tpu.matmul %431, %12, %cst_138 {dimension_numbers = #tpu.dot_dimension_numbers<[1], [0], [0], [1], [0, 0, 1, 1], [], []>} : vector<2x32xf32>, vector<32x4xf32>, vector<2x4xf32> -> vector<2x4xf32>
    %496 = arith.addf %495, %51 : vector<2x4xf32>
    %cst_139 = arith.constant dense<0.000000e+00> : vector<2x4xf32>
    %497 = tpu.matmul %431, %13, %cst_139 {dimension_numbers = #tpu.dot_dimension_numbers<[1], [0], [0], [1], [0, 0, 1, 1], [], []>} : vector<2x32xf32>, vector<32x4xf32>, vector<2x4xf32> -> vector<2x4xf32>
    %498 = arith.addf %497, %54 : vector<2x4xf32>
    %cst_140 = arith.constant dense<0.000000e+00> : vector<2x4xf32>
    %499 = tpu.matmul %431, %14, %cst_140 {dimension_numbers = #tpu.dot_dimension_numbers<[1], [0], [0], [1], [0, 0, 1, 1], [], []>} : vector<2x32xf32>, vector<32x4xf32>, vector<2x4xf32> -> vector<2x4xf32>
    %500 = arith.addf %499, %56 : vector<2x4xf32>
    %cst_141 = arith.constant dense<0.000000e+00> : vector<2x4xf32>
    %501 = tpu.matmul %462, %15, %cst_141 {dimension_numbers = #tpu.dot_dimension_numbers<[1], [0], [0], [1], [0, 0, 1, 1], [], []>} : vector<2x4xf32>, vector<4x4xf32>, vector<2x4xf32> -> vector<2x4xf32>
    %cst_142 = arith.constant dense<0.000000e+00> : vector<2x4xf32>
    %502 = tpu.matmul %462, %16, %cst_142 {dimension_numbers = #tpu.dot_dimension_numbers<[1], [0], [0], [1], [0, 0, 1, 1], [], []>} : vector<2x4xf32>, vector<4x4xf32>, vector<2x4xf32> -> vector<2x4xf32>
    %cst_143 = arith.constant dense<0.000000e+00> : vector<2x4xf32>
    %503 = tpu.matmul %462, %17, %cst_143 {dimension_numbers = #tpu.dot_dimension_numbers<[1], [0], [0], [1], [0, 0, 1, 1], [], []>} : vector<2x4xf32>, vector<4x4xf32>, vector<2x4xf32> -> vector<2x4xf32>
    %504 = arith.addf %503, %58 : vector<2x4xf32>
    %505 = arith.addf %496, %501 : vector<2x4xf32>
    %506 = arith.negf %505 : vector<2x4xf32>
    %507 = math.exp %506 : vector<2x4xf32>
    %cst_144 = arith.constant 1.000000e+00 : f32
    %508 = vector.broadcast %cst_144 : f32 to vector<2x4xf32>
    %509 = arith.addf %508, %507 : vector<2x4xf32>
    %510 = arith.divf %508, %509 : vector<2x4xf32>
    %511 = arith.addf %498, %502 : vector<2x4xf32>
    %512 = arith.negf %511 : vector<2x4xf32>
    %513 = math.exp %512 : vector<2x4xf32>
    %cst_145 = arith.constant 1.000000e+00 : f32
    %514 = vector.broadcast %cst_145 : f32 to vector<2x4xf32>
    %515 = arith.addf %514, %513 : vector<2x4xf32>
    %516 = arith.divf %514, %515 : vector<2x4xf32>
    %517 = arith.mulf %510, %504 : vector<2x4xf32>
    %518 = arith.addf %500, %517 : vector<2x4xf32>
    %519 = math.tanh %518 : vector<2x4xf32>
    %cst_146 = arith.constant 1.000000e+00 : f32
    %520 = vector.broadcast %cst_146 : f32 to vector<2x4xf32>
    %521 = arith.subf %520, %516 : vector<2x4xf32>
    %522 = arith.mulf %521, %519 : vector<2x4xf32>
    %523 = arith.mulf %516, %462 : vector<2x4xf32>
    %524 = arith.addf %522, %523 : vector<2x4xf32>
    %c0_147 = arith.constant 0 : index
    %c24 = arith.constant 24 : index
    %525 = vector.load %arg10[%c0_147, %c24] : memref<2x32xf32, #tpu.memory_space<vmem>>, vector<2x4xf32>
    tpu.vector_store %arg10[%c0_147, %c24], %524 {strides = array<i32>} : memref<2x32xf32, #tpu.memory_space<vmem>>, vector<2x4xf32>,
    %cst_148 = arith.constant dense<0.000000e+00> : vector<2x4xf32>
    %526 = tpu.matmul %493, %12, %cst_148 {dimension_numbers = #tpu.dot_dimension_numbers<[1], [0], [0], [1], [0, 0, 1, 1], [], []>} : vector<2x32xf32>, vector<32x4xf32>, vector<2x4xf32> -> vector<2x4xf32>
    %527 = arith.addf %526, %51 : vector<2x4xf32>
    %cst_149 = arith.constant dense<0.000000e+00> : vector<2x4xf32>
    %528 = tpu.matmul %493, %13, %cst_149 {dimension_numbers = #tpu.dot_dimension_numbers<[1], [0], [0], [1], [0, 0, 1, 1], [], []>} : vector<2x32xf32>, vector<32x4xf32>, vector<2x4xf32> -> vector<2x4xf32>
    %529 = arith.addf %528, %54 : vector<2x4xf32>
    %cst_150 = arith.constant dense<0.000000e+00> : vector<2x4xf32>
    %530 = tpu.matmul %493, %14, %cst_150 {dimension_numbers = #tpu.dot_dimension_numbers<[1], [0], [0], [1], [0, 0, 1, 1], [], []>} : vector<2x32xf32>, vector<32x4xf32>, vector<2x4xf32> -> vector<2x4xf32>
    %531 = arith.addf %530, %56 : vector<2x4xf32>
    %cst_151 = arith.constant dense<0.000000e+00> : vector<2x4xf32>
    %532 = tpu.matmul %524, %15, %cst_151 {dimension_numbers = #tpu.dot_dimension_numbers<[1], [0], [0], [1], [0, 0, 1, 1], [], []>} : vector<2x4xf32>, vector<4x4xf32>, vector<2x4xf32> -> vector<2x4xf32>
    %cst_152 = arith.constant dense<0.000000e+00> : vector<2x4xf32>
    %533 = tpu.matmul %524, %16, %cst_152 {dimension_numbers = #tpu.dot_dimension_numbers<[1], [0], [0], [1], [0, 0, 1, 1], [], []>} : vector<2x4xf32>, vector<4x4xf32>, vector<2x4xf32> -> vector<2x4xf32>
    %cst_153 = arith.constant dense<0.000000e+00> : vector<2x4xf32>
    %534 = tpu.matmul %524, %17, %cst_153 {dimension_numbers = #tpu.dot_dimension_numbers<[1], [0], [0], [1], [0, 0, 1, 1], [], []>} : vector<2x4xf32>, vector<4x4xf32>, vector<2x4xf32> -> vector<2x4xf32>
    %535 = arith.addf %534, %58 : vector<2x4xf32>
    %536 = arith.addf %527, %532 : vector<2x4xf32>
    %537 = arith.negf %536 : vector<2x4xf32>
    %538 = math.exp %537 : vector<2x4xf32>
    %cst_154 = arith.constant 1.000000e+00 : f32
    %539 = vector.broadcast %cst_154 : f32 to vector<2x4xf32>
    %540 = arith.addf %539, %538 : vector<2x4xf32>
    %541 = arith.divf %539, %540 : vector<2x4xf32>
    %542 = arith.addf %529, %533 : vector<2x4xf32>
    %543 = arith.negf %542 : vector<2x4xf32>
    %544 = math.exp %543 : vector<2x4xf32>
    %cst_155 = arith.constant 1.000000e+00 : f32
    %545 = vector.broadcast %cst_155 : f32 to vector<2x4xf32>
    %546 = arith.addf %545, %544 : vector<2x4xf32>
    %547 = arith.divf %545, %546 : vector<2x4xf32>
    %548 = arith.mulf %541, %535 : vector<2x4xf32>
    %549 = arith.addf %531, %548 : vector<2x4xf32>
    %550 = math.tanh %549 : vector<2x4xf32>
    %cst_156 = arith.constant 1.000000e+00 : f32
    %551 = vector.broadcast %cst_156 : f32 to vector<2x4xf32>
    %552 = arith.subf %551, %547 : vector<2x4xf32>
    %553 = arith.mulf %552, %550 : vector<2x4xf32>
    %554 = arith.mulf %547, %524 : vector<2x4xf32>
    %555 = arith.addf %553, %554 : vector<2x4xf32>
    %c0_157 = arith.constant 0 : index
    %c28 = arith.constant 28 : index
    %556 = vector.load %arg10[%c0_157, %c28] : memref<2x32xf32, #tpu.memory_space<vmem>>, vector<2x4xf32>
    tpu.vector_store %arg10[%c0_157, %c28], %555 {strides = array<i32>} : memref<2x32xf32, #tpu.memory_space<vmem>>, vector<2x4xf32>,
    return
  }
}

</mosaic_0001>

<bundles_post_ra>
// kernel: netd_forward.1
= control target key start
LH: loop header
LB: loop body
LE: loop exit
PB: predicated region body
PF: predicated region fallthrough
CT: control target
= control target key end

     0   :  { %vm57_vm0 = vcmask 1043456   ;;  %v9276_v2 = vmov 0.0   ;;  %vm7823_vm1 = vmmov 0   ;;  %s7824_s17 = smov 64   ;;  %vm50_vm2 = vcmask 31744   ;;  %s7828_s19 = smov 124   ;;  %s9265_s2 = inlined_call_operand.vmem [shape: f32[32,96], index: 2, kind: input, shape index: {}]   ;;  %s9266_s1 = inlined_call_operand.vmem [shape: f32[4,96], index: 1, kind: input, shape index: {}]   ;;  %s9267_s0 = inlined_call_operand.vmem [shape: f32[2,8,4], index: 0, kind: input, shape index: {}]   ;;  %s9268_s4 = inlined_call_operand.vmem [shape: f32[1,96], index: 4, kind: input, shape index: {}]   ;;  %s9269_s3 = inlined_call_operand.vmem [shape: f32[1,96], index: 3, kind: input, shape index: {}]   ;;  %s9270_s5 = inlined_call_operand.vmem [shape: f32[32,12], index: 5, kind: input, shape index: {}]   ;;  %s9271_s6 = inlined_call_operand.vmem [shape: f32[4,12], index: 6, kind: input, shape index: {}]   ;;  %s9272_s7 = inlined_call_operand.vmem [shape: f32[1,12], index: 7, kind: input, shape index: {}]   ;;  %s9273_s8 = inlined_call_operand.vmem [shape: f32[1,12], index: 8, kind: input, shape index: {}]   ;;  %s9274_s10 = inlined_call_operand.vmem [shape: f32[2,32], index: 10, kind: output, shape index: {1}]   ;;  %s9275_s9 = inlined_call_operand.vmem [shape: f32[2,256], index: 9, kind: output, shape index: {0}]  }
   0x1   :  { %v7895_v0 = vld [vmem:[%s9265_s2 + $0x18] sm:$0xff]  ;;  %v7900_v1 = vld [vmem:[%s9265_s2 + $0x8] sm:$0xff]  ;;  %6901 = vmatprep.subr.mxu1 %v9276_v2  ;;  %6909 = vmatprep.mubr.msk.f32.mxu1 %vm7823_vm1, %v9276_v2  ;;  %v36_v3 = vld [vmem:[%s9266_s1] sm:$0xf]  ;;  %v138_v8 = vlaneseq  ;;  %vm515_vm3 = vcmask 1041409   ;;  %vm517_vm4 = vcmask 1043459  }
   0x2   :  { %341 = vrot.lane.b32.xlu0 %v7895_v0, %s7824_s17  ;;  %337 = vrot.lane.b32.xlu1 %v7900_v1, %s7824_s17  ;;  %v7915_v4 = vld [vmem:[%s9265_s2 + $0x10] sm:$0xff]  ;;  %v7920_v5 = vld [vmem:[%s9265_s2] sm:$0xff]  ;;  %vm519_vm5 = vcmask 1045509   ;;  %vm521_vm6 = vcmask 1047559   ;;  %vm175_vm7 = vcmask 261120   ;;  %s7829_s22 = smov 120  }
   0x3   :  { %6902 = vmatpush3.msra.mxu1 %v7895_v0  ;;  %6896 = vmatprep.subr.msk.mxu0 %vm57_vm0, %v36_v3  ;;  %v34_v6 = vld [vmem:[%s9267_s0] sm:$0xff]  ;;  %v35_v7 = vld [vmem:[%s9267_s0 + $0x8] sm:$0xff]  ;;  %v7938_v9 = vshrl.u32 %v138_v8, 7  ;;  %s7825_s0 = smov 96   ;;  %vm1338_vm8 = vcmask 25600   ;;  %s7831_s16 = smov 12  }
   0x4   :  { %6903 = vmatprep.subr.mxu1 %v9276_v2  ;;  %6897 = vmatpush3.msk.msra.mxu0 %vm57_vm0, %v36_v3  ;;  %v42_v11 = vld [vmem:[%s9268_s4] sm:$0x1]  ;;  %s7832_s18 = smov 20   ;;  %vm2115_vm9 = vcmask 58400   ;;  %vm526_vm10 = vcmask 254976   ;;  %vm845_vm11 = vcmask 517376  }
   0x5   :  { %6904 = vmatpush3.msra.mxu1 %v7915_v4  ;;  %6898 = vmatprep.mubr.msk.f32.mxu0 %vm50_vm2, %v34_v6  ;;  %v7952_v10 = vsub.s32 0, %v7938_v9  ;;  %v41_v21 = vld [vmem:[%s9269_s3] sm:$0x1]  ;;  %s7826_s3 = smov 32   ;;  %s7833_s21 = smov 8   ;;  %vm1665_vm12 = vcmask 779776  }
   0x6   :  { %339 = vrot.lane.b32.xlu0 %v7915_v4, %s7824_s17  ;;  %335 = vrot.lane.b32.xlu1 %v7920_v5, %s7824_s17  ;;  %v136_v27 = vadd.f32 %v42_v11, %v41_v21  ;;  %s7834_s1 = smov 16   ;;  %s7835_s26 = smov 24   ;;  %vm2892_vm13 = vcmask 91200   ;;  %vm3668_vm14 = vcmask 124000   ;;  %vm4442_vm15 = vcmask 156800  }
   0x7   :  { %6905 = vmatprep.subr.mxu1 %v9276_v2  ;;  %6899 = vmatmul.mubr.msk.f32.vlgmr.msra.gmra.mxu0 %vm50_vm2, %v35_v7  ;;  %v157_v12 = vrot.slane %v42_v11, %v7952_v10  ;;  %v149_v22 = vrot.slane %v41_v21, %v7952_v10 }
   0x8   :  { %6906 = vmatpush3.msra.mxu1 %v7900_v1  ;;  %6912 = vmatprep.subr.mxu0 %v9276_v2  ;;  %v141_v28 = vrot.slane %v136_v27, %v7952_v10 }
   0x9   :  { %6907 = vmatprep.subr.mxu1 %v9276_v2  ;;  %6920 = vmatprep.mubr.msk.f32.mxu0 %vm7823_vm1, %v9276_v2 }
   0xa   :  { %259 = vrot.lane.b32.xlu0 %v7895_v0, %s7825_s0  ;;  %257 = vrot.lane.b32.xlu1 %v7915_v4, %s7825_s0 }
   0xb   :  { %6908 = vmatpush3.msra.mxu1 %v7920_v5 }
   0xc   :  { %6910 = vmatmul.mubr.f32.vlgmr.msra.gmra.mxu1 %v9276_v2  ;;  %6923 = vmatprep.subr.mxu1 %v9276_v2 }
   0xd   :  { %6931 = vmatprep.mubr.msk.f32.mxu1 %vm7823_vm1, %v9276_v2 }
   0xe   :  { %255 = vrot.lane.b32.xlu0 %v7900_v1, %s7825_s0  ;;  %253 = vrot.lane.b32.xlu1 %v7920_v5, %s7825_s0 }
  0x12   :  { %347 = vrot.lane.b32.xlu0 %v157_v12, %s7824_s17 }
  0x74   :  { %v7968_v13 = vpop.permute.xlu0 %341  ;;  %v7970_v14 = vpop.permute.xlu1 %337 }
  0x75   :  { %6924 = vmatpush3.msra.mxu1 %v7968_v13 }
  0x76   :  { %6925 = vmatprep.subr.mxu1 %v9276_v2 }
  0x78   :  { %v7974_v15 = vpop.permute.xlu0 %339  ;;  %v7976_v16 = vpop.permute.xlu1 %335 }
  0x79   :  { %6926 = vmatpush3.msra.mxu1 %v7974_v15 }
  0x7a   :  { %6927 = vmatprep.subr.mxu1 %v9276_v2 }
  0x7b   :  { %6928 = vmatpush3.msra.mxu1 %v7970_v14 }
  0x7c   :  { %6929 = vmatprep.subr.mxu1 %v9276_v2  ;;  %v7982_v17 = vpop.permute.xlu0 %259  ;;  %v7984_v18 = vpop.permute.xlu1 %257 }
  0x7d   :  { %6930 = vmatpush3.msra.mxu1 %v7976_v16  ;;  %6913 = vmatpush3.msra.mxu0 %v7982_v17 }
  0x7e   :  { %6932 = vmatmul.mubr.f32.vlgmr.msra.gmra.mxu1 %v9276_v2  ;;  %6914 = vmatprep.subr.mxu0 %v9276_v2 }
  0x7f   :  { %6915 = vmatpush3.msra.mxu0 %v7984_v18  ;;  %6945 = vmatprep.subr.mxu1 %v9276_v2 }
  0x80   :  { %v7992_v19 = vpop.permute.xlu0 %255  ;;  %6916 = vmatprep.subr.mxu0 %v9276_v2  ;;  %v7995_v20 = vpop.permute.xlu1 %253  ;;  %6946 = vmatpush3.msra.mxu1 %v7982_v17 }
  0x81   :  { %6917 = vmatpush3.msra.mxu0 %v7992_v19  ;;  %6947 = vmatprep.subr.mxu1 %v9276_v2 }
  0x82   :  { %6918 = vmatprep.subr.mxu0 %v9276_v2  ;;  %6948 = vmatpush3.msra.mxu1 %v7984_v18 }
  0x83   :  { %6919 = vmatpush3.msra.mxu0 %v7995_v20  ;;  %6949 = vmatprep.subr.mxu1 %v9276_v2 }
  0x84   :  { %6921 = vmatmul.mubr.f32.vlgmr.msra.gmra.mxu0 %v9276_v2  ;;  %6950 = vmatpush3.msra.mxu1 %v7992_v19  ;;  %v8035_v41 = vpop.permute.xlu0 %347 }
  0x85   :  { %6951 = vmatprep.subr.mxu1 %v9276_v2  ;;  %6934 = vmatprep.subr.mxu0 %v9276_v2 }
  0x86   :  { %6952 = vmatpush3.msra.mxu1 %v7995_v20  ;;  %6935 = vmatpush3.msra.mxu0 %v7895_v0 }
  0x87   :  { %6936 = vmatprep.subr.mxu0 %v9276_v2  ;;  %6942 = vmatprep.mubr.msk.f32.mxu0 %vm7823_vm1, %v9276_v2 }
  0x88   :  { %6937 = vmatpush3.msra.mxu0 %v7915_v4  ;;  %6953 = vmatprep.mubr.msk.f32.mxu1 %vm7823_vm1, %v9276_v2 }
  0x89   :  { %6938 = vmatprep.subr.mxu0 %v9276_v2  ;;  %6967 = vmatprep.subr.mxu1 %v9276_v2 }
  0x8a   :  { %6939 = vmatpush3.msra.mxu0 %v7900_v1 }
  0x8b   :  { %6940 = vmatprep.subr.mxu0 %v9276_v2 }
  0x8c   :  { %6941 = vmatpush3.msra.mxu0 %v7920_v5 }
  0x8d   :  { %6956 = vmatprep.subr.mxu0 %v9276_v2 }
  0xc7   :  { %v6900_v23 = vpop.f32.mrf.mxu0 }
  0xc8   :  { %v8026_v24 = vadd.f32 %v6900_v23, %v149_v22  ;;  %v8031_v31 = vadd.f32 %v6900_v23, %v141_v28 }
  0xc9   :  { %v127_v29 = vpop.f32.mrf.mxu0 }
  0xca   :  { %v8029_v30 = vadd.f32 %v141_v28, %v127_v29  ;;  %v8042_v53 = vadd.f32 %v149_v22, %v127_v29  ;;  %v7827_v22 = vmov 1983009808  }
  0xcb   :  { %v497_v23 = vunpack.c.l.s4 %v7827_v22 }
  0xcc   :  { %v245_v25 = vpop.f32.mrf.mxu1 }
  0xcd   :  { %v421_v32 = vrot.slane %v245_v25, 1  ;;  %v424_v33 = vadd.f32 %v245_v25, %v8029_v30  ;;  %v498_v28 = vunpack.c.0.s8 %v497_v23 }
  0xce   :  { %v6911_v26 = vpop.f32.mrf.mxu1 }
  0xcf   :  { %v425_v34 = vadd.f32 %v421_v32, %v8031_v31  ;;  %v6467_v35 = vmul.f32 -1.442695, %v424_v33 }
  0xd1   :  { %v6468_v36 = vmul.f32 -1.442695, %v425_v34  ;;  %7564 = vpow2.f32 %v6467_v35 }
  0xd3   :  { %7566 = vpow2.f32 %v6468_v36 }
  0xde   :  { %v7565_v37 = vpop.eup %7564 }
  0xdf   :  { %v432_v39 = vadd.f32 1.0, %v7565_v37  ;;  %v8051_v37 = vsub.s32 %v498_v28, %v7938_v9 }
  0xe0   :  { %v7567_v38 = vpop.eup %7566 }
  0xe1   :  { %v433_v40 = vadd.f32 1.0, %v7567_v38  ;;  %7568 = vrcp.f32 %v432_v39 }
  0xe3   :  { %7570 = vrcp.f32 %v433_v40 }
  0xee   :  { %v7569_v42 = vpop.eup %7568 }
  0xf0   :  { %v7571_v45 = vpop.eup %7570 }
 0x13e   :  { %v416_v43 = vpop.f32.mrf.mxu1 }
 0x13f   :  { %v417_v44 = vadd.f32 %v416_v43, %v8035_v41 }
 0x140   :  { %v6933_v46 = vpop.f32.mrf.mxu1 }
 0x141   :  { %v461_v47 = vrot.slane %v417_v44, 1  ;;  %v464_v48 = vmul.f32 %v7569_v42, %v417_v44 }
 0x143   :  { %468 = vrot.lane.b32.xlu0 %v464_v48, %s7824_s17  ;;  %v465_v49 = vmul.f32 %v7571_v45, %v461_v47 }
 0x144   :  { %v331_v50 = vpop.f32.mrf.mxu0 }
 0x145   :  { %470 = vrot.lane.b32.xlu1 %v465_v49, %s7824_s17  ;;  %v439_v51 = vrot.slane %v331_v50, 1  ;;  %v8076_v49 = vld [vmem:[%s9270_s5 + $0x18] sm:$0xff] }
 0x146   :  { %v6922_v52 = vpop.f32.mrf.mxu0 }
 0x147   :  { %440 = vrot.lane.b32.xlu0 %v331_v50, %s7826_s3  ;;  %v8096_v52 = vld [vmem:[%s9270_s5 + $0x8] sm:$0xff] }
 0x149   :  { %442 = vrot.lane.b32.xlu1 %v439_v51, %s7826_s3  ;;  %v8087_v51 = vld [vmem:[%s9270_s5 + $0x10] sm:$0xff] }
 0x1b5   :  { %v469_v54 = vpop.permute.xlu0 %468 }
 0x1b6   :  { %v474_v55 = vadd.f32 %v469_v54, %v8042_v53  ;;  %v8107_v54 = vld [vmem:[%s9270_s5] sm:$0xff] }
 0x1b7   :  { %v471_v56 = vpop.permute.xlu1 %470 }
 0x1b8   :  { %7572 = vtanh.f32 %v474_v55  ;;  %v475_v57 = vadd.f32 %v471_v56, %v8026_v24 }
 0x1b9   :  { %v441_v60 = vpop.permute.xlu0 %440 }
 0x1ba   :  { %7574 = vtanh.f32 %v475_v57  ;;  %v446_v62 = vadd.f32 %v441_v60, %v8029_v30 }
 0x1bb   :  { %v443_v61 = vpop.permute.xlu1 %442 }
 0x1bc   :  { %v447_v63 = vadd.f32 %v443_v61, %v8031_v31  ;;  %v6469_v3 = vmul.f32 -1.442695, %v446_v62 }
 0x1be   :  { %v6470_v6 = vmul.f32 -1.442695, %v447_v63  ;;  %7576 = vpow2.f32 %v6469_v3 }
 0x1c0   :  { %7578 = vpow2.f32 %v6470_v6 }
 0x1c5   :  { %v7573_v58 = vpop.eup %7572 }
 0x1c6   :  { %482 = vrot.lane.b32.xlu0 %v7573_v58, %s7825_s0 }
 0x1c7   :  { %v7575_v59 = vpop.eup %7574 }
 0x1c8   :  { %484 = vrot.lane.b32.xlu1 %v7575_v59, %s7825_s0 }
 0x1cb   :  { %v7577_v7 = vpop.eup %7576 }
 0x1cc   :  { %v454_v11 = vadd.f32 1.0, %v7577_v7 }
 0x1cd   :  { %v7579_v8 = vpop.eup %7578 }
 0x1ce   :  { %v455_v12 = vadd.f32 1.0, %v7579_v8  ;;  %7580 = vrcp.f32 %v454_v11 }
 0x1d0   :  { %7582 = vrcp.f32 %v455_v12 }
 0x1db   :  { %v7581_v21 = vpop.eup %7580 }
 0x1dc   :  { %v478_v26 = vsub.f32 1.0, %v7581_v21  ;;  %v490_v34 = vmul.f32 0.0, %v7581_v21 }
 0x1dd   :  { %v7583_v25 = vpop.eup %7582 }
 0x1de   :  { %v479_v32 = vsub.f32 1.0, %v7583_v25  ;;  %v491_v35 = vmul.f32 0.0, %v7583_v25 }
 0x238   :  { %v483_v27 = vpop.permute.xlu0 %482 }
 0x239   :  { %v488_v29 = vmul.f32 %v483_v27, %v478_v26 }
 0x23a   :  { %v485_v33 = vpop.permute.xlu1 %484 }
 0x23b   :  { %v489_v36 = vmul.f32 %v485_v33, %v479_v32  ;;  %v8053_v38 = vadd.f32 %v490_v34, %v488_v29 }
 0x23d   :  { %v8055_v39 = vadd.f32 %v491_v35, %v489_v36  ;;  %v502_v43 = vrot.slane %v8053_v38, %v8051_v37 }
 0x23f   :  { %v509_v40 = vrot.slane %v8055_v39, %v8051_v37  ;;  %v528_v42 = vrot.slane %v8055_v39, 7 }
 0x241   :  { %v514_v44 = vrot.slane %v509_v40, 7  ;;  %v529_v9 = vsel %vm515_vm3, %v528_v42, %v8053_v38 }
 0x242   :  { %530 = vrot.lane.b32.xlu1 %v529_v9, %s7825_s0 }
 0x243   :  { %v516_v45 = vsel %vm515_vm3, %v514_v44, %v502_v43 }
 0x244   :  { %v518_v46 = vsel %vm517_vm4, %v514_v44, %v516_v45 }
 0x245   :  { %v520_v47 = vsel %vm519_vm5, %v514_v44, %v518_v46 }
 0x246   :  { %v8071_v48 = vsel %vm521_vm6, %v514_v44, %v520_v47  ;;  %v8151_v44 = vld [vmem:[%s9271_s6] sm:$0xf] }
 0x247   :  { %9278 = vst [vmem:[#allocation2_spill] sm:$0xff] %v8071_v48 }
 0x2b4   :  { %v8078_v50 = vpop.permute.xlu1 %530 }
 0x2b5   :  { %6943 = vmatmul.mubr.msk.f32.vlgmr.msra.gmra.mxu0 %vm175_vm7, %v8078_v50  ;;  %6954 = vmatmul.mubr.msk.f32.vlgmr.msra.gmra.mxu1 %vm175_vm7, %v8078_v50 }
 0x2b6   :  { %6957 = vmatpush3.msra.mxu0 %v7968_v13  ;;  %6968 = vmatpush3.msra.mxu1 %v8076_v49 }
 0x2b7   :  { %6958 = vmatprep.subr.mxu0 %v9276_v2  ;;  %6969 = vmatprep.subr.mxu1 %v9276_v2 }
 0x2b8   :  { %6959 = vmatpush3.msra.mxu0 %v7974_v15  ;;  %6970 = vmatpush3.msra.mxu1 %v8087_v51 }
 0x2b9   :  { %6960 = vmatprep.subr.mxu0 %v9276_v2  ;;  %6971 = vmatprep.subr.mxu1 %v9276_v2 }
 0x2ba   :  { %6961 = vmatpush3.msra.mxu0 %v7970_v14  ;;  %6972 = vmatpush3.msra.mxu1 %v8096_v52 }
 0x2bb   :  { %6962 = vmatprep.subr.mxu0 %v9276_v2  ;;  %6973 = vmatprep.subr.mxu1 %v9276_v2 }
 0x2bc   :  { %6963 = vmatpush3.msra.mxu0 %v7976_v16  ;;  %6964 = vmatprep.mubr.msk.f32.mxu0 %vm7823_vm1, %v9276_v2 }
 0x2bd   :  { %6974 = vmatpush3.msra.mxu1 %v8107_v54  ;;  %6975 = vmatprep.mubr.msk.f32.mxu1 %vm7823_vm1, %v9276_v2 }
 0x2be   :  { %6965 = vmatmul.mubr.msk.f32.vlgmr.msra.gmra.mxu0 %vm175_vm7, %v8078_v50  ;;  %6976 = vmatmul.mubr.msk.f32.vlgmr.msra.gmra.mxu1 %vm175_vm7, %v8078_v50 }
 0x2bf   :  { %6978 = vmatprep.subr.mxu0 %v9276_v2  ;;  %6986 = vmatprep.mubr.msk.f32.mxu0 %vm7823_vm1, %v9276_v2 }
 0x2c0   :  { %6989 = vmatprep.subr.mxu1 %v9276_v2  ;;  %6997 = vmatprep.mubr.msk.f32.mxu1 %vm7823_vm1, %v9276_v2 }
 0x375   :  { %v600_v55 = vpop.f32.mrf.mxu0  ;;  %v670_v56 = vpop.f32.mrf.mxu1 }
 0x376   :  { %v745_v57 = vrot.slane %v600_v55, 7  ;;  %v749_v58 = vadd.f32 %v600_v55, %v8031_v31  ;;  %v763_v32 = vrot.slane %v670_v56, 7 }
 0x377   :  { %v6944_v59 = vpop.f32.mrf.mxu0  ;;  %v6955_v60 = vpop.f32.mrf.mxu1 }
 0x378   :  { %v748_v61 = vadd.f32 %v745_v57, %v8029_v30  ;;  %v6475_v62 = vmul.f32 -1.442695, %v749_v58 }
 0x37a   :  { %v6474_v63 = vmul.f32 -1.442695, %v748_v61  ;;  %7584 = vpow2.f32 %v6475_v62 }
 0x37c   :  { %7586 = vpow2.f32 %v6474_v63 }
 0x37e   :  { %v740_v3 = vpop.f32.mrf.mxu0  ;;  %v8129_v6 = vpop.f32.mrf.mxu1 }
 0x37f   :  { %v741_v23 = vadd.f32 %v740_v3, %v8035_v41 }
 0x380   :  { %v6966_v7 = vpop.f32.mrf.mxu0  ;;  %v6977_v8 = vpop.f32.mrf.mxu1 }
 0x381   :  { %v785_v26 = vrot.slane %v741_v23, 7 }
 0x387   :  { %v7585_v11 = vpop.eup %7584 }
 0x388   :  { %v757_v12 = vadd.f32 1.0, %v7585_v11  ;;  %v814_v11 = vrot.slane %v8053_v38, 7 }
 0x389   :  { %v7587_v21 = vpop.eup %7586 }
 0x38a   :  { %v756_v22 = vadd.f32 1.0, %v7587_v21  ;;  %7588 = vrcp.f32 %v757_v12 }
 0x38c   :  { %7590 = vrcp.f32 %v756_v22 }
 0x397   :  { %v7589_v25 = vpop.eup %7588 }
 0x398   :  { %v789_v27 = vmul.f32 %v7589_v25, %v741_v23 }
 0x399   :  { %v7591_v28 = vpop.eup %7590 }
 0x39a   :  { %794 = vrot.lane.b32.xlu1 %v789_v27, %s7824_s17  ;;  %v788_v29 = vmul.f32 %v7591_v28, %v785_v26 }
 0x39c   :  { %792 = vrot.lane.b32.xlu0 %v788_v29, %s7824_s17 }
 0x39e   :  { %766 = vrot.lane.b32.xlu1 %v670_v56, %s7826_s3 }
 0x3a0   :  { %764 = vrot.lane.b32.xlu0 %v763_v32, %s7826_s3 }
 0x40c   :  { %v795_v33 = vpop.permute.xlu1 %794 }
 0x40d   :  { %v799_v34 = vadd.f32 %v795_v33, %v8026_v24 }
 0x40e   :  { %v793_v35 = vpop.permute.xlu0 %792 }
 0x40f   :  { %7592 = vtanh.f32 %v799_v34  ;;  %v798_v36 = vadd.f32 %v793_v35, %v8042_v53 }
 0x410   :  { %v767_v9 = vpop.permute.xlu1 %766 }
 0x411   :  { %7594 = vtanh.f32 %v798_v36  ;;  %v771_v46 = vadd.f32 %v767_v9, %v8031_v31 }
 0x412   :  { %v765_v45 = vpop.permute.xlu0 %764 }
 0x413   :  { %v770_v47 = vadd.f32 %v765_v45, %v8029_v30  ;;  %v6477_v55 = vmul.f32 -1.442695, %v771_v46 }
 0x415   :  { %v6476_v56 = vmul.f32 -1.442695, %v770_v47  ;;  %7596 = vpow2.f32 %v6477_v55  ;;  %v8338_v47 = vld [vmem:[%s9273_s8] sm:$0x1] }
 0x417   :  { %7598 = vpow2.f32 %v6476_v56 }
 0x41c   :  { %v7593_v40 = vpop.eup %7592 }
 0x41d   :  { %808 = vrot.lane.b32.xlu1 %v7593_v40, %s7825_s0 }
 0x41e   :  { %v7595_v43 = vpop.eup %7594 }
 0x41f   :  { %806 = vrot.lane.b32.xlu0 %v7595_v43, %s7825_s0 }
 0x421   :  { %925 = vrot.lane.b32.xlu1 %v8087_v51, %s7828_s19 }
 0x422   :  { %v7597_v57 = vpop.eup %7596 }
 0x423   :  { %927 = vrot.lane.b32.xlu0 %v8076_v49, %s7828_s19  ;;  %v779_v59 = vadd.f32 1.0, %v7597_v57 }
 0x424   :  { %v7599_v58 = vpop.eup %7598 }
 0x425   :  { %921 = vrot.lane.b32.xlu1 %v8107_v54, %s7828_s19  ;;  %v778_v60 = vadd.f32 1.0, %v7599_v58  ;;  %7600 = vrcp.f32 %v779_v59 }
 0x427   :  { %923 = vrot.lane.b32.xlu0 %v8096_v52, %s7828_s19  ;;  %7602 = vrcp.f32 %v778_v60 }
 0x42b   :  { %1166 = vrot.lane.b32.xlu0 %v8151_v44, %s7828_s19 }
 0x42f   :  { %1012 = vrot.lane.b32.xlu0 %v8076_v49, %s7829_s22 }
 0x432   :  { %v7601_v61 = vpop.eup %7600 }
 0x433   :  { %1008 = vrot.lane.b32.xlu0 %v8096_v52, %s7829_s22  ;;  %v803_v63 = vsub.f32 1.0, %v7601_v61  ;;  %v818_v21 = vmul.f32 %v7601_v61, %v528_v42 }
 0x434   :  { %v7603_v62 = vpop.eup %7602 }
 0x435   :  { %v802_v8 = vsub.f32 1.0, %v7603_v62  ;;  %v817_v22 = vmul.f32 %v7603_v62, %v814_v11 }
 0x437   :  { %1240 = vrot.lane.b32.xlu0 %v8151_v44, %s7829_s22 }
 0x48f   :  { %v809_v3 = vpop.permute.xlu1 %808 }
 0x490   :  { %v813_v7 = vmul.f32 %v809_v3, %v803_v63 }
 0x491   :  { %v807_v12 = vpop.permute.xlu0 %806 }
 0x492   :  { %v812_v23 = vmul.f32 %v807_v12, %v802_v8  ;;  %v8168_v26 = vadd.f32 %v818_v21, %v813_v7 }
 0x493   :  { %v8166_v25 = vpop.permute.xlu1 %925 }
 0x494   :  { %v8170_v27 = vadd.f32 %v817_v22, %v812_v23  ;;  %v836_v39 = vrot.slane %v8168_v26, %v8051_v37 }
 0x495   :  { %v8172_v28 = vpop.permute.xlu0 %927 }
 0x496   :  { %v829_v29 = vrot.slane %v8170_v27, %v8051_v37  ;;  %6979 = vmatpush3.msra.mxu0 %v8172_v28  ;;  %v1340_v38 = vrot.slane %v8170_v27, 1 }
 0x497   :  { %6980 = vmatprep.subr.mxu0 %v9276_v2  ;;  %v8188_v34 = vpop.permute.xlu1 %921 }
 0x498   :  { %v837_v42 = vrot.slane %v829_v29, 1  ;;  %6981 = vmatpush3.msra.mxu0 %v8166_v25  ;;  %v1341_v32 = vsel %vm515_vm3, %v8168_v26, %v1340_v38 }
 0x499   :  { %1342 = vrot.lane.b32.xlu1 %v1341_v32, %s7825_s0  ;;  %6982 = vmatprep.subr.mxu0 %v9276_v2  ;;  %v8186_v33 = vpop.permute.xlu0 %923 }
 0x49a   :  { %v840_v35 = vsel %vm515_vm3, %v836_v39, %v837_v42  ;;  %6983 = vmatpush3.msra.mxu0 %v8186_v33 }
 0x49b   :  { %6984 = vmatprep.subr.mxu0 %v9276_v2  ;;  %v841_v36 = vsel %vm517_vm4, %v836_v39, %v840_v35 }
 0x49c   :  { %6985 = vmatpush3.msra.mxu0 %v8188_v34  ;;  %v842_v40 = vsel %vm519_vm5, %v836_v39, %v841_v36 }
 0x49d   :  { %1010 = vrot.lane.b32.xlu1 %v8087_v51, %s7829_s22  ;;  %6987 = vmatmul.mubr.msk.f32.vlgmr.msra.gmra.mxu0 %vm175_vm7, %v8078_v50  ;;  %v8200_v43 = vpop.permute.xlu0 %1166  ;;  %v8203_v9 = vsel %vm521_vm6, %v836_v39, %v842_v40 }
 0x49e   :  { %9279 = vst [vmem:[#allocation3_spill] sm:$0xff] %v8203_v9  ;;  %7000 = vmatprep.subr.mxu0 %v9276_v2  ;;  %7002 = vmatprep.mubr.msk.f32.mxu0 %vm7823_vm1, %v9276_v2 }
 0x49f   :  { %7001 = vmatpush3.msk.msra.mxu0 %vm57_vm0, %v8151_v44 }
 0x4a0   :  { %7005 = vmatprep.subr.mxu0 %v9276_v2 }
 0x4a1   :  { %1006 = vrot.lane.b32.xlu1 %v8107_v54, %s7829_s22  ;;  %7003 = vmatmul.mubr.f32.vlgmr.msra.gmra.mxu0 %v9276_v2  ;;  %v8214_v45 = vpop.permute.xlu0 %1012 }
 0x4a2   :  { %7006 = vmatpush3.msk.msra.mxu0 %vm57_vm0, %v8200_v43  ;;  %7007 = vmatprep.mubr.msk.f32.mxu0 %vm7823_vm1, %v9276_v2 }
 0x4a3   :  { %7015 = vmatprep.subr.mxu0 %v9276_v2  ;;  %6990 = vmatpush3.msra.mxu1 %v8214_v45 }
 0x4a4   :  { %6991 = vmatprep.subr.mxu1 %v9276_v2 }
 0x4a5   :  { %7008 = vmatmul.mubr.f32.vlgmr.msra.gmra.mxu0 %v9276_v2 }
 0x4a6   :  { %7016 = vmatpush3.msra.mxu0 %v7895_v0  ;;  %7023 = vmatprep.mubr.msk.f32.mxu0 %vm7823_vm1, %v9276_v2 }
 0x4a7   :  { %7017 = vmatprep.subr.mxu0 %v9276_v2 }
 0x4a8   :  { %7018 = vmatpush3.msra.mxu0 %v7915_v4 }
 0x4a9   :  { %7019 = vmatprep.subr.mxu0 %v9276_v2 }
 0x4aa   :  { %7020 = vmatpush3.msra.mxu0 %v7900_v1  ;;  %v8245_v1 = vpop.permute.xlu0 %1008 }
 0x4ab   :  { %7021 = vmatprep.subr.mxu0 %v9276_v2 }
 0x4ac   :  { %7022 = vmatpush3.msra.mxu0 %v7920_v5 }
 0x4ad   :  { %7037 = vmatprep.subr.mxu0 %v9276_v2 }
 0x4ae   :  { %v8262_v5 = vpop.permute.xlu0 %1240 }
 0x50b   :  { %v8234_v46 = vpop.permute.xlu1 %1342 }
 0x50c   :  { %7024 = vmatmul.mubr.msk.f32.vlgmr.msra.gmra.mxu0 %vm175_vm7, %v8234_v46 }
 0x50d   :  { %7038 = vmatpush3.msra.mxu0 %v7968_v13  ;;  %7045 = vmatprep.mubr.msk.f32.mxu0 %vm7823_vm1, %v9276_v2 }
 0x50e   :  { %7039 = vmatprep.subr.mxu0 %v9276_v2 }
 0x50f   :  { %7040 = vmatpush3.msra.mxu0 %v7974_v15  ;;  %v8243_v0 = vpop.permute.xlu1 %1010 }
 0x510   :  { %7041 = vmatprep.subr.mxu0 %v9276_v2  ;;  %6992 = vmatpush3.msra.mxu1 %v8243_v0 }
 0x511   :  { %7042 = vmatpush3.msra.mxu0 %v7970_v14  ;;  %6993 = vmatprep.subr.mxu1 %v9276_v2 }
 0x512   :  { %7043 = vmatprep.subr.mxu0 %v9276_v2  ;;  %6994 = vmatpush3.msra.mxu1 %v8245_v1 }
 0x513   :  { %7044 = vmatpush3.msra.mxu0 %v7976_v16  ;;  %v8254_v4 = vpop.permute.xlu1 %1006  ;;  %6995 = vmatprep.subr.mxu1 %v9276_v2 }
 0x514   :  { %7046 = vmatmul.mubr.msk.f32.vlgmr.msra.gmra.mxu0 %vm175_vm7, %v8234_v46  ;;  %7059 = vmatprep.subr.mxu0 %v9276_v2 }
 0x515   :  { %6996 = vmatpush3.msra.mxu1 %v8254_v4  ;;  %7060 = vmatpush3.msra.mxu0 %v8172_v28 }
 0x516   :  { %6998 = vmatmul.mubr.msk.f32.vlgmr.msra.gmra.mxu1 %vm175_vm7, %v8078_v50  ;;  %7061 = vmatprep.subr.mxu0 %v9276_v2  ;;  %v8333_v50 = vld [vmem:[%s9272_s7] sm:$0x1] }
 0x517   :  { %7010 = vmatprep.subr.mxu1 %v9276_v2  ;;  %7062 = vmatpush3.msra.mxu0 %v8166_v25  ;;  %v158_v55 = vadd.f32 %v8338_v47, %v8333_v50 }
 0x518   :  { %7011 = vmatpush3.msk.msra.mxu1 %vm57_vm0, %v8262_v5  ;;  %7063 = vmatprep.subr.mxu0 %v9276_v2 }
 0x519   :  { %7012 = vmatprep.mubr.msk.f32.mxu1 %vm7823_vm1, %v9276_v2  ;;  %7026 = vmatprep.subr.mxu1 %v9276_v2  ;;  %v8343_v56 = vrot.slane %v158_v55, %v7952_v10 }
 0x51a   :  { %7064 = vmatpush3.msra.mxu0 %v8186_v33  ;;  %7013 = vmatmul.mubr.f32.vlgmr.msra.gmra.mxu1 %v9276_v2 }
 0x51b   :  { %7027 = vmatpush3.msra.mxu1 %v7982_v17  ;;  %7065 = vmatprep.subr.mxu0 %v9276_v2  ;;  %v914_v59 = vadd.f32 %v8129_v6, %v8343_v56 }
 0x51c   :  { %7028 = vmatprep.subr.mxu1 %v9276_v2  ;;  %7066 = vmatpush3.msra.mxu0 %v8188_v34 }
 0x51d   :  { %7067 = vmatprep.mubr.msk.f32.mxu0 %vm7823_vm1, %v9276_v2  ;;  %7029 = vmatpush3.msra.mxu1 %v7984_v18 }
 0x51e   :  { %7068 = vmatmul.mubr.msk.f32.vlgmr.msra.gmra.mxu0 %vm175_vm7, %v8234_v46  ;;  %7030 = vmatprep.subr.mxu1 %v9276_v2 }
 0x51f   :  { %7031 = vmatpush3.msra.mxu1 %v7992_v19  ;;  %7034 = vmatprep.mubr.msk.f32.mxu1 %vm7823_vm1, %v9276_v2 }
 0x520   :  { %7032 = vmatprep.subr.mxu1 %v9276_v2  ;;  %7081 = vmatprep.subr.mxu0 %v9276_v2 }
 0x521   :  { %7033 = vmatpush3.msra.mxu1 %v7995_v20  ;;  %7082 = vmatpush3.msk.msra.mxu0 %vm57_vm0, %v8151_v44 }
 0x522   :  { %7035 = vmatmul.mubr.msk.f32.vlgmr.msra.gmra.mxu1 %vm175_vm7, %v8234_v46  ;;  %7048 = vmatprep.subr.mxu1 %v9276_v2 }
 0x523   :  { %7049 = vmatpush3.msra.mxu1 %v8076_v49  ;;  %7056 = vmatprep.mubr.msk.f32.mxu1 %vm7823_vm1, %v9276_v2 }
 0x524   :  { %7050 = vmatprep.subr.mxu1 %v9276_v2  ;;  %7083 = vmatprep.mubr.msk.f32.mxu0 %vm7823_vm1, %v9276_v2 }
 0x525   :  { %7051 = vmatpush3.msra.mxu1 %v8087_v51  ;;  %7091 = vmatprep.subr.mxu0 %v9276_v2 }
 0x526   :  { %7052 = vmatprep.subr.mxu1 %v9276_v2 }
 0x527   :  { %7053 = vmatpush3.msra.mxu1 %v8096_v52 }
 0x528   :  { %7054 = vmatprep.subr.mxu1 %v9276_v2 }
 0x529   :  { %7055 = vmatpush3.msra.mxu1 %v8107_v54 }
 0x52a   :  { %7057 = vmatmul.mubr.msk.f32.vlgmr.msra.gmra.mxu1 %vm175_vm7, %v8234_v46  ;;  %7070 = vmatprep.subr.mxu1 %v9276_v2 }
 0x52b   :  { %7071 = vmatpush3.msra.mxu1 %v8214_v45  ;;  %7078 = vmatprep.mubr.msk.f32.mxu1 %vm7823_vm1, %v9276_v2 }
 0x52c   :  { %7072 = vmatprep.subr.mxu1 %v9276_v2 }
 0x52d   :  { %7073 = vmatpush3.msra.mxu1 %v8243_v0 }
 0x52e   :  { %7074 = vmatprep.subr.mxu1 %v9276_v2 }
 0x52f   :  { %7075 = vmatpush3.msra.mxu1 %v8245_v1 }
 0x530   :  { %7076 = vmatprep.subr.mxu1 %v9276_v2 }
 0x531   :  { %7077 = vmatpush3.msra.mxu1 %v8254_v4 }
 0x532   :  { %7079 = vmatmul.mubr.msk.f32.vlgmr.msra.gmra.mxu1 %vm175_vm7, %v8234_v46  ;;  %7086 = vmatprep.subr.mxu1 %v9276_v2 }
 0x533   :  { %7087 = vmatpush3.msk.msra.mxu1 %vm57_vm0, %v8200_v43  ;;  %7088 = vmatprep.mubr.msk.f32.mxu1 %vm7823_vm1, %v9276_v2 }
 0x534   :  { %7096 = vmatprep.subr.mxu1 %v9276_v2 }
 0x55d   :  { %v8345_v57 = vpop.f32.mrf.mxu0 }
 0x55f   :  { %v6988_v58 = vpop.f32.mrf.mxu0 }
 0x561   :  { %v1162_v60 = vpop.f32.mrf.mxu0 }
 0x562   :  { %v8349_v61 = vadd.f32 %v1162_v60, %v914_v59 }
 0x563   :  { %v7004_v62 = vpop.f32.mrf.mxu0 }
 0x565   :  { %v8351_v63 = vpop.f32.mrf.mxu0 }
 0x567   :  { %v7009_v3 = vpop.f32.mrf.mxu0 }
 0x5cc   :  { %v1412_v7 = vpop.f32.mrf.mxu0 }
 0x5cd   :  { %v1557_v8 = vrot.slane %v1412_v7, 6  ;;  %v1558_v11 = vrot.slane %v1412_v7, 7 }
 0x5ce   :  { %v7025_v12 = vpop.f32.mrf.mxu0 }
 0x5cf   :  { %v1561_v21 = vadd.f32 %v1557_v8, %v8029_v30  ;;  %v1562_v22 = vadd.f32 %v1558_v11, %v8031_v31 }
 0x5d1   :  { %v6489_v23 = vmul.f32 -1.442695, %v1561_v21  ;;  %v6490_v29 = vmul.f32 -1.442695, %v1562_v22 }
 0x5d3   :  { %7604 = vpow2.f32 %v6489_v23 }
 0x5d4   :  { %7606 = vpow2.f32 %v6490_v29  ;;  %v1552_v6 = vpop.f32.mrf.mxu0 }
 0x5d5   :  { %v1553_v7 = vadd.f32 %v1552_v6, %v8035_v41 }
 0x5d6   :  { %v8355_v38 = vpop.f32.mrf.mxu1  ;;  %v7047_v39 = vpop.f32.mrf.mxu0 }
 0x5d7   :  { %v1599_v11 = vrot.slane %v1553_v7, 6  ;;  %v1600_v21 = vrot.slane %v1553_v7, 7  ;;  %v169_v7 = vrot.slane %v8333_v50, %v7952_v10 }
 0x5d8   :  { %v6999_v42 = vpop.f32.mrf.mxu1 }
 0x5da   :  { %v8357_v32 = vpop.f32.mrf.mxu1 }
 0x5dc   :  { %v7014_v35 = vpop.f32.mrf.mxu1 }
 0x5de   :  { %v8359_v36 = vpop.f32.mrf.mxu0 }
 0x5e0   :  { %v7605_v40 = vpop.eup %7604  ;;  %v7069_v46 = vpop.f32.mrf.mxu0 }
 0x5e1   :  { %v7607_v55 = vpop.eup %7606  ;;  %v1569_v58 = vadd.f32 1.0, %v7605_v40 }
 0x5e2   :  { %v1570_v59 = vadd.f32 1.0, %v7607_v55  ;;  %v1482_v60 = vpop.f32.mrf.mxu1 }
 0x5e3   :  { %7608 = vrcp.f32 %v1569_v58  ;;  %v1576_v35 = vrot.slane %v1482_v60, 6  ;;  %v1577_v40 = vrot.slane %v1482_v60, 7  ;;  %v174_v60 = vrot.slane %v8338_v47, %v7952_v10 }
 0x5e4   :  { %7610 = vrcp.f32 %v1570_v59  ;;  %v7036_v62 = vpop.f32.mrf.mxu1  ;;  %v6484_v10 = vmul.f32 -1.442695, %v8349_v61 }
 0x5ea   :  { %v8361_v3 = vpop.f32.mrf.mxu1 }
 0x5ec   :  { %v7058_v8 = vpop.f32.mrf.mxu1 }
 0x5f0   :  { %v7609_v12 = vpop.eup %7608 }
 0x5f1   :  { %v7611_v22 = vpop.eup %7610  ;;  %v1603_v23 = vmul.f32 %v7609_v12, %v1599_v11 }
 0x5f2   :  { %v8364_v29 = vpop.f32.mrf.mxu1  ;;  %v1604_v39 = vmul.f32 %v7611_v22, %v1600_v21 }
 0x5f3   :  { %1607 = vrot.lane.b32.xlu1 %v1603_v23, %s7824_s17 }
 0x5f4   :  { %v7080_v42 = vpop.f32.mrf.mxu1  ;;  %1609 = vrot.lane.b32.xlu0 %v1604_v39, %s7824_s17 }
 0x5f7   :  { %1578 = vrot.lane.b32.xlu1 %v1576_v35, %s7826_s3 }
 0x5f8   :  { %1580 = vrot.lane.b32.xlu0 %v1577_v40, %s7826_s3 }
 0x665   :  { %v1608_v6 = vpop.permute.xlu1 %1607 }
 0x666   :  { %v1610_v46 = vpop.permute.xlu0 %1609  ;;  %v1613_v55 = vadd.f32 %v1608_v6, %v8042_v53 }
 0x667   :  { %v1614_v58 = vadd.f32 %v1610_v46, %v8026_v24  ;;  %v1629_v46 = vrot.slane %v8170_v27, 7 }
 0x668   :  { %7612 = vtanh.f32 %v1613_v55 }
 0x669   :  { %7614 = vtanh.f32 %v1614_v58  ;;  %v1579_v8 = vpop.permute.xlu1 %1578  ;;  %v1630_v58 = vrot.slane %v8168_v26, 7 }
 0x66a   :  { %v1581_v11 = vpop.permute.xlu0 %1580  ;;  %v1584_v12 = vadd.f32 %v1579_v8, %v8029_v30 }
 0x66b   :  { %v1585_v21 = vadd.f32 %v1581_v11, %v8031_v31 }
 0x66c   :  { %v6491_v22 = vmul.f32 -1.442695, %v1584_v12 }
 0x66d   :  { %v6492_v23 = vmul.f32 -1.442695, %v1585_v21 }
 0x66e   :  { %7616 = vpow2.f32 %v6491_v22 }
 0x66f   :  { %7618 = vpow2.f32 %v6492_v23 }
 0x675   :  { %v7613_v59 = vpop.eup %7612 }
 0x676   :  { %v7615_v62 = vpop.eup %7614  ;;  %1621 = vrot.lane.b32.xlu1 %v7613_v59, %s7825_s0 }
 0x677   :  { %1623 = vrot.lane.b32.xlu0 %v7615_v62, %s7825_s0 }
 0x67a   :  { %933 = vrot.lane.b32.xlu1 %v8343_v56, %s7828_s19 }
 0x67b   :  { %1242 = vrot.lane.b32.xlu0 %v174_v60, %s7829_s22  ;;  %v7617_v47 = vpop.eup %7616 }
 0x67c   :  { %v7619_v39 = vpop.eup %7618  ;;  %v1592_v42 = vadd.f32 1.0, %v7617_v47 }
 0x67d   :  { %v1593_v35 = vadd.f32 1.0, %v7619_v39 }
 0x67e   :  { %1018 = vrot.lane.b32.xlu1 %v169_v7, %s7829_s22  ;;  %7620 = vrcp.f32 %v1592_v42 }
 0x67f   :  { %7622 = vrcp.f32 %v1593_v35 }
 0x680   :  { %7624 = vpow2.f32 %v6484_v10 }
 0x68b   :  { %v7621_v50 = vpop.eup %7620 }
 0x68c   :  { %v7623_v40 = vpop.eup %7622  ;;  %v1617_v6 = vsub.f32 1.0, %v7621_v50  ;;  %v1633_v60 = vmul.f32 %v7621_v50, %v1629_v46 }
 0x68d   :  { %v1618_v55 = vsub.f32 1.0, %v7623_v40  ;;  %v7625_v8 = vpop.eup %7624  ;;  %v1634_v11 = vmul.f32 %v7623_v40, %v1630_v58 }
 0x68e   :  { %v1321_v23 = vadd.f32 1.0, %v7625_v8 }
 0x690   :  { %7626 = vrcp.f32 %v1321_v23 }
 0x69d   :  { %v7627_v8 = vpop.eup %7626 }
 0x6e8   :  { %v1622_v59 = vpop.permute.xlu1 %1621 }
 0x6e9   :  { %v1624_v62 = vpop.permute.xlu0 %1623  ;;  %v1627_v7 = vmul.f32 %v1622_v59, %v1617_v6 }
 0x6ea   :  { %v1628_v12 = vmul.f32 %v1624_v62, %v1618_v55 }
 0x6eb   :  { %v8387_v21 = vadd.f32 %v1633_v60, %v1627_v7 }
 0x6ec   :  { %v8389_v22 = vadd.f32 %v1634_v11, %v1628_v12  ;;  %v8391_v61 = vpop.permute.xlu1 %933 }
 0x6ed   :  { %v1003_v27 = vadd.f32 %v8345_v57, %v8391_v61  ;;  %v2117_v47 = vrot.slane %v8387_v21, 2  ;;  %v1645_v39 = vrot.slane %v8387_v21, %v8051_v37 }
 0x6ee   :  { %v1653_v26 = vrot.slane %v8389_v22, %v8051_v37  ;;  %v2118_v42 = vrot.slane %v8389_v22, 1 }
 0x6ef   :  { %v1324_v35 = vadd.f32 %v8351_v63, %v1003_v27  ;;  %v1646_v6 = vcombine.high %v1645_v39, %v1645_v39  ;;  %v8410_v63 = vpop.permute.xlu0 %1242 }
 0x6f0   :  { %v1654_v10 = vcombine.high %v1653_v26, %v1653_v26  ;;  %v2119_v50 = vsel %vm515_vm3, %v2118_v42, %v2117_v47  ;;  %v8412_v62 = vpop.permute.xlu1 %1018  ;;  %v1314_v60 = vadd.f32 %v8357_v32, %v8410_v63  ;;  %v8447_v32 = vld [vmem:[%s9265_s2 + $0x10] sm:$0xff] }
 0x6f1   :  { %v6485_v40 = vmul.f32 -1.442695, %v1324_v35  ;;  %2120 = vrot.lane.b32.xlu0 %v2119_v50, %s7825_s0  ;;  %v1088_v7 = vadd.f32 %v8355_v38, %v8412_v62  ;;  %v8436_v38 = vld [vmem:[%s9265_s2 + $0x18] sm:$0xff]  ;;  %v8456_v50 = vld [vmem:[%s9265_s2 + $0x8] sm:$0xff] }
 0x6f2   :  { %v1657_v57 = vrot.slane %v1654_v10, 7  ;;  %v1331_v11 = vmul.f32 %v7627_v8, %v1314_v60 }
 0x6f3   :  { %7628 = vpow2.f32 %v6485_v40  ;;  %v8465_v40 = vld [vmem:[%s9265_s2] sm:$0xff] }
 0x6f4   :  { %v1658_v46 = vsel %vm515_vm3, %v1657_v57, %v1646_v6  ;;  %v1332_v27 = vadd.f32 %v1331_v11, %v1088_v7 }
 0x6f5   :  { %v1659_v55 = vsel %vm517_vm4, %v1657_v57, %v1658_v46 }
 0x6f6   :  { %v1660_v58 = vsel %vm519_vm5, %v1657_v57, %v1659_v55 }
 0x6f7   :  { %v8408_v59 = vsel %vm521_vm6, %v1657_v57, %v1660_v58  ;;  %v1804_v58 = vadd.f32 %v8359_v36, %v8391_v61 }
 0x6f8   :  { %9280 = vst [vmem:[#allocation4_spill] sm:$0xff] %v8408_v59 }
 0x700   :  { %v7629_v12 = vpop.eup %7628 }
 0x701   :  { %v1328_v23 = vadd.f32 1.0, %v7629_v12 }
 0x703   :  { %7630 = vrcp.f32 %v1328_v23 }
 0x704   :  { %7632 = vtanh.f32 %v1332_v27 }
 0x710   :  { %v7631_v47 = vpop.eup %7630 }
 0x711   :  { %v1334_v26 = vsub.f32 1.0, %v7631_v47  ;;  %v7633_v39 = vpop.eup %7632  ;;  %v1336_v35 = vmul.f32 0.0, %v7631_v47 }
 0x713   :  { %v1335_v42 = vmul.f32 %v7633_v39, %v1334_v26  ;;  %v1874_v26 = vadd.f32 %v8364_v29, %v8412_v62 }
 0x715   :  { %v8418_v10 = vadd.f32 %v1336_v35, %v1335_v42 }
 0x717   :  { %7084 = vmatmul.mubr.msk.f32.vlgmr.msra.gmra.mxu0 %vm50_vm2, %v8418_v10  ;;  %7089 = vmatmul.mubr.msk.f32.vlgmr.msra.gmra.mxu1 %vm50_vm2, %v8418_v10  ;;  %1339 = vst.msk [vmem:[%s9274_s10] sm:$0x3] %vm1338_vm8, %v8418_v10 }
 0x718   :  { %7092 = vmatpush3.msk.msra.mxu0 %vm57_vm0, %v8262_v5  ;;  %7093 = vmatprep.mubr.msk.f32.mxu0 %vm7823_vm1, %v9276_v2 }
 0x719   :  { %7107 = vmatprep.subr.mxu0 %v9276_v2  ;;  %7097 = vmatpush3.msra.mxu1 %v8436_v38 }
 0x71a   :  { %7098 = vmatprep.subr.mxu1 %v9276_v2  ;;  %7104 = vmatprep.mubr.msk.f32.mxu1 %vm7823_vm1, %v9276_v2 }
 0x71b   :  { %7094 = vmatmul.mubr.msk.f32.vlgmr.msra.gmra.mxu0 %vm50_vm2, %v8418_v10  ;;  %7099 = vmatpush3.msra.mxu1 %v8447_v32 }
 0x71c   :  { %7108 = vmatpush3.msra.mxu0 %v7982_v17  ;;  %7100 = vmatprep.subr.mxu1 %v9276_v2 }
 0x71d   :  { %7109 = vmatprep.subr.mxu0 %v9276_v2  ;;  %7101 = vmatpush3.msra.mxu1 %v8456_v50 }
 0x71e   :  { %7110 = vmatpush3.msra.mxu0 %v7984_v18  ;;  %7102 = vmatprep.subr.mxu1 %v9276_v2 }
 0x71f   :  { %7111 = vmatprep.subr.mxu0 %v9276_v2  ;;  %7103 = vmatpush3.msra.mxu1 %v8465_v40 }
 0x720   :  { %7112 = vmatpush3.msra.mxu0 %v7992_v19  ;;  %7115 = vmatprep.mubr.msk.f32.mxu0 %vm7823_vm1, %v9276_v2 }
 0x721   :  { %7113 = vmatprep.subr.mxu0 %v9276_v2  ;;  %7118 = vmatprep.subr.mxu1 %v9276_v2 }
 0x722   :  { %7114 = vmatpush3.msra.mxu0 %v7995_v20 }
 0x723   :  { %7129 = vmatprep.subr.mxu0 %v9276_v2 }
 0x763   :  { %v2121_v57 = vpop.permute.xlu0 %2120 }
 0x764   :  { %7105 = vmatmul.mubr.msk.f32.vlgmr.msra.gmra.mxu1 %vm175_vm7, %v2121_v57  ;;  %7116 = vmatmul.mubr.msk.f32.vlgmr.msra.gmra.mxu0 %vm175_vm7, %v2121_v57 }
 0x765   :  { %7119 = vmatpush3.msra.mxu1 %v7968_v13  ;;  %7130 = vmatpush3.msra.mxu0 %v8076_v49  ;;  %v1734_v49 = vadd.f32 %v8361_v3, %v8343_v56 }
 0x766   :  { %7120 = vmatprep.subr.mxu1 %v9276_v2  ;;  %7131 = vmatprep.subr.mxu0 %v9276_v2 }
 0x767   :  { %7121 = vmatpush3.msra.mxu1 %v7974_v15  ;;  %7132 = vmatpush3.msra.mxu0 %v8087_v51 }
 0x768   :  { %7122 = vmatprep.subr.mxu1 %v9276_v2  ;;  %7133 = vmatprep.subr.mxu0 %v9276_v2 }
 0x769   :  { %7123 = vmatpush3.msra.mxu1 %v7970_v14  ;;  %7134 = vmatpush3.msra.mxu0 %v8096_v52 }
 0x76a   :  { %7124 = vmatprep.subr.mxu1 %v9276_v2  ;;  %7135 = vmatprep.subr.mxu0 %v9276_v2 }
 0x76b   :  { %7125 = vmatpush3.msra.mxu1 %v7976_v16  ;;  %7126 = vmatprep.mubr.msk.f32.mxu1 %vm7823_vm1, %v9276_v2 }
 0x76c   :  { %7136 = vmatpush3.msra.mxu0 %v8107_v54  ;;  %7137 = vmatprep.mubr.msk.f32.mxu0 %vm7823_vm1, %v9276_v2 }
 0x76d   :  { %7127 = vmatmul.mubr.msk.f32.vlgmr.msra.gmra.mxu1 %vm175_vm7, %v2121_v57  ;;  %7138 = vmatmul.mubr.msk.f32.vlgmr.msra.gmra.mxu0 %vm175_vm7, %v2121_v57 }
 0x76e   :  { %7140 = vmatprep.subr.mxu1 %v9276_v2  ;;  %7151 = vmatprep.subr.mxu0 %v9276_v2 }
 0x76f   :  { %7141 = vmatpush3.msra.mxu1 %v8172_v28  ;;  %7152 = vmatpush3.msra.mxu0 %v8214_v45 }
 0x770   :  { %7142 = vmatprep.subr.mxu1 %v9276_v2  ;;  %7153 = vmatprep.subr.mxu0 %v9276_v2 }
 0x771   :  { %7143 = vmatpush3.msra.mxu1 %v8166_v25  ;;  %7154 = vmatpush3.msra.mxu0 %v8243_v0 }
 0x772   :  { %7144 = vmatprep.subr.mxu1 %v9276_v2  ;;  %7155 = vmatprep.subr.mxu0 %v9276_v2 }
 0x773   :  { %7145 = vmatpush3.msra.mxu1 %v8186_v33  ;;  %7156 = vmatpush3.msra.mxu0 %v8245_v1 }
 0x774   :  { %7146 = vmatprep.subr.mxu1 %v9276_v2  ;;  %7157 = vmatprep.subr.mxu0 %v9276_v2 }
 0x775   :  { %7147 = vmatpush3.msra.mxu1 %v8188_v34  ;;  %7148 = vmatprep.mubr.msk.f32.mxu1 %vm7823_vm1, %v9276_v2 }
 0x776   :  { %7158 = vmatpush3.msra.mxu0 %v8254_v4  ;;  %7159 = vmatprep.mubr.msk.f32.mxu0 %vm7823_vm1, %v9276_v2 }
 0x777   :  { %7149 = vmatmul.mubr.msk.f32.vlgmr.msra.gmra.mxu1 %vm175_vm7, %v2121_v57  ;;  %7160 = vmatmul.mubr.msk.f32.vlgmr.msra.gmra.mxu0 %vm175_vm7, %v2121_v57 }
 0x778   :  { %7167 = vmatprep.subr.mxu0 %v9276_v2  ;;  %7162 = vmatprep.subr.mxu1 %v9276_v2 }
 0x779   :  { %7168 = vmatpush3.msk.msra.mxu0 %vm57_vm0, %v8200_v43  ;;  %7163 = vmatpush3.msk.msra.mxu1 %vm57_vm0, %v8151_v44 }
 0x77a   :  { %7164 = vmatprep.mubr.msk.f32.mxu1 %vm7823_vm1, %v9276_v2  ;;  %7169 = vmatprep.mubr.msk.f32.mxu0 %vm7823_vm1, %v9276_v2 }
 0x77b   :  { %7172 = vmatprep.subr.mxu1 %v9276_v2  ;;  %7177 = vmatprep.subr.mxu0 %v9276_v2 }
 0x7d7   :  { %v1946_v51 = vpop.f32.mrf.mxu0  ;;  %v2016_v52 = vpop.f32.mrf.mxu1 }
 0x7d8   :  { %v2090_v54 = vadd.f32 %v1946_v51, %v1734_v49  ;;  %v2097_v7 = vadd.f32 %v2016_v52, %v1804_v58 }
 0x7d9   :  { %v7085_v6 = vpop.f32.mrf.mxu0  ;;  %v7090_v46 = vpop.f32.mrf.mxu1 }
 0x7da   :  { %v6502_v55 = vmul.f32 -1.442695, %v2090_v54  ;;  %v6503_v8 = vmul.f32 -1.442695, %v2097_v7 }
 0x7db   :  { %v2086_v44 = vpop.f32.mrf.mxu0 }
 0x7dc   :  { %7634 = vpow2.f32 %v6502_v55  ;;  %v2087_v27 = vadd.f32 %v2086_v44, %v8410_v63 }
 0x7dd   :  { %v7095_v60 = vpop.f32.mrf.mxu0  ;;  %7636 = vpow2.f32 %v6503_v8 }
 0x7e9   :  { %v7635_v11 = vpop.eup %7634 }
 0x7ea   :  { %v2094_v12 = vadd.f32 1.0, %v7635_v11  ;;  %v7637_v23 = vpop.eup %7636 }
 0x7eb   :  { %v2101_v3 = vadd.f32 1.0, %v7637_v23 }
 0x7ec   :  { %7638 = vrcp.f32 %v2094_v12 }
 0x7ed   :  { %7640 = vrcp.f32 %v2101_v3 }
 0x7f9   :  { %v7639_v47 = vpop.eup %7638 }
 0x7fa   :  { %v2104_v39 = vmul.f32 %v7639_v47, %v2087_v27  ;;  %v7641_v36 = vpop.eup %7640 }
 0x7fb   :  { %v2107_v35 = vsub.f32 1.0, %v7641_v36  ;;  %v2109_v51 = vmul.f32 %v7641_v36, %v8418_v10 }
 0x7fc   :  { %v2105_v42 = vadd.f32 %v2104_v39, %v1874_v26 }
 0x7fe   :  { %7642 = vtanh.f32 %v2105_v42 }
 0x80b   :  { %v7643_v57 = vpop.eup %7642 }
 0x80c   :  { %v2108_v49 = vmul.f32 %v7643_v57, %v2107_v35 }
 0x80e   :  { %v8539_v52 = vadd.f32 %v2109_v51, %v2108_v49 }
 0x810   :  { %7165 = vmatmul.mubr.msk.f32.vlgmr.msra.gmra.mxu1 %vm50_vm2, %v8539_v52  ;;  %7170 = vmatmul.mubr.msk.f32.vlgmr.msra.gmra.mxu0 %vm50_vm2, %v8539_v52 }
 0x811   :  { %7173 = vmatpush3.msk.msra.mxu1 %vm57_vm0, %v8262_v5  ;;  %7174 = vmatprep.mubr.msk.f32.mxu1 %vm7823_vm1, %v9276_v2 }
 0x812   :  { %7188 = vmatprep.subr.mxu1 %v9276_v2  ;;  %7178 = vmatpush3.msra.mxu0 %v8436_v38 }
 0x813   :  { %7179 = vmatprep.subr.mxu0 %v9276_v2  ;;  %7185 = vmatprep.mubr.msk.f32.mxu0 %vm7823_vm1, %v9276_v2 }
 0x814   :  { %7175 = vmatmul.mubr.msk.f32.vlgmr.msra.gmra.mxu1 %vm50_vm2, %v8539_v52  ;;  %7180 = vmatpush3.msra.mxu0 %v8447_v32 }
 0x815   :  { %7189 = vmatpush3.msra.mxu1 %v7982_v17  ;;  %7181 = vmatprep.subr.mxu0 %v9276_v2 }
 0x816   :  { %7190 = vmatprep.subr.mxu1 %v9276_v2  ;;  %7182 = vmatpush3.msra.mxu0 %v8456_v50 }
 0x817   :  { %7191 = vmatpush3.msra.mxu1 %v7984_v18  ;;  %7183 = vmatprep.subr.mxu0 %v9276_v2 }
 0x818   :  { %7192 = vmatprep.subr.mxu1 %v9276_v2  ;;  %7184 = vmatpush3.msra.mxu0 %v8465_v40 }
 0x819   :  { %7193 = vmatpush3.msra.mxu1 %v7992_v19  ;;  %7196 = vmatprep.mubr.msk.f32.mxu1 %vm7823_vm1, %v9276_v2 }
 0x81a   :  { %7194 = vmatprep.subr.mxu1 %v9276_v2  ;;  %7199 = vmatprep.subr.mxu0 %v9276_v2 }
 0x81b   :  { %7195 = vmatpush3.msra.mxu1 %v7995_v20 }
 0x81c   :  { %7210 = vmatprep.subr.mxu1 %v9276_v2 }
 0x824   :  { %v2190_v29 = vpop.f32.mrf.mxu1  ;;  %v2260_v10 = vpop.f32.mrf.mxu0 }
 0x825   :  { %v2335_v54 = vrot.slane %v2190_v29, 5  ;;  %v2336_v6 = vrot.slane %v2190_v29, 6 }
 0x826   :  { %v7106_v46 = vpop.f32.mrf.mxu1  ;;  %v7117_v55 = vpop.f32.mrf.mxu0 }
 0x827   :  { %v2339_v44 = vadd.f32 %v2335_v54, %v8029_v30  ;;  %v2340_v58 = vadd.f32 %v2336_v6, %v8031_v31  ;;  %v2354_v55 = vrot.slane %v2260_v10, 5 }
 0x829   :  { %v6507_v60 = vmul.f32 -1.442695, %v2339_v44  ;;  %v6508_v7 = vmul.f32 -1.442695, %v2340_v58  ;;  %v2355_v44 = vrot.slane %v2260_v10, 6 }
 0x82b   :  { %7644 = vpow2.f32 %v6507_v60 }
 0x82c   :  { %7646 = vpow2.f32 %v6508_v7 }
 0x82d   :  { %v2330_v8 = vpop.f32.mrf.mxu1  ;;  %v2511_v11 = vpop.f32.mrf.mxu0 }
 0x82e   :  { %v2331_v57 = vadd.f32 %v2330_v8, %v8035_v41 }
 0x82f   :  { %v7128_v12 = vpop.f32.mrf.mxu1  ;;  %v7139_v23 = vpop.f32.mrf.mxu0 }
 0x830   :  { %v2377_v49 = vrot.slane %v2331_v57, 5  ;;  %v2378_v29 = vrot.slane %v2331_v57, 6 }
 0x837   :  { %v2581_v3 = vpop.f32.mrf.mxu1  ;;  %v2651_v27 = vpop.f32.mrf.mxu0 }
 0x838   :  { %v7645_v47 = vpop.eup %7644  ;;  %v2582_v10 = vadd.f32 %v2581_v3, %v8391_v61 }
 0x839   :  { %v7647_v26 = vpop.eup %7646  ;;  %v2347_v39 = vadd.f32 1.0, %v7645_v47  ;;  %v7150_v42 = vpop.f32.mrf.mxu1  ;;  %v2512_v47 = vadd.f32 %v2511_v11, %v8343_v56 }
 0x83a   :  { %v7161_v36 = vpop.f32.mrf.mxu0  ;;  %v2348_v35 = vadd.f32 1.0, %v7647_v26 }
 0x83b   :  { %7648 = vrcp.f32 %v2347_v39 }
 0x83c   :  { %7650 = vrcp.f32 %v2348_v35 }
 0x848   :  { %v7649_v51 = vpop.eup %7648 }
 0x849   :  { %v7651_v54 = vpop.eup %7650  ;;  %v2381_v6 = vmul.f32 %v7649_v51, %v2377_v49 }
 0x84a   :  { %v2382_v46 = vmul.f32 %v7651_v54, %v2378_v29 }
 0x84b   :  { %2385 = vrot.lane.b32.xlu1 %v2381_v6, %s7824_s17 }
 0x84c   :  { %2387 = vrot.lane.b32.xlu0 %v2382_v46, %s7824_s17 }
 0x84f   :  { %2356 = vrot.lane.b32.xlu1 %v2354_v55, %s7826_s3 }
 0x850   :  { %2358 = vrot.lane.b32.xlu0 %v2355_v44, %s7826_s3 }
 0x8bd   :  { %v2386_v58 = vpop.permute.xlu1 %2385 }
 0x8be   :  { %v2388_v60 = vpop.permute.xlu0 %2387  ;;  %v2391_v7 = vadd.f32 %v2386_v58, %v8042_v53  ;;  %v2652_v58 = vadd.f32 %v2651_v27, %v8412_v62 }
 0x8bf   :  { %v2392_v8 = vadd.f32 %v2388_v60, %v8026_v24 }
 0x8c0   :  { %7652 = vtanh.f32 %v2391_v7 }
 0x8c1   :  { %7654 = vtanh.f32 %v2392_v8 }
 0x8cd   :  { %v7653_v12 = vpop.eup %7652 }
 0x8ce   :  { %v7655_v23 = vpop.eup %7654  ;;  %2399 = vrot.lane.b32.xlu1 %v7653_v12, %s7825_s0 }
 0x8cf   :  { %2401 = vrot.lane.b32.xlu0 %v7655_v23, %s7825_s0 }
 0x8d0   :  { %v2723_v26 = vpop.f32.mrf.mxu1  ;;  %v2793_v39 = vpop.f32.mrf.mxu0 }
 0x8d1   :  { %v2867_v42 = vadd.f32 %v2723_v26, %v2512_v47  ;;  %v2874_v36 = vadd.f32 %v2793_v39, %v2582_v10  ;;  %v2357_v39 = vpop.permute.xlu1 %2356 }
 0x8d2   :  { %v7166_v35 = vpop.f32.mrf.mxu1  ;;  %v7171_v57 = vpop.f32.mrf.mxu0 }
 0x8d3   :  { %v6520_v49 = vmul.f32 -1.442695, %v2867_v42  ;;  %v6521_v54 = vmul.f32 -1.442695, %v2874_v36  ;;  %v2359_v42 = vpop.permute.xlu0 %2358  ;;  %v2362_v36 = vadd.f32 %v2357_v39, %v8029_v30 }
 0x8d4   :  { %v2863_v51 = vpop.f32.mrf.mxu1  ;;  %v2363_v35 = vadd.f32 %v2359_v42, %v8031_v31 }
 0x8d5   :  { %7656 = vpow2.f32 %v6520_v49  ;;  %v2864_v3 = vadd.f32 %v2863_v51, %v8410_v63  ;;  %v6509_v57 = vmul.f32 -1.442695, %v2362_v36 }
 0x8d6   :  { %v7176_v29 = vpop.f32.mrf.mxu1  ;;  %7658 = vpow2.f32 %v6521_v54  ;;  %v6510_v27 = vmul.f32 -1.442695, %v2363_v35 }
 0x8e2   :  { %v7657_v6 = vpop.eup %7656 }
 0x8e3   :  { %v2871_v46 = vadd.f32 1.0, %v7657_v6  ;;  %v7659_v11 = vpop.eup %7658 }
 0x8e4   :  { %v2878_v55 = vadd.f32 1.0, %v7659_v11 }
 0x8e5   :  { %7660 = vrcp.f32 %v2871_v46 }
 0x8e6   :  { %7662 = vrcp.f32 %v2878_v55  ;;  %v2407_v55 = vrot.slane %v8387_v21, 7 }
 0x8f2   :  { %v7661_v44 = vpop.eup %7660 }
 0x8f3   :  { %v2881_v60 = vmul.f32 %v7661_v44, %v2864_v3  ;;  %v7663_v8 = vpop.eup %7662  ;;  %v2408_v44 = vrot.slane %v8389_v22, 7 }
 0x8f4   :  { %v2884_v12 = vsub.f32 1.0, %v7663_v8  ;;  %v2886_v10 = vmul.f32 %v7663_v8, %v8539_v52 }
 0x8f5   :  { %v2882_v7 = vadd.f32 %v2881_v60, %v2652_v58 }
 0x8f7   :  { %7664 = vtanh.f32 %v2882_v7 }
 0x8f8   :  { %7666 = vpow2.f32 %v6509_v57 }
 0x8f9   :  { %7668 = vpow2.f32 %v6510_v27 }
 0x904   :  { %v7665_v23 = vpop.eup %7664 }
 0x905   :  { %v2885_v47 = vmul.f32 %v7665_v23, %v2884_v12  ;;  %v7667_v49 = vpop.eup %7666 }
 0x906   :  { %v7669_v51 = vpop.eup %7668  ;;  %v2370_v29 = vadd.f32 1.0, %v7667_v49 }
 0x907   :  { %v8588_v26 = vadd.f32 %v2886_v10, %v2885_v47  ;;  %v2371_v54 = vadd.f32 1.0, %v7669_v51 }
 0x908   :  { %7670 = vrcp.f32 %v2370_v29 }
 0x909   :  { %7672 = vrcp.f32 %v2371_v54 }
 0x915   :  { %v7671_v6 = vpop.eup %7670 }
 0x916   :  { %v7673_v46 = vpop.eup %7672  ;;  %v2395_v11 = vsub.f32 1.0, %v7671_v6  ;;  %v2411_v7 = vmul.f32 %v7671_v6, %v2407_v55  ;;  %v8636_v55 = vld [vmem:[%s9270_s5 + $0x8] sm:$0xff] }
 0x917   :  { %v2396_v3 = vsub.f32 1.0, %v7673_v46  ;;  %v2412_v12 = vmul.f32 %v7673_v46, %v2408_v44  ;;  %v8618_v46 = vld [vmem:[%s9270_s5 + $0x18] sm:$0xff]  ;;  %v8683_v44 = vld [vmem:[%s9271_s6] sm:$0xf] }
 0x940   :  { %v2400_v58 = vpop.permute.xlu1 %2399 }
 0x941   :  { %v2402_v60 = vpop.permute.xlu0 %2401  ;;  %v2405_v8 = vmul.f32 %v2400_v58, %v2395_v11  ;;  %v8627_v11 = vld [vmem:[%s9270_s5 + $0x10] sm:$0xff] }
 0x942   :  { %v2406_v23 = vmul.f32 %v2402_v60, %v2396_v3  ;;  %v8647_v3 = vld [vmem:[%s9270_s5] sm:$0xff] }
 0x943   :  { %v8594_v47 = vadd.f32 %v2411_v7, %v2405_v8 }
 0x944   :  { %v8596_v10 = vadd.f32 %v2412_v12, %v2406_v23 }
 0x945   :  { %v2423_v39 = vrot.slane %v8594_v47, %v8051_v37  ;;  %v2894_v42 = vrot.slane %v8594_v47, 3 }
 0x946   :  { %v2431_v21 = vrot.slane %v8596_v10, %v8051_v37  ;;  %v2895_v22 = vrot.slane %v8596_v10, 2 }
 0x947   :  { %v2424_v36 = vcombine.high %v2423_v39, %v2423_v39 }
 0x948   :  { %v2896_v35 = vsel %vm515_vm3, %v2895_v22, %v2894_v42  ;;  %v2432_v57 = vcombine.high %v2431_v21, %v2431_v21 }
 0x949   :  { %v2433_v27 = vrot.slane %v2424_v36, 1  ;;  %2897 = vrot.lane.b32.xlu1 %v2896_v35, %s7825_s0 }
 0x94b   :  { %v2436_v49 = vsel %vm515_vm3, %v2432_v57, %v2433_v27 }
 0x94c   :  { %v2437_v51 = vsel %vm517_vm4, %v2432_v57, %v2436_v49 }
 0x94d   :  { %v2438_v29 = vsel %vm519_vm5, %v2432_v57, %v2437_v51 }
 0x94e   :  { %v8610_v54 = vsel %vm521_vm6, %v2432_v57, %v2438_v29 }
 0x94f   :  { %9281 = vst [vmem:[#allocation5_spill] sm:$0xff] %v8610_v54 }
 0x9bb   :  { %v2898_v6 = vpop.permute.xlu1 %2897 }
 0x9bc   :  { %7186 = vmatmul.mubr.msk.f32.vlgmr.msra.gmra.mxu0 %vm175_vm7, %v2898_v6  ;;  %7197 = vmatmul.mubr.msk.f32.vlgmr.msra.gmra.mxu1 %vm175_vm7, %v2898_v6 }
 0x9bd   :  { %7200 = vmatpush3.msra.mxu0 %v7968_v13  ;;  %7211 = vmatpush3.msra.mxu1 %v8618_v46 }
 0x9be   :  { %7201 = vmatprep.subr.mxu0 %v9276_v2  ;;  %7212 = vmatprep.subr.mxu1 %v9276_v2 }
 0x9bf   :  { %7202 = vmatpush3.msra.mxu0 %v7974_v15  ;;  %7213 = vmatpush3.msra.mxu1 %v8627_v11 }
 0x9c0   :  { %7203 = vmatprep.subr.mxu0 %v9276_v2  ;;  %7214 = vmatprep.subr.mxu1 %v9276_v2 }
 0x9c1   :  { %7204 = vmatpush3.msra.mxu0 %v7970_v14  ;;  %7215 = vmatpush3.msra.mxu1 %v8636_v55 }
 0x9c2   :  { %7205 = vmatprep.subr.mxu0 %v9276_v2  ;;  %7216 = vmatprep.subr.mxu1 %v9276_v2 }
 0x9c3   :  { %7206 = vmatpush3.msra.mxu0 %v7976_v16  ;;  %7207 = vmatprep.mubr.msk.f32.mxu0 %vm7823_vm1, %v9276_v2 }
 0x9c4   :  { %7217 = vmatpush3.msra.mxu1 %v8647_v3  ;;  %7218 = vmatprep.mubr.msk.f32.mxu1 %vm7823_vm1, %v9276_v2 }
 0x9c5   :  { %7208 = vmatmul.mubr.msk.f32.vlgmr.msra.gmra.mxu0 %vm175_vm7, %v2898_v6  ;;  %7219 = vmatmul.mubr.msk.f32.vlgmr.msra.gmra.mxu1 %vm175_vm7, %v2898_v6 }
 0x9c6   :  { %7221 = vmatprep.subr.mxu0 %v9276_v2  ;;  %7232 = vmatprep.subr.mxu1 %v9276_v2 }
 0x9c7   :  { %7222 = vmatpush3.msra.mxu0 %v8172_v28  ;;  %7233 = vmatpush3.msra.mxu1 %v8214_v45 }
 0x9c8   :  { %7223 = vmatprep.subr.mxu0 %v9276_v2  ;;  %7234 = vmatprep.subr.mxu1 %v9276_v2 }
 0x9c9   :  { %7224 = vmatpush3.msra.mxu0 %v8166_v25  ;;  %7235 = vmatpush3.msra.mxu1 %v8243_v0 }
 0x9ca   :  { %7225 = vmatprep.subr.mxu0 %v9276_v2  ;;  %7236 = vmatprep.subr.mxu1 %v9276_v2 }
 0x9cb   :  { %7226 = vmatpush3.msra.mxu0 %v8186_v33  ;;  %7237 = vmatpush3.msra.mxu1 %v8245_v1 }
 0x9cc   :  { %7227 = vmatprep.subr.mxu0 %v9276_v2  ;;  %7238 = vmatprep.subr.mxu1 %v9276_v2 }
 0x9cd   :  { %7228 = vmatpush3.msra.mxu0 %v8188_v34  ;;  %7229 = vmatprep.mubr.msk.f32.mxu0 %vm7823_vm1, %v9276_v2 }
 0x9ce   :  { %7239 = vmatpush3.msra.mxu1 %v8254_v4  ;;  %7240 = vmatprep.mubr.msk.f32.mxu1 %vm7823_vm1, %v9276_v2 }
 0x9cf   :  { %7230 = vmatmul.mubr.msk.f32.vlgmr.msra.gmra.mxu0 %vm175_vm7, %v2898_v6  ;;  %7241 = vmatmul.mubr.msk.f32.vlgmr.msra.gmra.mxu1 %vm175_vm7, %v2898_v6 }
 0x9d0   :  { %7248 = vmatprep.subr.mxu1 %v9276_v2  ;;  %7243 = vmatprep.subr.mxu0 %v9276_v2 }
 0x9d1   :  { %7249 = vmatpush3.msk.msra.mxu1 %vm57_vm0, %v8200_v43  ;;  %7244 = vmatpush3.msk.msra.mxu0 %vm57_vm0, %v8683_v44 }
 0x9d2   :  { %7245 = vmatprep.mubr.msk.f32.mxu0 %vm7823_vm1, %v9276_v2  ;;  %7250 = vmatprep.mubr.msk.f32.mxu1 %vm7823_vm1, %v9276_v2 }
 0x9d3   :  { %7253 = vmatprep.subr.mxu0 %v9276_v2  ;;  %7246 = vmatmul.mubr.msk.f32.vlgmr.msra.gmra.mxu0 %vm50_vm2, %v8588_v26 }
 0x9d4   :  { %7251 = vmatmul.mubr.msk.f32.vlgmr.msra.gmra.mxu1 %vm50_vm2, %v8588_v26  ;;  %7254 = vmatpush3.msk.msra.mxu0 %vm57_vm0, %v8262_v5 }
 0x9d5   :  { %7255 = vmatprep.mubr.msk.f32.mxu0 %vm7823_vm1, %v9276_v2  ;;  %7269 = vmatprep.subr.mxu0 %v9276_v2 }
 0x9d6   :  { %7258 = vmatprep.subr.mxu1 %v9276_v2  ;;  %7266 = vmatprep.mubr.msk.f32.mxu1 %vm7823_vm1, %v9276_v2 }
 0x9d7   :  { %7256 = vmatmul.mubr.msk.f32.vlgmr.msra.gmra.mxu0 %vm50_vm2, %v8588_v26  ;;  %7259 = vmatpush3.msra.mxu1 %v8436_v38 }
 0x9d8   :  { %7270 = vmatpush3.msra.mxu0 %v7982_v17  ;;  %7260 = vmatprep.subr.mxu1 %v9276_v2 }
 0x9d9   :  { %7271 = vmatprep.subr.mxu0 %v9276_v2  ;;  %7261 = vmatpush3.msra.mxu1 %v8447_v32 }
 0x9da   :  { %7272 = vmatpush3.msra.mxu0 %v7984_v18  ;;  %7262 = vmatprep.subr.mxu1 %v9276_v2 }
 0x9db   :  { %7273 = vmatprep.subr.mxu0 %v9276_v2  ;;  %7263 = vmatpush3.msra.mxu1 %v8456_v50 }
 0x9dc   :  { %7274 = vmatpush3.msra.mxu0 %v7992_v19  ;;  %7264 = vmatprep.subr.mxu1 %v9276_v2 }
 0x9dd   :  { %7275 = vmatprep.subr.mxu0 %v9276_v2  ;;  %7265 = vmatpush3.msra.mxu1 %v8465_v40 }
 0x9de   :  { %7276 = vmatpush3.msra.mxu0 %v7995_v20  ;;  %7277 = vmatprep.mubr.msk.f32.mxu0 %vm7823_vm1, %v9276_v2 }
 0x9df   :  { %7280 = vmatprep.subr.mxu1 %v9276_v2  ;;  %7291 = vmatprep.subr.mxu0 %v9276_v2 }
 0xa7c   :  { %v2967_v58 = vpop.f32.mrf.mxu0  ;;  %v3037_v60 = vpop.f32.mrf.mxu1 }
 0xa7d   :  { %v3112_v7 = vrot.slane %v2967_v58, 4  ;;  %v3113_v8 = vrot.slane %v2967_v58, 5 }
 0xa7e   :  { %v7187_v12 = vpop.f32.mrf.mxu0  ;;  %v7198_v23 = vpop.f32.mrf.mxu1 }
 0xa7f   :  { %v3116_v39 = vadd.f32 %v3112_v7, %v8029_v30  ;;  %v3117_v42 = vadd.f32 %v3113_v8, %v8031_v31 }
 0xa81   :  { %v6525_v21 = vmul.f32 -1.442695, %v3116_v39  ;;  %v6526_v22 = vmul.f32 -1.442695, %v3117_v42 }
 0xa83   :  { %7674 = vpow2.f32 %v6525_v21 }
 0xa84   :  { %7676 = vpow2.f32 %v6526_v22 }
 0xa85   :  { %v3107_v36 = vpop.f32.mrf.mxu0  ;;  %v3287_v35 = vpop.f32.mrf.mxu1 }
 0xa86   :  { %v3288_v7 = vadd.f32 %v3287_v35, %v8343_v56 }
 0xa87   :  { %v7209_v57 = vpop.f32.mrf.mxu0  ;;  %v7220_v27 = vpop.f32.mrf.mxu1 }
 0xa8f   :  { %v3357_v49 = vpop.f32.mrf.mxu0  ;;  %v3427_v51 = vpop.f32.mrf.mxu1 }
 0xa90   :  { %v7675_v29 = vpop.eup %7674  ;;  %v3358_v8 = vadd.f32 %v3357_v49, %v8391_v61 }
 0xa91   :  { %v7677_v6 = vpop.eup %7676  ;;  %v3124_v2 = vadd.f32 1.0, %v7675_v29  ;;  %v7231_v58 = vpop.f32.mrf.mxu0  ;;  %v3108_v29 = vadd.f32 %v3107_v36, %v8035_v41 }
 0xa92   :  { %v7242_v12 = vpop.f32.mrf.mxu1  ;;  %v3125_v23 = vadd.f32 1.0, %v7677_v6 }
 0xa93   :  { %7678 = vrcp.f32 %v3124_v2  ;;  %v3499_v39 = vpop.f32.mrf.mxu0  ;;  %v3154_v6 = vrot.slane %v3108_v29, 4  ;;  %v3155_v35 = vrot.slane %v3108_v29, 5 }
 0xa94   :  { %7680 = vrcp.f32 %v3125_v23  ;;  %v3643_v42 = vadd.f32 %v3499_v39, %v3288_v7  ;;  %v3569_v21 = vpop.f32.mrf.mxu1  ;;  %v3131_v7 = vrot.slane %v3037_v60, 4 }
 0xa95   :  { %v3650_v22 = vadd.f32 %v3569_v21, %v3358_v8  ;;  %v7247_v57 = vpop.f32.mrf.mxu0  ;;  %v3428_v21 = vadd.f32 %v3427_v51, %v8412_v62 }
 0xa96   :  { %v6538_v27 = vmul.f32 -1.442695, %v3643_v42  ;;  %v7252_v9 = vpop.f32.mrf.mxu1 }
 0xa97   :  { %v3639_v59 = vpop.f32.mrf.mxu0  ;;  %v6539_v58 = vmul.f32 -1.442695, %v3650_v22  ;;  %v3132_v9 = vrot.slane %v3037_v60, 5 }
 0xa98   :  { %7682 = vpow2.f32 %v6538_v27  ;;  %v3640_v39 = vadd.f32 %v3639_v59, %v8410_v63 }
 0xa99   :  { %v7257_v48 = vpop.f32.mrf.mxu0  ;;  %7684 = vpow2.f32 %v6539_v58 }
 0xaa0   :  { %v7679_v12 = vpop.eup %7678 }
 0xaa1   :  { %v7681_v2 = vpop.eup %7680  ;;  %v3158_v54 = vmul.f32 %v7679_v12, %v3154_v6 }
 0xaa2   :  { %v3159_v49 = vmul.f32 %v7681_v2, %v3155_v35 }
 0xaa3   :  { %3162 = vrot.lane.b32.xlu0 %v3158_v54, %s7824_s17 }
 0xaa4   :  { %3164 = vrot.lane.b32.xlu1 %v3159_v49, %s7824_s17 }
 0xaa5   :  { %v7683_v23 = vpop.eup %7682 }
 0xaa6   :  { %v3647_v8 = vadd.f32 1.0, %v7683_v23  ;;  %v7685_v48 = vpop.eup %7684 }
 0xaa7   :  { %3133 = vrot.lane.b32.xlu0 %v3131_v7, %s7826_s3  ;;  %v3654_v36 = vadd.f32 1.0, %v7685_v48 }
 0xaa8   :  { %7686 = vrcp.f32 %v3647_v8  ;;  %3135 = vrot.lane.b32.xlu1 %v3132_v9, %s7826_s3 }
 0xaa9   :  { %7688 = vrcp.f32 %v3654_v36 }
 0xab5   :  { %v7687_v42 = vpop.eup %7686 }
 0xab6   :  { %v3657_v54 = vmul.f32 %v7687_v42, %v3640_v39  ;;  %v7689_v57 = vpop.eup %7688 }
 0xab7   :  { %v3660_v27 = vsub.f32 1.0, %v7689_v57  ;;  %v3662_v58 = vmul.f32 %v7689_v57, %v8588_v26 }
 0xab8   :  { %v3658_v22 = vadd.f32 %v3657_v54, %v3428_v21 }
 0xaba   :  { %7690 = vtanh.f32 %v3658_v22 }
 0xac7   :  { %v7691_v60 = vpop.eup %7690 }
 0xac8   :  { %v3661_v29 = vmul.f32 %v7691_v60, %v3660_v27  ;;  %v3184_v60 = vrot.slane %v8594_v47, 7 }
 0xaca   :  { %v8736_v6 = vadd.f32 %v3662_v58, %v3661_v29  ;;  %v3185_v58 = vrot.slane %v8596_v10, 7 }
 0xb15   :  { %v3163_v12 = vpop.permute.xlu0 %3162 }
 0xb16   :  { %v3165_v35 = vpop.permute.xlu1 %3164  ;;  %v3168_v2 = vadd.f32 %v3163_v12, %v8042_v53 }
 0xb17   :  { %v3169_v59 = vadd.f32 %v3165_v35, %v8026_v24 }
 0xb18   :  { %7692 = vtanh.f32 %v3168_v2 }
 0xb19   :  { %7694 = vtanh.f32 %v3169_v59  ;;  %v3134_v23 = vpop.permute.xlu0 %3133 }
 0xb1a   :  { %v3136_v7 = vpop.permute.xlu1 %3135  ;;  %v3139_v9 = vadd.f32 %v3134_v23, %v8029_v30 }
 0xb1b   :  { %v3140_v8 = vadd.f32 %v3136_v7, %v8031_v31 }
 0xb1c   :  { %v6527_v48 = vmul.f32 -1.442695, %v3139_v9 }
 0xb1d   :  { %v6528_v36 = vmul.f32 -1.442695, %v3140_v8 }
 0xb1e   :  { %7696 = vpow2.f32 %v6527_v48 }
 0xb1f   :  { %7698 = vpow2.f32 %v6528_v36 }
 0xb25   :  { %v7693_v51 = vpop.eup %7692 }
 0xb26   :  { %v7695_v49 = vpop.eup %7694  ;;  %3176 = vrot.lane.b32.xlu0 %v7693_v51, %s7825_s0 }
 0xb27   :  { %3178 = vrot.lane.b32.xlu1 %v7695_v49, %s7825_s0 }
 0xb2b   :  { %v7697_v39 = vpop.eup %7696 }
 0xb2c   :  { %v7699_v42 = vpop.eup %7698  ;;  %v3147_v21 = vadd.f32 1.0, %v7697_v39 }
 0xb2d   :  { %v3148_v54 = vadd.f32 1.0, %v7699_v42 }
 0xb2e   :  { %7700 = vrcp.f32 %v3147_v21 }
 0xb2f   :  { %7702 = vrcp.f32 %v3148_v54 }
 0xb3b   :  { %v7701_v22 = vpop.eup %7700 }
 0xb3c   :  { %v7703_v57 = vpop.eup %7702  ;;  %v3172_v27 = vsub.f32 1.0, %v7701_v22  ;;  %v3188_v2 = vmul.f32 %v7701_v22, %v3184_v60  ;;  %v9282_v60 = vmov 0.0  }
 0xb3d   :  { %v3173_v29 = vsub.f32 1.0, %v7703_v57  ;;  %v3189_v51 = vmul.f32 %v7703_v57, %v3185_v58 }
 0xb98   :  { %v3177_v12 = vpop.permute.xlu0 %3176 }
 0xb99   :  { %v3179_v35 = vpop.permute.xlu1 %3178  ;;  %v3182_v59 = vmul.f32 %v3177_v12, %v3172_v27 }
 0xb9a   :  { %v3183_v49 = vmul.f32 %v3179_v35, %v3173_v29 }
 0xb9b   :  { %v8746_v23 = vadd.f32 %v3188_v2, %v3182_v59 }
 0xb9c   :  { %v8748_v7 = vadd.f32 %v3189_v51, %v3183_v49 }
 0xb9d   :  { %v3670_v9 = vrot.slane %v8746_v23, 4  ;;  %v3194_v47 = vcombine.high %v8746_v23, %v8746_v23 }
 0xb9e   :  { %v3202_v8 = vcombine.high %v8748_v7, %v8748_v7  ;;  %v3671_v10 = vrot.slane %v8748_v7, 3 }
 0xb9f   :  { %v3201_v42 = vrot.slane %v3194_v47, %v8051_v37 }
 0xba0   :  { %v3209_v48 = vrot.slane %v3202_v8, %v8051_v37  ;;  %v3672_v36 = vsel %vm515_vm3, %v3671_v10, %v3670_v9 }
 0xba1   :  { %3673 = vrot.lane.b32.xlu0 %v3672_v36, %s7825_s0 }
 0xba2   :  { %v3212_v39 = vrot.slane %v3209_v48, 7 }
 0xba4   :  { %v3213_v21 = vsel %vm515_vm3, %v3212_v39, %v3201_v42 }
 0xba5   :  { %v3214_v54 = vsel %vm517_vm4, %v3212_v39, %v3213_v21 }
 0xba6   :  { %v3215_v22 = vsel %vm519_vm5, %v3212_v39, %v3214_v54 }
 0xba7   :  { %v8764_v57 = vsel %vm521_vm6, %v3212_v39, %v3215_v22 }
 0xc13   :  { %v3674_v27 = vpop.permute.xlu0 %3673 }
 0xc14   :  { %7267 = vmatmul.mubr.msk.f32.vlgmr.msra.gmra.mxu1 %vm175_vm7, %v3674_v27  ;;  %7278 = vmatmul.mubr.msk.f32.vlgmr.msra.gmra.mxu0 %vm175_vm7, %v3674_v27 }
 0xc15   :  { %7281 = vmatpush3.msra.mxu1 %v7968_v13  ;;  %7292 = vmatpush3.msra.mxu0 %v8618_v46 }
 0xc16   :  { %7282 = vmatprep.subr.mxu1 %v9282_v60  ;;  %7293 = vmatprep.subr.mxu0 %v9282_v60 }
 0xc17   :  { %7283 = vmatpush3.msra.mxu1 %v7974_v15  ;;  %7294 = vmatpush3.msra.mxu0 %v8627_v11 }
 0xc18   :  { %7284 = vmatprep.subr.mxu1 %v9282_v60  ;;  %7295 = vmatprep.subr.mxu0 %v9282_v60 }
 0xc19   :  { %7285 = vmatpush3.msra.mxu1 %v7970_v14  ;;  %7296 = vmatpush3.msra.mxu0 %v8636_v55 }
 0xc1a   :  { %7286 = vmatprep.subr.mxu1 %v9282_v60  ;;  %7297 = vmatprep.subr.mxu0 %v9282_v60 }
 0xc1b   :  { %7287 = vmatpush3.msra.mxu1 %v7976_v16  ;;  %7288 = vmatprep.mubr.msk.f32.mxu1 %vm7823_vm1, %v9282_v60 }
 0xc1c   :  { %7298 = vmatpush3.msra.mxu0 %v8647_v3  ;;  %7299 = vmatprep.mubr.msk.f32.mxu0 %vm7823_vm1, %v9282_v60 }
 0xc1d   :  { %7289 = vmatmul.mubr.msk.f32.vlgmr.msra.gmra.mxu1 %vm175_vm7, %v3674_v27  ;;  %7300 = vmatmul.mubr.msk.f32.vlgmr.msra.gmra.mxu0 %vm175_vm7, %v3674_v27 }
 0xc1e   :  { %7302 = vmatprep.subr.mxu1 %v9282_v60  ;;  %7313 = vmatprep.subr.mxu0 %v9282_v60 }
 0xc1f   :  { %7303 = vmatpush3.msra.mxu1 %v8172_v28  ;;  %7314 = vmatpush3.msra.mxu0 %v8214_v45 }
 0xc20   :  { %7304 = vmatprep.subr.mxu1 %v9282_v60  ;;  %7315 = vmatprep.subr.mxu0 %v9282_v60 }
 0xc21   :  { %7305 = vmatpush3.msra.mxu1 %v8166_v25  ;;  %7316 = vmatpush3.msra.mxu0 %v8243_v0 }
 0xc22   :  { %7306 = vmatprep.subr.mxu1 %v9282_v60  ;;  %7317 = vmatprep.subr.mxu0 %v9282_v60 }
 0xc23   :  { %7307 = vmatpush3.msra.mxu1 %v8186_v33  ;;  %7318 = vmatpush3.msra.mxu0 %v8245_v1 }
 0xc24   :  { %7308 = vmatprep.subr.mxu1 %v9282_v60  ;;  %7319 = vmatprep.subr.mxu0 %v9282_v60 }
 0xc25   :  { %7309 = vmatpush3.msra.mxu1 %v8188_v34  ;;  %7310 = vmatprep.mubr.msk.f32.mxu1 %vm7823_vm1, %v9282_v60 }
 0xc26   :  { %7320 = vmatpush3.msra.mxu0 %v8254_v4  ;;  %7321 = vmatprep.mubr.msk.f32.mxu0 %vm7823_vm1, %v9282_v60 }
 0xc27   :  { %7311 = vmatmul.mubr.msk.f32.vlgmr.msra.gmra.mxu1 %vm175_vm7, %v3674_v27  ;;  %7322 = vmatmul.mubr.msk.f32.vlgmr.msra.gmra.mxu0 %vm175_vm7, %v3674_v27 }
 0xc28   :  { %7329 = vmatprep.subr.mxu0 %v9282_v60  ;;  %7324 = vmatprep.subr.mxu1 %v9282_v60 }
 0xc29   :  { %7330 = vmatpush3.msk.msra.mxu0 %vm57_vm0, %v8200_v43  ;;  %7325 = vmatpush3.msk.msra.mxu1 %vm57_vm0, %v8683_v44 }
 0xc2a   :  { %7326 = vmatprep.mubr.msk.f32.mxu1 %vm7823_vm1, %v9282_v60  ;;  %7331 = vmatprep.mubr.msk.f32.mxu0 %vm7823_vm1, %v9282_v60 }
 0xc2b   :  { %7334 = vmatprep.subr.mxu1 %v9282_v60  ;;  %7327 = vmatmul.mubr.msk.f32.vlgmr.msra.gmra.mxu1 %vm50_vm2, %v8736_v6 }
 0xc2c   :  { %7332 = vmatmul.mubr.msk.f32.vlgmr.msra.gmra.mxu0 %vm50_vm2, %v8736_v6  ;;  %7335 = vmatpush3.msk.msra.mxu1 %vm57_vm0, %v8262_v5 }
 0xc2d   :  { %7336 = vmatprep.mubr.msk.f32.mxu1 %vm7823_vm1, %v9282_v60  ;;  %7350 = vmatprep.subr.mxu1 %v9282_v60 }
 0xc2e   :  { %7339 = vmatprep.subr.mxu0 %v9282_v60  ;;  %7347 = vmatprep.mubr.msk.f32.mxu0 %vm7823_vm1, %v9282_v60 }
 0xc2f   :  { %7337 = vmatmul.mubr.msk.f32.vlgmr.msra.gmra.mxu1 %vm50_vm2, %v8736_v6  ;;  %7340 = vmatpush3.msra.mxu0 %v8436_v38 }
 0xc30   :  { %7351 = vmatpush3.msra.mxu1 %v7982_v17  ;;  %7341 = vmatprep.subr.mxu0 %v9282_v60 }
 0xc31   :  { %7352 = vmatprep.subr.mxu1 %v9282_v60  ;;  %7342 = vmatpush3.msra.mxu0 %v8447_v32 }
 0xc32   :  { %7353 = vmatpush3.msra.mxu1 %v7984_v18  ;;  %7343 = vmatprep.subr.mxu0 %v9282_v60 }
 0xc33   :  { %7354 = vmatprep.subr.mxu1 %v9282_v60  ;;  %7344 = vmatpush3.msra.mxu0 %v8456_v50 }
 0xc34   :  { %7355 = vmatpush3.msra.mxu1 %v7992_v19  ;;  %7345 = vmatprep.subr.mxu0 %v9282_v60 }
 0xc35   :  { %7356 = vmatprep.subr.mxu1 %v9282_v60  ;;  %7346 = vmatpush3.msra.mxu0 %v8465_v40 }
 0xc36   :  { %7357 = vmatpush3.msra.mxu1 %v7995_v20  ;;  %7358 = vmatprep.mubr.msk.f32.mxu1 %vm7823_vm1, %v9282_v60 }
 0xc37   :  { %7361 = vmatprep.subr.mxu0 %v9282_v60  ;;  %7372 = vmatprep.subr.mxu1 %v9282_v60 }
 0xcd4   :  { %v3743_v38 = vpop.f32.mrf.mxu1  ;;  %v3813_v32 = vpop.f32.mrf.mxu0 }
 0xcd5   :  { %v3888_v50 = vrot.slane %v3743_v38, 3  ;;  %v3889_v29 = vrot.slane %v3743_v38, 4 }
 0xcd6   :  { %v7268_v58 = vpop.f32.mrf.mxu1  ;;  %v7279_v12 = vpop.f32.mrf.mxu0 }
 0xcd7   :  { %v3892_v35 = vadd.f32 %v3888_v50, %v8029_v30  ;;  %v3893_v2 = vadd.f32 %v3889_v29, %v8031_v31 }
 0xcd9   :  { %v6543_v40 = vmul.f32 -1.442695, %v3892_v35  ;;  %v6544_v59 = vmul.f32 -1.442695, %v3893_v2 }
 0xcdb   :  { %7704 = vpow2.f32 %v6543_v40 }
 0xcdc   :  { %7706 = vpow2.f32 %v6544_v59 }
 0xcdd   :  { %v3883_v51 = vpop.f32.mrf.mxu1  ;;  %v4061_v49 = vpop.f32.mrf.mxu0 }
 0xcde   :  { %v4062_v22 = vadd.f32 %v4061_v49, %v8343_v56 }
 0xcdf   :  { %v7290_v9 = vpop.f32.mrf.mxu1  ;;  %v7301_v8 = vpop.f32.mrf.mxu0 }
 0xce0   :  { %v3884_v9 = vadd.f32 %v3883_v51, %v8035_v41 }
 0xce2   :  { %v3931_v49 = vrot.slane %v3884_v9, 4 }
 0xce7   :  { %v4131_v47 = vpop.f32.mrf.mxu1  ;;  %v4201_v10 = vpop.f32.mrf.mxu0 }
 0xce8   :  { %v7705_v48 = vpop.eup %7704  ;;  %v4132_v27 = vadd.f32 %v4131_v47, %v8391_v61 }
 0xce9   :  { %v7707_v36 = vpop.eup %7706  ;;  %v3900_v39 = vadd.f32 1.0, %v7705_v48  ;;  %v7312_v42 = vpop.f32.mrf.mxu1  ;;  %v3930_v48 = vrot.slane %v3884_v9, 3 }
 0xcea   :  { %v7323_v21 = vpop.f32.mrf.mxu0  ;;  %v3901_v54 = vadd.f32 1.0, %v7707_v36 }
 0xceb   :  { %7708 = vrcp.f32 %v3900_v39  ;;  %v4273_v38 = vpop.f32.mrf.mxu1 }
 0xcec   :  { %7710 = vrcp.f32 %v3901_v54  ;;  %v4417_v50 = vadd.f32 %v4273_v38, %v4062_v22  ;;  %v4343_v29 = vpop.f32.mrf.mxu0  ;;  %v3907_v54 = vrot.slane %v3813_v32, 3  ;;  %v3908_v22 = vrot.slane %v3813_v32, 4 }
 0xced   :  { %v4424_v58 = vadd.f32 %v4343_v29, %v4132_v27  ;;  %v7328_v12 = vpop.f32.mrf.mxu1 }
 0xcee   :  { %v6556_v35 = vmul.f32 -1.442695, %v4417_v50  ;;  %v7333_v2 = vpop.f32.mrf.mxu0 }
 0xcef   :  { %v4413_v40 = vpop.f32.mrf.mxu1  ;;  %v6557_v8 = vmul.f32 -1.442695, %v4424_v58  ;;  %v4202_v58 = vadd.f32 %v4201_v10, %v8412_v62 }
 0xcf0   :  { %7712 = vpow2.f32 %v6556_v35  ;;  %v4414_v50 = vadd.f32 %v4413_v40, %v8410_v63 }
 0xcf1   :  { %v7338_v59 = vpop.f32.mrf.mxu1  ;;  %7714 = vpow2.f32 %v6557_v8 }
 0xcf8   :  { %v7709_v36 = vpop.eup %7708 }
 0xcf9   :  { %v7711_v39 = vpop.eup %7710  ;;  %v3934_v42 = vmul.f32 %v7709_v36, %v3930_v48 }
 0xcfa   :  { %v3935_v47 = vmul.f32 %v7711_v39, %v3931_v49 }
 0xcfb   :  { %3938 = vrot.lane.b32.xlu1 %v3934_v42, %s7824_s17 }
 0xcfc   :  { %3940 = vrot.lane.b32.xlu0 %v3935_v47, %s7824_s17 }
 0xcfd   :  { %v7713_v21 = vpop.eup %7712 }
 0xcfe   :  { %v4421_v27 = vadd.f32 1.0, %v7713_v21  ;;  %v7715_v51 = vpop.eup %7714 }
 0xcff   :  { %3909 = vrot.lane.b32.xlu1 %v3907_v54, %s7826_s3  ;;  %v4428_v38 = vadd.f32 1.0, %v7715_v51 }
 0xd00   :  { %7716 = vrcp.f32 %v4421_v27  ;;  %3911 = vrot.lane.b32.xlu0 %v3908_v22, %s7826_s3 }
 0xd01   :  { %7718 = vrcp.f32 %v4428_v38 }
 0xd0d   :  { %v7717_v29 = vpop.eup %7716 }
 0xd0e   :  { %v4431_v12 = vmul.f32 %v7717_v29, %v4414_v50  ;;  %v7719_v2 = vpop.eup %7718 }
 0xd0f   :  { %v4434_v59 = vsub.f32 1.0, %v7719_v2  ;;  %v4436_v8 = vmul.f32 %v7719_v2, %v8736_v6 }
 0xd10   :  { %v4432_v35 = vadd.f32 %v4431_v12, %v4202_v58 }
 0xd12   :  { %7720 = vtanh.f32 %v4432_v35 }
 0xd1f   :  { %v7721_v32 = vpop.eup %7720 }
 0xd20   :  { %v4435_v9 = vmul.f32 %v7721_v32, %v4434_v59  ;;  %v3960_v59 = vrot.slane %v8746_v23, 7 }
 0xd22   :  { %v8865_v48 = vadd.f32 %v4436_v8, %v4435_v9  ;;  %v3961_v9 = vrot.slane %v8748_v7, 7 }
 0xd6d   :  { %v3939_v36 = vpop.permute.xlu1 %3938 }
 0xd6e   :  { %v3941_v49 = vpop.permute.xlu0 %3940  ;;  %v3944_v39 = vadd.f32 %v3939_v36, %v8042_v53 }
 0xd6f   :  { %v3945_v40 = vadd.f32 %v3941_v49, %v8026_v24 }
 0xd70   :  { %7722 = vtanh.f32 %v3944_v39 }
 0xd71   :  { %7724 = vtanh.f32 %v3945_v40  ;;  %v3910_v47 = vpop.permute.xlu1 %3909 }
 0xd72   :  { %v3912_v21 = vpop.permute.xlu0 %3911  ;;  %v3915_v54 = vadd.f32 %v3910_v47, %v8029_v30 }
 0xd73   :  { %v3916_v22 = vadd.f32 %v3912_v21, %v8031_v31 }
 0xd74   :  { %v6545_v27 = vmul.f32 -1.442695, %v3915_v54 }
 0xd75   :  { %v6546_v51 = vmul.f32 -1.442695, %v3916_v22 }
 0xd76   :  { %7726 = vpow2.f32 %v6545_v27 }
 0xd77   :  { %7728 = vpow2.f32 %v6546_v51 }
 0xd7d   :  { %v7723_v10 = vpop.eup %7722 }
 0xd7e   :  { %v7725_v42 = vpop.eup %7724  ;;  %3952 = vrot.lane.b32.xlu1 %v7723_v10, %s7825_s0 }
 0xd7f   :  { %3954 = vrot.lane.b32.xlu0 %v7725_v42, %s7825_s0 }
 0xd83   :  { %v7727_v38 = vpop.eup %7726 }
 0xd84   :  { %v7729_v50 = vpop.eup %7728  ;;  %v3923_v29 = vadd.f32 1.0, %v7727_v38 }
 0xd85   :  { %v3924_v58 = vadd.f32 1.0, %v7729_v50 }
 0xd86   :  { %7730 = vrcp.f32 %v3923_v29 }
 0xd87   :  { %7732 = vrcp.f32 %v3924_v58 }
 0xd93   :  { %v7731_v12 = vpop.eup %7730 }
 0xd94   :  { %v7733_v35 = vpop.eup %7732  ;;  %v3948_v2 = vsub.f32 1.0, %v7731_v12  ;;  %v3964_v49 = vmul.f32 %v7731_v12, %v3960_v59 }
 0xd95   :  { %v3949_v32 = vsub.f32 1.0, %v7733_v35  ;;  %v3965_v40 = vmul.f32 %v7733_v35, %v3961_v9 }
 0xdf0   :  { %v3953_v8 = vpop.permute.xlu1 %3952 }
 0xdf1   :  { %v3955_v36 = vpop.permute.xlu0 %3954  ;;  %v3958_v39 = vmul.f32 %v3953_v8, %v3948_v2 }
 0xdf2   :  { %v3959_v10 = vmul.f32 %v3955_v36, %v3949_v32 }
 0xdf3   :  { %v8875_v42 = vadd.f32 %v3964_v49, %v3958_v39 }
 0xdf4   :  { %v8877_v47 = vadd.f32 %v3965_v40, %v3959_v10 }
 0xdf5   :  { %v3970_v21 = vcombine.high %v8875_v42, %v8875_v42  ;;  %v4444_v54 = vrot.slane %v8875_v42, 5 }
 0xdf6   :  { %v3978_v23 = vcombine.high %v8877_v47, %v8877_v47  ;;  %v4445_v7 = vrot.slane %v8877_v47, 4 }
 0xdf7   :  { %v3977_v22 = vrot.slane %v3970_v21, %v8051_v37 }
 0xdf8   :  { %v4446_v27 = vsel %vm515_vm3, %v4445_v7, %v4444_v54  ;;  %v3985_v51 = vrot.slane %v3978_v23, %v8051_v37 }
 0xdf9   :  { %v3986_v38 = vrot.slane %v3977_v22, 1  ;;  %4447 = vrot.lane.b32.xlu1 %v4446_v27, %s7825_s0 }
 0xdfb   :  { %v3989_v50 = vsel %vm515_vm3, %v3985_v51, %v3986_v38 }
 0xdfc   :  { %v3990_v29 = vsel %vm517_vm4, %v3985_v51, %v3989_v50 }
 0xdfd   :  { %v3991_v58 = vsel %vm519_vm5, %v3985_v51, %v3990_v29 }
 0xdfe   :  { %v8893_v12 = vsel %vm521_vm6, %v3985_v51, %v3991_v58 }
 0xe6b   :  { %v4448_v35 = vpop.permute.xlu1 %4447 }
 0xe6c   :  { %7348 = vmatmul.mubr.msk.f32.vlgmr.msra.gmra.mxu0 %vm175_vm7, %v4448_v35  ;;  %7359 = vmatmul.mubr.msk.f32.vlgmr.msra.gmra.mxu1 %vm175_vm7, %v4448_v35 }
 0xe6d   :  { %7362 = vmatpush3.msra.mxu0 %v7968_v13  ;;  %7373 = vmatpush3.msra.mxu1 %v8618_v46  ;;  %v7813_v46 = vld [vmem:[%s9265_s2 + $0x18] sm:$0xff] }
 0xe6e   :  { %7363 = vmatprep.subr.mxu0 %v9282_v60  ;;  %7374 = vmatprep.subr.mxu1 %v9282_v60 }
 0xe6f   :  { %7364 = vmatpush3.msra.mxu0 %v7974_v15  ;;  %7375 = vmatpush3.msra.mxu1 %v8627_v11  ;;  %v7814_v11 = vld [vmem:[%s9265_s2 + $0x10] sm:$0xff] }
 0xe70   :  { %7365 = vmatprep.subr.mxu0 %v9282_v60  ;;  %7376 = vmatprep.subr.mxu1 %v9282_v60 }
 0xe71   :  { %7366 = vmatpush3.msra.mxu0 %v7970_v14  ;;  %7377 = vmatpush3.msra.mxu1 %v8636_v55  ;;  %v7815_v55 = vld [vmem:[%s9265_s2 + $0x8] sm:$0xff] }
 0xe72   :  { %7367 = vmatprep.subr.mxu0 %v9282_v60  ;;  %7378 = vmatprep.subr.mxu1 %v9282_v60 }
 0xe73   :  { %7368 = vmatpush3.msra.mxu0 %v7976_v16  ;;  %7369 = vmatprep.mubr.msk.f32.mxu0 %vm7823_vm1, %v9282_v60 }
 0xe74   :  { %7379 = vmatpush3.msra.mxu1 %v8647_v3  ;;  %7380 = vmatprep.mubr.msk.f32.mxu1 %vm7823_vm1, %v9282_v60 }
 0xe75   :  { %7370 = vmatmul.mubr.msk.f32.vlgmr.msra.gmra.mxu0 %vm175_vm7, %v4448_v35  ;;  %7381 = vmatmul.mubr.msk.f32.vlgmr.msra.gmra.mxu1 %vm175_vm7, %v4448_v35 }
 0xe76   :  { %7383 = vmatprep.subr.mxu0 %v9282_v60  ;;  %7394 = vmatprep.subr.mxu1 %v9282_v60 }
 0xe77   :  { %7384 = vmatpush3.msra.mxu0 %v8172_v28  ;;  %7395 = vmatpush3.msra.mxu1 %v8214_v45 }
 0xe78   :  { %7385 = vmatprep.subr.mxu0 %v9282_v60  ;;  %7396 = vmatprep.subr.mxu1 %v9282_v60 }
 0xe79   :  { %7386 = vmatpush3.msra.mxu0 %v8166_v25  ;;  %7397 = vmatpush3.msra.mxu1 %v8243_v0 }
 0xe7a   :  { %7387 = vmatprep.subr.mxu0 %v9282_v60  ;;  %7398 = vmatprep.subr.mxu1 %v9282_v60 }
 0xe7b   :  { %7388 = vmatpush3.msra.mxu0 %v8186_v33  ;;  %7399 = vmatpush3.msra.mxu1 %v8245_v1 }
 0xe7c   :  { %7389 = vmatprep.subr.mxu0 %v9282_v60  ;;  %7400 = vmatprep.subr.mxu1 %v9282_v60 }
 0xe7d   :  { %7390 = vmatpush3.msra.mxu0 %v8188_v34  ;;  %7391 = vmatprep.mubr.msk.f32.mxu0 %vm7823_vm1, %v9282_v60 }
 0xe7e   :  { %7401 = vmatpush3.msra.mxu1 %v8254_v4  ;;  %7402 = vmatprep.mubr.msk.f32.mxu1 %vm7823_vm1, %v9282_v60 }
 0xe7f   :  { %7392 = vmatmul.mubr.msk.f32.vlgmr.msra.gmra.mxu0 %vm175_vm7, %v4448_v35  ;;  %7403 = vmatmul.mubr.msk.f32.vlgmr.msra.gmra.mxu1 %vm175_vm7, %v4448_v35 }
 0xe80   :  { %7410 = vmatprep.subr.mxu1 %v9282_v60  ;;  %7405 = vmatprep.subr.mxu0 %v9282_v60 }
 0xe81   :  { %7411 = vmatpush3.msk.msra.mxu1 %vm57_vm0, %v8200_v43  ;;  %7406 = vmatpush3.msk.msra.mxu0 %vm57_vm0, %v8683_v44 }
 0xe82   :  { %7407 = vmatprep.mubr.msk.f32.mxu0 %vm7823_vm1, %v9282_v60  ;;  %7412 = vmatprep.mubr.msk.f32.mxu1 %vm7823_vm1, %v9282_v60 }
 0xe83   :  { %7415 = vmatprep.subr.mxu0 %v9282_v60  ;;  %7408 = vmatmul.mubr.msk.f32.vlgmr.msra.gmra.mxu0 %vm50_vm2, %v8865_v48 }
 0xe84   :  { %7413 = vmatmul.mubr.msk.f32.vlgmr.msra.gmra.mxu1 %vm50_vm2, %v8865_v48  ;;  %7416 = vmatpush3.msk.msra.mxu0 %vm57_vm0, %v8262_v5 }
 0xe85   :  { %7417 = vmatprep.mubr.msk.f32.mxu0 %vm7823_vm1, %v9282_v60  ;;  %7431 = vmatprep.subr.mxu0 %v9282_v60 }
 0xe86   :  { %7420 = vmatprep.subr.mxu1 %v9282_v60  ;;  %7428 = vmatprep.mubr.msk.f32.mxu1 %vm7823_vm1, %v9282_v60 }
 0xe87   :  { %7418 = vmatmul.mubr.msk.f32.vlgmr.msra.gmra.mxu0 %vm50_vm2, %v8865_v48  ;;  %7421 = vmatpush3.msra.mxu1 %v7813_v46 }
 0xe88   :  { %7432 = vmatpush3.msra.mxu0 %v7982_v17  ;;  %7422 = vmatprep.subr.mxu1 %v9282_v60  ;;  %v7816_v17 = vld [vmem:[%s9265_s2] sm:$0xff] }
 0xe89   :  { %7433 = vmatprep.subr.mxu0 %v9282_v60  ;;  %7423 = vmatpush3.msra.mxu1 %v7814_v11 }
 0xe8a   :  { %7434 = vmatpush3.msra.mxu0 %v7984_v18  ;;  %7424 = vmatprep.subr.mxu1 %v9282_v60 }
 0xe8b   :  { %7435 = vmatprep.subr.mxu0 %v9282_v60  ;;  %7425 = vmatpush3.msra.mxu1 %v7815_v55 }
 0xe8c   :  { %7436 = vmatpush3.msra.mxu0 %v7992_v19  ;;  %7426 = vmatprep.subr.mxu1 %v9282_v60 }
 0xe8d   :  { %7437 = vmatprep.subr.mxu0 %v9282_v60  ;;  %7427 = vmatpush3.msra.mxu1 %v7816_v17 }
 0xe8e   :  { %7438 = vmatpush3.msra.mxu0 %v7995_v20  ;;  %7439 = vmatprep.mubr.msk.f32.mxu0 %vm7823_vm1, %v9282_v60 }
 0xe8f   :  { %7442 = vmatprep.subr.mxu1 %v9282_v60  ;;  %7453 = vmatprep.subr.mxu0 %v9282_v60 }
 0xf2c   :  { %v4517_v18 = vpop.f32.mrf.mxu0  ;;  %v4587_v19 = vpop.f32.mrf.mxu1 }
 0xf2d   :  { %v4662_v3 = vrot.slane %v4517_v18, 2  ;;  %v4663_v44 = vrot.slane %v4517_v18, 3 }
 0xf2e   :  { %v7349_v2 = vpop.f32.mrf.mxu0  ;;  %v7360_v59 = vpop.f32.mrf.mxu1 }
 0xf2f   :  { %v4666_v32 = vadd.f32 %v4662_v3, %v8029_v30  ;;  %v4667_v9 = vadd.f32 %v4663_v44, %v8031_v31 }
 0xf31   :  { %v6561_v8 = vmul.f32 -1.442695, %v4666_v32  ;;  %v6562_v36 = vmul.f32 -1.442695, %v4667_v9 }
 0xf33   :  { %7734 = vpow2.f32 %v6561_v8 }
 0xf34   :  { %7736 = vpow2.f32 %v6562_v36 }
 0xf35   :  { %v4657_v20 = vpop.f32.mrf.mxu0  ;;  %v4839_v49 = vpop.f32.mrf.mxu1 }
 0xf36   :  { %v4840_v38 = vadd.f32 %v4839_v49, %v8343_v56  ;;  %v4658_v44 = vadd.f32 %v4657_v20, %v8035_v41 }
 0xf37   :  { %v7371_v39 = vpop.f32.mrf.mxu0  ;;  %v7382_v40 = vpop.f32.mrf.mxu1 }
 0xf38   :  { %v4704_v59 = vrot.slane %v4658_v44, 2  ;;  %v4705_v9 = vrot.slane %v4658_v44, 3  ;;  %v4681_v40 = vrot.slane %v4587_v19, 2 }
 0xf3f   :  { %v4909_v10 = vpop.f32.mrf.mxu0  ;;  %v4979_v21 = vpop.f32.mrf.mxu1 }
 0xf40   :  { %v7735_v54 = vpop.eup %7734  ;;  %v4910_v50 = vadd.f32 %v4909_v10, %v8391_v61  ;;  %v4682_v10 = vrot.slane %v4587_v19, 3 }
 0xf41   :  { %v7737_v23 = vpop.eup %7736  ;;  %v4674_v7 = vadd.f32 1.0, %v7735_v54  ;;  %v7393_v22 = vpop.f32.mrf.mxu0 }
 0xf42   :  { %v7404_v27 = vpop.f32.mrf.mxu1  ;;  %v4675_v51 = vadd.f32 1.0, %v7737_v23 }
 0xf43   :  { %7738 = vrcp.f32 %v4674_v7  ;;  %v5051_v29 = vpop.f32.mrf.mxu0  ;;  %v4980_v27 = vadd.f32 %v4979_v21, %v8412_v62 }
 0xf44   :  { %7740 = vrcp.f32 %v4675_v51  ;;  %v5195_v58 = vadd.f32 %v5051_v29, %v4840_v38  ;;  %v5121_v35 = vpop.f32.mrf.mxu1 }
 0xf45   :  { %v5202_v46 = vadd.f32 %v5121_v35, %v4910_v50  ;;  %v7409_v11 = vpop.f32.mrf.mxu0 }
 0xf46   :  { %v6574_v55 = vmul.f32 -1.442695, %v5195_v58  ;;  %v7414_v17 = vpop.f32.mrf.mxu1 }
 0xf47   :  { %v5191_v18 = vpop.f32.mrf.mxu0  ;;  %v6575_v2 = vmul.f32 -1.442695, %v5202_v46 }
 0xf48   :  { %7742 = vpow2.f32 %v6574_v55  ;;  %v5192_v7 = vadd.f32 %v5191_v18, %v8410_v63 }
 0xf49   :  { %v7419_v3 = vpop.f32.mrf.mxu0  ;;  %7744 = vpow2.f32 %v6575_v2 }
 0xf50   :  { %v7739_v32 = vpop.eup %7738 }
 0xf51   :  { %v7741_v8 = vpop.eup %7740  ;;  %v4708_v36 = vmul.f32 %v7739_v32, %v4704_v59 }
 0xf52   :  { %v4709_v49 = vmul.f32 %v7741_v8, %v4705_v9 }
 0xf53   :  { %4712 = vrot.lane.b32.xlu0 %v4708_v36, %s7824_s17 }
 0xf54   :  { %4714 = vrot.lane.b32.xlu1 %v4709_v49, %s7824_s17 }
 0xf55   :  { %v7743_v39 = vpop.eup %7742 }
 0xf56   :  { %v5199_v54 = vadd.f32 1.0, %v7743_v39  ;;  %v7745_v20 = vpop.eup %7744 }
 0xf57   :  { %4683 = vrot.lane.b32.xlu0 %v4681_v40, %s7826_s3  ;;  %v5206_v23 = vadd.f32 1.0, %v7745_v20 }
 0xf58   :  { %7746 = vrcp.f32 %v5199_v54  ;;  %4685 = vrot.lane.b32.xlu1 %v4682_v10, %s7826_s3 }
 0xf59   :  { %7748 = vrcp.f32 %v5206_v23  ;;  %v4734_v23 = vrot.slane %v8875_v42, 7 }
 0xf65   :  { %v7747_v22 = vpop.eup %7746 }
 0xf66   :  { %v5209_v51 = vmul.f32 %v7747_v22, %v5192_v7  ;;  %v7749_v50 = vpop.eup %7748  ;;  %v4735_v22 = vrot.slane %v8877_v47, 7 }
 0xf67   :  { %v5212_v29 = vsub.f32 1.0, %v7749_v50  ;;  %v5214_v35 = vmul.f32 %v7749_v50, %v8865_v48 }
 0xf68   :  { %v5210_v38 = vadd.f32 %v5209_v51, %v4980_v27 }
 0xf6a   :  { %7750 = vtanh.f32 %v5210_v38 }
 0xf77   :  { %v7751_v19 = vpop.eup %7750 }
 0xf78   :  { %v5213_v58 = vmul.f32 %v7751_v19, %v5212_v29 }
 0xf7a   :  { %v9002_v46 = vadd.f32 %v5214_v35, %v5213_v58 }
 0xfc5   :  { %v4713_v11 = vpop.permute.xlu0 %4712 }
 0xfc6   :  { %v4715_v55 = vpop.permute.xlu1 %4714  ;;  %v4718_v17 = vadd.f32 %v4713_v11, %v8042_v53 }
 0xfc7   :  { %v4719_v18 = vadd.f32 %v4715_v55, %v8026_v24 }
 0xfc8   :  { %7752 = vtanh.f32 %v4718_v17 }
 0xfc9   :  { %7754 = vtanh.f32 %v4719_v18  ;;  %v4684_v44 = vpop.permute.xlu0 %4683 }
 0xfca   :  { %v4686_v2 = vpop.permute.xlu1 %4685  ;;  %v4689_v59 = vadd.f32 %v4684_v44, %v8029_v30 }
 0xfcb   :  { %v4690_v32 = vadd.f32 %v4686_v2, %v8031_v31 }
 0xfcc   :  { %v6563_v9 = vmul.f32 -1.442695, %v4689_v59 }
 0xfcd   :  { %v6564_v8 = vmul.f32 -1.442695, %v4690_v32 }
 0xfce   :  { %7756 = vpow2.f32 %v6563_v9 }
 0xfcf   :  { %7758 = vpow2.f32 %v6564_v8 }
 0xfd5   :  { %v7753_v21 = vpop.eup %7752 }
 0xfd6   :  { %v7755_v3 = vpop.eup %7754  ;;  %4726 = vrot.lane.b32.xlu0 %v7753_v21, %s7825_s0 }
 0xfd7   :  { %4728 = vrot.lane.b32.xlu1 %v7755_v3, %s7825_s0 }
 0xfdb   :  { %v7757_v36 = vpop.eup %7756 }
 0xfdc   :  { %v7759_v49 = vpop.eup %7758  ;;  %v4697_v39 = vadd.f32 1.0, %v7757_v36 }
 0xfdd   :  { %v4698_v40 = vadd.f32 1.0, %v7759_v49  ;;  %v7817_v49 = vld [vmem:[%s9270_s5 + $0x18] sm:$0xff] }
 0xfde   :  { %7760 = vrcp.f32 %v4697_v39  ;;  %v7818_v39 = vld [vmem:[%s9270_s5 + $0x10] sm:$0xff] }
 0xfdf   :  { %7762 = vrcp.f32 %v4698_v40 }
 0xfeb   :  { %v7761_v10 = vpop.eup %7760 }
 0xfec   :  { %v7763_v54 = vpop.eup %7762  ;;  %v4722_v20 = vsub.f32 1.0, %v7761_v10  ;;  %v4738_v38 = vmul.f32 %v7761_v10, %v4734_v23 }
 0xfed   :  { %v4723_v7 = vsub.f32 1.0, %v7763_v54  ;;  %v4739_v29 = vmul.f32 %v7763_v54, %v4735_v22 }
0x1048   :  { %v4727_v27 = vpop.permute.xlu0 %4726 }
0x1049   :  { %v4729_v51 = vpop.permute.xlu1 %4728  ;;  %v4732_v50 = vmul.f32 %v4727_v27, %v4722_v20 }
0x104a   :  { %v4733_v19 = vmul.f32 %v4729_v51, %v4723_v7 }
0x104b   :  { %v9012_v58 = vadd.f32 %v4738_v38, %v4732_v50 }
0x104c   :  { %v9014_v35 = vadd.f32 %v4739_v29, %v4733_v19 }
0x104d   :  { %v4744_v11 = vcombine.high %v9012_v58, %v9012_v58  ;;  %v5222_v55 = vrot.slane %v9012_v58, 6 }
0x104e   :  { %v4753_v42 = vcombine.high %v9014_v35, %v9014_v35  ;;  %v5223_v47 = vrot.slane %v9014_v35, 5 }
0x104f   :  { %v4751_v18 = vrot.slane %v4744_v11, %v8051_v37 }
0x1050   :  { %v4760_v17 = vrot.slane %v4753_v42, %v8051_v37  ;;  %v5224_v21 = vsel %vm515_vm3, %v5223_v47, %v5222_v55 }
0x1051   :  { %5225 = vrot.lane.b32.xlu0 %v5224_v21, %s7825_s0  ;;  %v4752_v44 = vcombine.high %v4751_v18, %v4751_v18 }
0x1052   :  { %v4761_v3 = vcombine.high %v4760_v17, %v4760_v17 }
0x1054   :  { %v4764_v2 = vrot.slane %v4761_v3, 7 }
0x1056   :  { %v4765_v59 = vsel %vm515_vm3, %v4764_v2, %v4752_v44 }
0x1057   :  { %v4766_v32 = vsel %vm517_vm4, %v4764_v2, %v4765_v59 }
0x1058   :  { %v4767_v9 = vsel %vm519_vm5, %v4764_v2, %v4766_v32 }
0x1059   :  { %v9030_v8 = vsel %vm521_vm6, %v4764_v2, %v4767_v9 }
0x10c3   :  { %v5226_v36 = vpop.permute.xlu0 %5225 }
0x10c4   :  { %7429 = vmatmul.mubr.msk.f32.vlgmr.msra.gmra.mxu1 %vm175_vm7, %v5226_v36  ;;  %7440 = vmatmul.mubr.msk.f32.vlgmr.msra.gmra.mxu0 %vm175_vm7, %v5226_v36 }
0x10c5   :  { %7443 = vmatpush3.msra.mxu1 %v7968_v13  ;;  %7454 = vmatpush3.msra.mxu0 %v7817_v49  ;;  %v7819_v13 = vld [vmem:[%s9270_s5 + $0x8] sm:$0xff] }
0x10c6   :  { %7444 = vmatprep.subr.mxu1 %v9282_v60  ;;  %7455 = vmatprep.subr.mxu0 %v9282_v60 }
0x10c7   :  { %7445 = vmatpush3.msra.mxu1 %v7974_v15  ;;  %7456 = vmatpush3.msra.mxu0 %v7818_v39  ;;  %v7820_v15 = vld [vmem:[%s9270_s5] sm:$0xff] }
0x10c8   :  { %7446 = vmatprep.subr.mxu1 %v9282_v60  ;;  %7457 = vmatprep.subr.mxu0 %v9282_v60 }
0x10c9   :  { %7447 = vmatpush3.msra.mxu1 %v7970_v14  ;;  %7458 = vmatpush3.msra.mxu0 %v7819_v13  ;;  %v9091_v14 = vld [vmem:[%s9271_s6] sm:$0xf]  ;;  %s7830_s6 = smov 4  }
0x10ca   :  { %7448 = vmatprep.subr.mxu1 %v9282_v60  ;;  %7459 = vmatprep.subr.mxu0 %v9282_v60 }
0x10cb   :  { %7449 = vmatpush3.msra.mxu1 %v7976_v16  ;;  %7450 = vmatprep.mubr.msk.f32.mxu1 %vm7823_vm1, %v9282_v60 }
0x10cc   :  { %7460 = vmatpush3.msra.mxu0 %v7820_v15  ;;  %7461 = vmatprep.mubr.msk.f32.mxu0 %vm7823_vm1, %v9282_v60 }
0x10cd   :  { %7451 = vmatmul.mubr.msk.f32.vlgmr.msra.gmra.mxu1 %vm175_vm7, %v5226_v36  ;;  %7462 = vmatmul.mubr.msk.f32.vlgmr.msra.gmra.mxu0 %vm175_vm7, %v5226_v36 }
0x10ce   :  { %7464 = vmatprep.subr.mxu1 %v9282_v60  ;;  %7475 = vmatprep.subr.mxu0 %v9282_v60 }
0x10cf   :  { %7465 = vmatpush3.msra.mxu1 %v8172_v28  ;;  %7476 = vmatpush3.msra.mxu0 %v8214_v45 }
0x10d0   :  { %7466 = vmatprep.subr.mxu1 %v9282_v60  ;;  %7477 = vmatprep.subr.mxu0 %v9282_v60 }
0x10d1   :  { %7467 = vmatpush3.msra.mxu1 %v8166_v25  ;;  %7478 = vmatpush3.msra.mxu0 %v8243_v0 }
0x10d2   :  { %7468 = vmatprep.subr.mxu1 %v9282_v60  ;;  %7479 = vmatprep.subr.mxu0 %v9282_v60 }
0x10d3   :  { %7469 = vmatpush3.msra.mxu1 %v8186_v33  ;;  %7480 = vmatpush3.msra.mxu0 %v8245_v1 }
0x10d4   :  { %7470 = vmatprep.subr.mxu1 %v9282_v60  ;;  %7481 = vmatprep.subr.mxu0 %v9282_v60 }
0x10d5   :  { %7471 = vmatpush3.msra.mxu1 %v8188_v34  ;;  %7472 = vmatprep.mubr.msk.f32.mxu1 %vm7823_vm1, %v9282_v60 }
0x10d6   :  { %7482 = vmatpush3.msra.mxu0 %v8254_v4  ;;  %7483 = vmatprep.mubr.msk.f32.mxu0 %vm7823_vm1, %v9282_v60 }
0x10d7   :  { %7473 = vmatmul.mubr.msk.f32.vlgmr.msra.gmra.mxu1 %vm175_vm7, %v5226_v36  ;;  %7484 = vmatmul.mubr.msk.f32.vlgmr.msra.gmra.mxu0 %vm175_vm7, %v5226_v36 }
0x10d8   :  { %7491 = vmatprep.subr.mxu0 %v9282_v60  ;;  %7486 = vmatprep.subr.mxu1 %v9282_v60 }
0x10d9   :  { %7492 = vmatpush3.msk.msra.mxu0 %vm57_vm0, %v8200_v43  ;;  %7487 = vmatpush3.msk.msra.mxu1 %vm57_vm0, %v9091_v14 }
0x10da   :  { %7488 = vmatprep.mubr.msk.f32.mxu1 %vm7823_vm1, %v9282_v60  ;;  %7493 = vmatprep.mubr.msk.f32.mxu0 %vm7823_vm1, %v9282_v60 }
0x10db   :  { %7496 = vmatprep.subr.mxu1 %v9282_v60  ;;  %7489 = vmatmul.mubr.msk.f32.vlgmr.msra.gmra.mxu1 %vm50_vm2, %v9002_v46 }
0x10dc   :  { %7494 = vmatmul.mubr.msk.f32.vlgmr.msra.gmra.mxu0 %vm50_vm2, %v9002_v46  ;;  %7497 = vmatpush3.msk.msra.mxu1 %vm57_vm0, %v8262_v5 }
0x10dd   :  { %7498 = vmatprep.mubr.msk.f32.mxu1 %vm7823_vm1, %v9282_v60  ;;  %7512 = vmatprep.subr.mxu1 %v9282_v60 }
0x10de   :  { %7501 = vmatprep.subr.mxu0 %v9282_v60  ;;  %7509 = vmatprep.mubr.msk.f32.mxu0 %vm7823_vm1, %v9282_v60 }
0x10df   :  { %7499 = vmatmul.mubr.msk.f32.vlgmr.msra.gmra.mxu1 %vm50_vm2, %v9002_v46  ;;  %7502 = vmatpush3.msra.mxu0 %v7817_v49 }
0x10e0   :  { %7513 = vmatpush3.msra.mxu1 %v8172_v28  ;;  %7503 = vmatprep.subr.mxu0 %v9282_v60 }
0x10e1   :  { %7514 = vmatprep.subr.mxu1 %v9282_v60  ;;  %7504 = vmatpush3.msra.mxu0 %v7818_v39 }
0x10e2   :  { %7515 = vmatpush3.msra.mxu1 %v8166_v25  ;;  %7505 = vmatprep.subr.mxu0 %v9282_v60 }
0x10e3   :  { %7516 = vmatprep.subr.mxu1 %v9282_v60  ;;  %7506 = vmatpush3.msra.mxu0 %v7819_v13 }
0x10e4   :  { %7517 = vmatpush3.msra.mxu1 %v8186_v33  ;;  %7507 = vmatprep.subr.mxu0 %v9282_v60 }
0x10e5   :  { %7518 = vmatprep.subr.mxu1 %v9282_v60  ;;  %7508 = vmatpush3.msra.mxu0 %v7820_v15 }
0x10e6   :  { %7519 = vmatpush3.msra.mxu1 %v8188_v34  ;;  %7520 = vmatprep.mubr.msk.f32.mxu1 %vm7823_vm1, %v9282_v60 }
0x10e7   :  { %7523 = vmatprep.subr.mxu0 %v9282_v60  ;;  %7534 = vmatprep.subr.mxu1 %v9282_v60 }
0x1184   :  { %v5295_v16 = vpop.f32.mrf.mxu1  ;;  %v5365_v25 = vpop.f32.mrf.mxu0 }
0x1185   :  { %v5440_v28 = vrot.slane %v5295_v16, 1  ;;  %v5441_v40 = vrot.slane %v5295_v16, 2 }
0x1186   :  { %v7430_v10 = vpop.f32.mrf.mxu1  ;;  %v7441_v33 = vpop.f32.mrf.mxu0 }
0x1187   :  { %v5444_v54 = vadd.f32 %v5440_v28, %v8029_v30  ;;  %v5445_v20 = vadd.f32 %v5441_v40, %v8031_v31 }
0x1189   :  { %v6579_v23 = vmul.f32 -1.442695, %v5444_v54  ;;  %v6580_v7 = vmul.f32 -1.442695, %v5445_v20  ;;  %v5459_v20 = vrot.slane %v5365_v25, 1 }
0x118b   :  { %7764 = vpow2.f32 %v6579_v23  ;;  %v5460_v23 = vrot.slane %v5365_v25, 2 }
0x118c   :  { %7766 = vpow2.f32 %v6580_v7 }
0x118d   :  { %v5435_v34 = vpop.f32.mrf.mxu1  ;;  %v5617_v22 = vpop.f32.mrf.mxu0 }
0x118e   :  { %v5618_v17 = vadd.f32 %v5617_v22, %v8343_v56  ;;  %v5436_v39 = vadd.f32 %v5435_v34, %v8035_v41 }
0x118f   :  { %v7452_v27 = vpop.f32.mrf.mxu1  ;;  %v7463_v51 = vpop.f32.mrf.mxu0 }
0x1190   :  { %v5482_v15 = vrot.slane %v5436_v39, 1  ;;  %v5483_v28 = vrot.slane %v5436_v39, 2 }
0x1197   :  { %v5687_v38 = vpop.f32.mrf.mxu1  ;;  %v5757_v50 = vpop.f32.mrf.mxu0 }
0x1198   :  { %v7765_v29 = vpop.eup %7764  ;;  %v5688_v18 = vadd.f32 %v5687_v38, %v8391_v61  ;;  %v5758_v51 = vadd.f32 %v5757_v50, %v8412_v62 }
0x1199   :  { %v7767_v19 = vpop.eup %7766  ;;  %v5452_v11 = vadd.f32 1.0, %v7765_v29  ;;  %v7474_v55 = vpop.f32.mrf.mxu1 }
0x119a   :  { %v7485_v42 = vpop.f32.mrf.mxu0  ;;  %v5453_v47 = vadd.f32 1.0, %v7767_v19 }
0x119b   :  { %7768 = vrcp.f32 %v5452_v11  ;;  %v5829_v21 = vpop.f32.mrf.mxu1 }
0x119c   :  { %7770 = vrcp.f32 %v5453_v47  ;;  %v5973_v3 = vadd.f32 %v5829_v21, %v5618_v17  ;;  %v5899_v44 = vpop.f32.mrf.mxu0 }
0x119d   :  { %v5980_v2 = vadd.f32 %v5899_v44, %v5688_v18  ;;  %v7490_v59 = vpop.f32.mrf.mxu1 }
0x119e   :  { %v6592_v32 = vmul.f32 -1.442695, %v5973_v3  ;;  %v7495_v9 = vpop.f32.mrf.mxu0 }
0x119f   :  { %v5969_v36 = vpop.f32.mrf.mxu1  ;;  %v6593_v13 = vmul.f32 -1.442695, %v5980_v2 }
0x11a0   :  { %7772 = vpow2.f32 %v6592_v32  ;;  %v5970_v22 = vadd.f32 %v5969_v36, %v8410_v63 }
0x11a1   :  { %v7500_v49 = vpop.f32.mrf.mxu1  ;;  %7774 = vpow2.f32 %v6593_v13  ;;  %v5512_v13 = vrot.slane %v9012_v58, 7 }
0x11a8   :  { %v7769_v16 = vpop.eup %7768 }
0x11a9   :  { %v7771_v40 = vpop.eup %7770  ;;  %v5486_v10 = vmul.f32 %v7769_v16, %v5482_v15 }
0x11aa   :  { %v5487_v33 = vmul.f32 %v7771_v40, %v5483_v28 }
0x11ab   :  { %5490 = vrot.lane.b32.xlu1 %v5486_v10, %s7824_s17 }
0x11ac   :  { %5492 = vrot.lane.b32.xlu0 %v5487_v33, %s7824_s17 }
0x11ad   :  { %v7773_v54 = vpop.eup %7772 }
0x11ae   :  { %v5977_v7 = vadd.f32 1.0, %v7773_v54  ;;  %v7775_v41 = vpop.eup %7774 }
0x11af   :  { %5461 = vrot.lane.b32.xlu1 %v5459_v20, %s7826_s3  ;;  %v5984_v34 = vadd.f32 1.0, %v7775_v41 }
0x11b0   :  { %7776 = vrcp.f32 %v5977_v7  ;;  %5463 = vrot.lane.b32.xlu0 %v5460_v23, %s7826_s3 }
0x11b1   :  { %7778 = vrcp.f32 %v5984_v34 }
0x11bd   :  { %v7777_v27 = vpop.eup %7776 }
0x11be   :  { %v5987_v38 = vmul.f32 %v7777_v27, %v5970_v22  ;;  %v7779_v19 = vpop.eup %7778 }
0x11bf   :  { %v5990_v11 = vsub.f32 1.0, %v7779_v19  ;;  %v5992_v42 = vmul.f32 %v7779_v19, %v9002_v46 }
0x11c0   :  { %v5988_v29 = vadd.f32 %v5987_v38, %v5758_v51 }
0x11c2   :  { %7780 = vtanh.f32 %v5988_v29 }
0x11cf   :  { %v7781_v25 = vpop.eup %7780 }
0x11d0   :  { %v5991_v55 = vmul.f32 %v7781_v25, %v5990_v11 }
0x11d2   :  { %v9140_v47 = vadd.f32 %v5992_v42, %v5991_v55 }
0x121d   :  { %v5491_v17 = vpop.permute.xlu1 %5490 }
0x121e   :  { %v5493_v18 = vpop.permute.xlu0 %5492  ;;  %v5496_v21 = vadd.f32 %v5491_v17, %v8042_v53  ;;  %v9284_v17 = vld [vmem:[#allocation2_spill] sm:$0xff] }
0x121f   :  { %v5497_v3 = vadd.f32 %v5493_v18, %v8026_v24  ;;  %v9283_v24 = vld [vmem:[#allocation5_spill] sm:$0xff] }
0x1220   :  { %7782 = vtanh.f32 %v5496_v21 }
0x1221   :  { %7784 = vtanh.f32 %v5497_v3  ;;  %v5462_v53 = vpop.permute.xlu1 %5461 }
0x1222   :  { %v5464_v2 = vpop.permute.xlu0 %5463  ;;  %v5467_v59 = vadd.f32 %v5462_v53, %v8029_v30  ;;  %v5513_v30 = vrot.slane %v9014_v35, 7 }
0x1224   :  { %v6581_v32 = vmul.f32 -1.442695, %v5467_v59 }
0x1226   :  { %7786 = vpow2.f32 %v6581_v32 }
0x122d   :  { %v7783_v50 = vpop.eup %7782 }
0x122e   :  { %v7785_v44 = vpop.eup %7784  ;;  %5504 = vrot.lane.b32.xlu1 %v7783_v50, %s7825_s0 }
0x122f   :  { %5506 = vrot.lane.b32.xlu0 %v7785_v44, %s7825_s0 }
0x1233   :  { %2112 = vrot.lane.b32.xlu0 %v8539_v52, %s7830_s6  ;;  %v5468_v52 = vadd.f32 %v5464_v2, %v8031_v31 }
0x1237   :  { %3665 = vrot.lane.b32.xlu0 %v8736_v6, %s7831_s16  ;;  %v6582_v6 = vmul.f32 -1.442695, %v5468_v52 }
0x1239   :  { %7788 = vpow2.f32 %v6582_v6 }
0x123b   :  { %3217 = vrot.lane.b32.xlu0 %v8764_v57, %s7825_s0  ;;  %v7787_v57 = vpop.eup %7786 }
0x123c   :  { %v5475_v36 = vadd.f32 1.0, %v7787_v57 }
0x123e   :  { %7790 = vrcp.f32 %v5475_v36 }
0x123f   :  { %5217 = vrot.lane.b32.xlu0 %v9002_v46, %s7832_s18 }
0x1243   :  { %4769 = vrot.lane.b32.xlu0 %v9030_v8, %s7826_s3 }
0x1246   :  { %v7789_v9 = vpop.eup %7788 }
0x1247   :  { %2440 = vrot.lane.b32.xlu0 %v9283_v24, %s7824_s17  ;;  %v5476_v46 = vadd.f32 1.0, %v7789_v9 }
0x1249   :  { %7792 = vrcp.f32 %v5476_v46 }
0x124b   :  { %v7791_v8 = vpop.eup %7790 }
0x124c   :  { %v5500_v39 = vsub.f32 1.0, %v7791_v8  ;;  %v5516_v28 = vmul.f32 %v7791_v8, %v5512_v13 }
0x1256   :  { %v7793_v49 = vpop.eup %7792 }
0x1257   :  { %v5501_v15 = vsub.f32 1.0, %v7793_v49  ;;  %v5517_v10 = vmul.f32 %v7793_v49, %v5513_v30 }
0x12a0   :  { %v5505_v16 = vpop.permute.xlu1 %5504 }
0x12a1   :  { %v5507_v31 = vpop.permute.xlu0 %5506  ;;  %v5510_v40 = vmul.f32 %v5505_v16, %v5500_v39 }
0x12a2   :  { %v5511_v33 = vmul.f32 %v5507_v31, %v5501_v15 }
0x12a3   :  { %v5518_v54 = vadd.f32 %v5516_v28, %v5510_v40 }
0x12a4   :  { %v5519_v20 = vadd.f32 %v5517_v10, %v5511_v33 }
0x12a5   :  { %v5522_v23 = vcombine.high %v5518_v54, %v5518_v54  ;;  %v6000_v7 = vrot.slane %v5518_v54, 7  ;;  %v2113_v41 = vpop.permute.xlu0 %2112 }
0x12a6   :  { %v5531_v34 = vcombine.high %v5519_v20, %v5519_v20  ;;  %v6001_v22 = vrot.slane %v5519_v20, 6  ;;  %2116 = vst.msk [vmem:[%s9274_s10] sm:$0x3] %vm2115_vm9, %v2113_v41 }
0x12a7   :  { %v5529_v58 = vrot.slane %v5522_v23, %v8051_v37 }
0x12a8   :  { %v5538_v35 = vrot.slane %v5531_v34, %v8051_v37  ;;  %v6002_v27 = vsel %vm515_vm3, %v6001_v22, %v6000_v7 }
0x12a9   :  { %v5530_v51 = vcombine.high %v5529_v58, %v5529_v58  ;;  %v3666_v38 = vpop.permute.xlu0 %3665  ;;  %6003 = vrot.lane.b32.xlu1 %v6002_v27, %s7825_s0 }
0x12aa   :  { %v5539_v29 = vcombine.high %v5538_v35, %v5538_v35 }
0x12ab   :  { %v5540_v19 = vrot.slane %v5530_v51, 1 }
0x12ad   :  { %v3218_v11 = vpop.permute.xlu0 %3217  ;;  %2889 = vrot.lane.b32.xlu1 %v8588_v26, %s7833_s21  ;;  %v5543_v25 = vsel %vm515_vm3, %v5539_v29, %v5540_v19  ;;  %vm5220_vm3 = vcmask 189600  }
0x12ae   :  { %3220 = vst.msk [vmem:[%s9275_s9 + $0x2] sm:$0x3] %vm526_vm10, %v3218_v11  ;;  %v5544_v37 = vsel %vm517_vm4, %v5539_v29, %v5543_v25  ;;  %vm2443_vm4 = vcmask 1042176  }
0x12af   :  { %3994 = vst.msk [vmem:[%s9275_s9 + $0x2] sm:$0x3] %vm845_vm11, %v8893_v12  ;;  %v5545_v55 = vsel %vm519_vm5, %v5539_v29, %v5544_v37  ;;  %v9285_v12 = vld [vmem:[#allocation4_spill] sm:$0xff] }
0x12b0   :  { %v5546_v42 = vsel %vm521_vm6, %v5539_v29, %v5545_v55 }
0x12b1   :  { %v5218_v26 = vpop.permute.xlu0 %5217  ;;  %523 = vrot.lane.b32.xlu1 %v9284_v17, %s7825_s0 }
0x12b5   :  { %v4770_v18 = vpop.permute.xlu0 %4769  ;;  %4439 = vrot.lane.b32.xlu1 %v8865_v48, %s7834_s1 }
0x12b6   :  { %4772 = vst.msk [vmem:[%s9275_s9 + $0x2] sm:$0x3] %vm1665_vm12, %v4770_v18 }
0x12b9   :  { %1662 = vrot.lane.b32.xlu1 %v9285_v12, %s7826_s3 }
0x12bd   :  { %5995 = vrot.lane.b32.xlu1 %v9140_v47, %s7835_s26 }
0x12c1   :  { %5547 = vrot.lane.b32.xlu1 %v5546_v42, %s7824_s17 }
0x131b   :  { %v6004_v21 = vpop.permute.xlu1 %6003 }
0x131c   :  { %7510 = vmatmul.mubr.msk.f32.vlgmr.msra.gmra.mxu0 %vm175_vm7, %v6004_v21  ;;  %7521 = vmatmul.mubr.msk.f32.vlgmr.msra.gmra.mxu1 %vm175_vm7, %v6004_v21 }
0x131d   :  { %7524 = vmatpush3.msra.mxu0 %v8214_v45  ;;  %7535 = vmatpush3.msk.msra.mxu1 %vm57_vm0, %v9091_v14 }
0x131e   :  { %7525 = vmatprep.subr.mxu0 %v9282_v60  ;;  %7536 = vmatprep.mubr.msk.f32.mxu1 %vm7823_vm1, %v9282_v60 }
0x131f   :  { %7526 = vmatpush3.msra.mxu0 %v8243_v0  ;;  %7539 = vmatprep.subr.mxu1 %v9282_v60  ;;  %v2890_v48 = vpop.permute.xlu1 %2889 }
0x1320   :  { %7527 = vmatprep.subr.mxu0 %v9282_v60  ;;  %2893 = vst.msk [vmem:[%s9274_s10] sm:$0x3] %vm2892_vm13, %v2890_v48  ;;  %7537 = vmatmul.mubr.msk.f32.vlgmr.msra.gmra.mxu1 %vm50_vm2, %v9140_v47 }
0x1321   :  { %7528 = vmatpush3.msra.mxu0 %v8245_v1  ;;  %7540 = vmatpush3.msk.msra.mxu1 %vm57_vm0, %v8200_v43  ;;  %3669 = vst.msk [vmem:[%s9274_s10] sm:$0x3] %vm3668_vm14, %v3666_v38  ;;  %v9286_v43 = vld [vmem:[#allocation3_spill] sm:$0xff] }
0x1322   :  { %7529 = vmatprep.subr.mxu0 %v9282_v60  ;;  %7531 = vmatprep.mubr.msk.f32.mxu0 %vm7823_vm1, %v9282_v60 }
0x1323   :  { %7530 = vmatpush3.msra.mxu0 %v8254_v4  ;;  %7541 = vmatprep.mubr.msk.f32.mxu1 %vm7823_vm1, %v9282_v60  ;;  %v524_v45 = vpop.permute.xlu1 %523  ;;  %v2441_v4 = vpop.permute.xlu0 %2440 }
0x1324   :  { %7532 = vmatmul.mubr.msk.f32.vlgmr.msra.gmra.mxu0 %vm175_vm7, %v6004_v21  ;;  %7544 = vmatprep.subr.mxu0 %v9282_v60  ;;  %527 = vst.msk [vmem:[%s9275_s9] sm:$0x3] %vm526_vm10, %v524_v45 }
0x1325   :  { %846 = vst.msk [vmem:[%s9275_s9] sm:$0x3] %vm845_vm11, %v9286_v43  ;;  %7542 = vmatmul.mubr.msk.f32.vlgmr.msra.gmra.mxu1 %vm50_vm2, %v9140_v47  ;;  %7545 = vmatpush3.msk.msra.mxu0 %vm57_vm0, %v8262_v5  ;;  %vm5998_vm0 = vcmask 222400  }
0x1326   :  { %7546 = vmatprep.mubr.msk.f32.mxu0 %vm7823_vm1, %v9282_v60  ;;  %vm6454_vm1 = vcmask 255200  }
0x1327   :  { %v4440_v0 = vpop.permute.xlu1 %4439 }
0x1328   :  { %7547 = vmatmul.mubr.msk.f32.vlgmr.msra.gmra.mxu0 %vm50_vm2, %v9140_v47  ;;  %4443 = vst.msk [vmem:[%s9274_s10] sm:$0x3] %vm4442_vm15, %v4440_v0 }
0x1329   :  { %5221 = vst.msk [vmem:[%s9274_s10] sm:$0x3] %vm5220_vm3, %v5218_v26 }
0x132b   :  { %v1663_v1 = vpop.permute.xlu1 %1662 }
0x132c   :  { %1666 = vst.msk [vmem:[%s9275_s9] sm:$0x3] %vm1665_vm12, %v1663_v1 }
0x132d   :  { %2444 = vst.msk [vmem:[%s9275_s9] sm:$0x3] %vm2443_vm4, %v2441_v4 }
0x132f   :  { %v5996_v5 = vpop.permute.xlu1 %5995 }
0x1330   :  { %5999 = vst.msk [vmem:[%s9274_s10] sm:$0x3] %vm5998_vm0, %v5996_v5 }
0x1333   :  { %v5548_v60 = vpop.permute.xlu1 %5547 }
0x1334   :  { %5550 = vst.msk [vmem:[%s9275_s9 + $0x2] sm:$0x3] %vm2443_vm4, %v5548_v60  ;;  %s7836_s9 = smov 28  }
0x13dc   :  { %v6073_v14 = vpop.f32.mrf.mxu0  ;;  %v6143_v3 = vpop.f32.mrf.mxu1 }
0x13dd   :  { %v6074_v24 = vadd.f32 %v6073_v14, %v8343_v56  ;;  %v6144_v6 = vadd.f32 %v6143_v3, %v8391_v61 }
0x13de   :  { %v7511_v50 = vpop.f32.mrf.mxu0  ;;  %v7522_v44 = vpop.f32.mrf.mxu1 }
0x13e0   :  { %v6285_v53 = vpop.f32.mrf.mxu1 }
0x13e1   :  { %v6429_v2 = vadd.f32 %v6285_v53, %v6074_v24 }
0x13e2   :  { %v7538_v59 = vpop.f32.mrf.mxu1 }
0x13e3   :  { %v6603_v52 = vmul.f32 -1.442695, %v6429_v2 }
0x13e4   :  { %v6213_v32 = vpop.f32.mrf.mxu0 }
0x13e5   :  { %7794 = vpow2.f32 %v6603_v52  ;;  %v6355_v57 = vpop.f32.mrf.mxu1  ;;  %v6214_v28 = vadd.f32 %v6213_v32, %v8412_v62 }
0x13e6   :  { %v7533_v9 = vpop.f32.mrf.mxu0  ;;  %v6436_v36 = vadd.f32 %v6355_v57, %v6144_v6 }
0x13e7   :  { %v7543_v46 = vpop.f32.mrf.mxu1 }
0x13e8   :  { %v6425_v8 = vpop.f32.mrf.mxu0  ;;  %v6604_v39 = vmul.f32 -1.442695, %v6436_v36 }
0x13e9   :  { %v6426_v16 = vadd.f32 %v6425_v8, %v8410_v63 }
0x13ea   :  { %v7548_v49 = vpop.f32.mrf.mxu0  ;;  %7796 = vpow2.f32 %v6604_v39 }
0x13f2   :  { %v7795_v13 = vpop.eup %7794 }
0x13f3   :  { %v6433_v15 = vadd.f32 1.0, %v7795_v13 }
0x13f5   :  { %7798 = vrcp.f32 %v6433_v15 }
0x13f7   :  { %v7797_v56 = vpop.eup %7796 }
0x13f8   :  { %v6440_v30 = vadd.f32 1.0, %v7797_v56 }
0x13fa   :  { %7800 = vrcp.f32 %v6440_v30 }
0x1402   :  { %v7799_v31 = vpop.eup %7798 }
0x1403   :  { %v6443_v61 = vmul.f32 %v7799_v31, %v6426_v16 }
0x1405   :  { %v6444_v40 = vadd.f32 %v6443_v61, %v6214_v28 }
0x1407   :  { %7802 = vtanh.f32 %v6444_v40  ;;  %v7801_v10 = vpop.eup %7800 }
0x1408   :  { %v6446_v33 = vsub.f32 1.0, %v7801_v10  ;;  %v6448_v23 = vmul.f32 %v7801_v10, %v9140_v47 }
0x1414   :  { %v7803_v54 = vpop.eup %7802 }
0x1415   :  { %v6447_v20 = vmul.f32 %v7803_v54, %v6446_v33 }
0x1417   :  { %v6449_v7 = vadd.f32 %v6448_v23, %v6447_v20 }
0x1419   :  { %6451 = vrot.lane.b32.xlu0 %v6449_v7, %s7836_s9 }
0x148b   :  { %v6452_v41 = vpop.permute.xlu0 %6451 }
0x148c   :  { %6455 = vst.msk [vmem:[%s9274_s10] sm:$0x3] %vm6454_vm1, %v6452_v41 }

</bundles_post_ra>
